<compile_context>
chip_gen: v7x
topology: tpu7x:2x2x1
jax: 0.10.0
libtpu: 0.0.40
codegen_flags: <defaults>
</compile_context>

<pallas_src>
import functools

import jax
import jax.numpy as jnp
import numpy as np
from jax.experimental import pallas as pl
from jax.experimental.pallas import tpu as pltpu


# --------------------------------------------------------------------------- kernels


def _conv3x3_kernel(xpad_ref, w_ref, b_ref, m_ref, *rest, W, HW, relu, residual):
    """3x3 zero-padded conv as 9 MXU matmuls (+bias, optional ReLU / residual add).

    xpad_ref: (1, C_in, HW + 2*(W+1)) bf16  flat NC(H*W) activations, zero-padded by W+1
    w_ref   : (9, C_out, C_in)        bf16  tap-major weights, tap = dy*3 + dx
    b_ref   : (C_out, 1)              f32
    m_ref   : (9, HW)                 bf16  per-tap column-validity masks (0/1)
    rest    : ([res_ref (1,C_out,HW) f32], out_ref (1,C_out,HW) f32)
    """
    if residual:
        res_ref, out_ref = rest
    else:
        (out_ref,) = rest
    c_out = w_ref.shape[1]

    acc = jnp.zeros((c_out, HW), jnp.float32)
    for tap in range(9):                       # statically unrolled, 9 taps
        oy = tap // 3 - 1
        ox = tap % 3 - 1
        start = (W + 1) + oy * W + ox
        # Shifted window read straight from the ref (static lane-offset slice); columns
        # that wrapped across image rows are masked, row overruns hit the zero padding.
        patch = xpad_ref[0, :, start:start + HW] * m_ref[tap:tap + 1, :]  # (C_in, HW)
        acc = acc + jnp.dot(w_ref[tap], patch,
                            preferred_element_type=jnp.float32)          # MXU, f32 acc
    acc = acc + b_ref[...]                                               # (C_out,1) bcast
    if relu:
        acc = jnp.maximum(acc, 0.0)
    if residual:
        acc = acc + res_ref[0]                                           # f32 residual add
    out_ref[0] = acc.astype(out_ref.dtype)


def _spade_modulate_kernel(x_ref, g_ref, b_ref, out_ref, *, eps, slope):
    """out = LeakyReLU( InstanceNorm(x) * (1 + gamma) + beta ) on (C, H*W) slabs, f32."""
    x = x_ref[0]                                                 # (C, HW)
    mean = jnp.mean(x, axis=1, keepdims=True)                    # (C, 1)
    var = jnp.mean(jnp.square(x - mean), axis=1, keepdims=True)  # biased, as InstanceNorm2d
    xn = (x - mean) * jax.lax.rsqrt(var + eps)
    y = xn * (1.0 + g_ref[0]) + b_ref[0]                         # SPADE modulation
    out_ref[0] = jnp.where(y > 0, y, slope * y)                  # actvn = LeakyReLU(0.2)


# --------------------------------------------------------------------------- wrappers


def _tap_masks(H, W):
    """(9, H*W) bf16 masks: 1 where the tap's column offset stays inside the image row."""
    HW = H * W
    col = np.arange(HW, dtype=np.int64) % W
    m = np.zeros((9, HW), np.float32)
    for tap in range(9):
        ox = tap % 3 - 1
        m[tap] = ((col + ox >= 0) & (col + ox < W)).astype(np.float32)
    return jnp.asarray(m, dtype=jnp.bfloat16)


def conv3x3(x_flat, w_oihw, b, masks, H, W, *, relu=False, residual=None):
    """3x3 conv (padding=1) on (N, C_in, H*W) slabs -> (N, C_out, H*W) f32."""
    N, C_in, HW = x_flat.shape
    C_out = w_oihw.shape[0]
    pad = W + 1
    Lp = HW + 2 * pad

    xpad = jnp.pad(x_flat.astype(jnp.bfloat16), ((0, 0), (0, 0), (pad, pad)))
    # OIHW -> (tap, C_out, C_in), tap = dy*3 + dx  (done once, outside the kernel loop)
    w9 = jnp.transpose(w_oihw, (2, 3, 0, 1)).reshape(9, C_out, C_in).astype(jnp.bfloat16)
    b2 = b.reshape(C_out, 1).astype(jnp.float32)

    kernel = functools.partial(_conv3x3_kernel, W=W, HW=HW, relu=relu,
                               residual=residual is not None)
    in_specs = [
        pl.BlockSpec((1, C_in, Lp), lambda n: (n, 0, 0)),
        pl.BlockSpec((9, C_out, C_in), lambda n: (0, 0, 0)),
        pl.BlockSpec((C_out, 1), lambda n: (0, 0)),
        pl.BlockSpec((9, HW), lambda n: (0, 0)),
    ]
    args = [xpad, w9, b2, masks]
    if residual is not None:
        in_specs.append(pl.BlockSpec((1, C_out, HW), lambda n: (n, 0, 0)))
        args.append(residual.astype(jnp.float32))

    flops = 2 * 9 * C_in * C_out * HW * N
    bytes_accessed = (xpad.size * 2 + w9.size * 2 + b2.size * 4 + masks.size * 2
                      + N * C_out * HW * 4
                      + (residual.size * 4 if residual is not None else 0))

    return pl.pallas_call(
        kernel,
        out_shape=jax.ShapeDtypeStruct((N, C_out, HW), jnp.float32),
        grid_spec=pltpu.PrefetchScalarGridSpec(
            num_scalar_prefetch=0,
            grid=(N,),
            in_specs=in_specs,
            out_specs=pl.BlockSpec((1, C_out, HW), lambda n: (n, 0, 0)),
        ),
        compiler_params=pltpu.CompilerParams(dimension_semantics=("parallel",)),
        cost_estimate=pl.CostEstimate(flops=flops, transcendentals=0,
                                      bytes_accessed=int(bytes_accessed)),
    )(*args)


def spade_modulate(x_flat, gamma, beta, *, eps=1e-5, slope=0.2):
    """LeakyReLU(InstanceNorm(x) * (1+gamma) + beta) on (N, C, H*W) slabs, f32."""
    N, C, HW = x_flat.shape
    kernel = functools.partial(_spade_modulate_kernel, eps=eps, slope=slope)
    spec = pl.BlockSpec((1, C, HW), lambda n: (n, 0, 0))
    return pl.pallas_call(
        kernel,
        out_shape=jax.ShapeDtypeStruct((N, C, HW), jnp.float32),
        grid_spec=pltpu.PrefetchScalarGridSpec(
            num_scalar_prefetch=0,
            grid=(N,),
            in_specs=[spec, spec, spec],
            out_specs=spec,
        ),
        compiler_params=pltpu.CompilerParams(dimension_semantics=("parallel",)),
    )(x_flat.astype(jnp.float32), gamma, beta)


def spade_resnet_block_forward(x, feature, params):
    """SPADEResnetBlock.forward. x: (N, fin, H, W) f32; feature: (N, feature_nc, Hf, Wf)."""
    N, C, H, W = x.shape
    HW = H * W
    if feature.shape[2:] != (H, W):
        # TODO(synk): F.interpolate(mode='nearest') equivalent left as JAX glue (no-op here).
        feature = jax.image.resize(feature, feature.shape[:2] + (H, W), method="nearest")

    x_flat = x.reshape(N, C, HW).astype(jnp.float32)          # free reshape, no transpose
    f_flat = feature.reshape(N, feature.shape[1], HW)
    masks = _tap_masks(H, W)

    def spade_actvn(h_flat, pfx):
        # SPADE(h, feature) followed by LeakyReLU(0.2) (the block's actvn), fused.
        actv = conv3x3(f_flat, params[pfx + "sh_w"], params[pfx + "sh_b"],
                       masks, H, W, relu=True)
        gamma = conv3x3(actv, params[pfx + "g_w"], params[pfx + "g_b"], masks, H, W)
        beta = conv3x3(actv, params[pfx + "b_w"], params[pfx + "b_b"], masks, H, W)
        return spade_modulate(h_flat, gamma, beta)

    # TODO(synk): learned shortcut (fin != fout: conv_s(norm_s(x, feature))) not
    # implemented; identity shortcut (fin == fout).  spectral_norm only rescales conv
    # weights at forward time and is treated as identity for these synthetic weights.
    dx = conv3x3(spade_actvn(x_flat, "s0_"), params["c0_w"], params["c0_b"], masks, H, W)
    out_flat = conv3x3(spade_actvn(dx, "s1_"), params["c1_w"], params["c1_b"],
                       masks, H, W, residual=x_flat)           # fused x_s + dx
    return out_flat.reshape(N, C, H, W)


# --------------------------------------------------------------------------- reference


def ref_forward(x, feature, params, *, eps=1e-5):
    """Pure-JAX f32 reference matching SPADEResnetBlock.forward (identity shortcut)."""
    dn = ("NCHW", "OIHW", "NCHW")

    def conv(h, w, b):
        y = jax.lax.conv_general_dilated(h, w, (1, 1), ((1, 1), (1, 1)),
                                         dimension_numbers=dn)
        return y + b[None, :, None, None]

    def inorm(h):
        mean = jnp.mean(h, axis=(2, 3), keepdims=True)
        var = jnp.mean(jnp.square(h - mean), axis=(2, 3), keepdims=True)
        return (h - mean) * jax.lax.rsqrt(var + eps)

    def spade(h, seg, pfx):
        actv = jnp.maximum(conv(seg, params[pfx + "sh_w"], params[pfx + "sh_b"]), 0.0)
        gamma = conv(actv, params[pfx + "g_w"], params[pfx + "g_b"])
        beta = conv(actv, params[pfx + "b_w"], params[pfx + "b_b"])
        return inorm(h) * (1.0 + gamma) + beta

    def lrelu(h):
        return jnp.where(h > 0, h, 0.2 * h)

    dx = conv(lrelu(spade(x, feature, "s0_")), params["c0_w"], params["c0_b"])
    dx = conv(lrelu(spade(dx, feature, "s1_")), params["c1_w"], params["c1_b"])
    return x + dx


# --------------------------------------------------------------------------- params


def init_params(key, fin, fout, feature_nc, nhidden=128):
    assert fin == fout, "learned shortcut path not implemented"
    fmiddle = min(fin, fout)
    keys = jax.random.split(key, 8)
    params = {}

    def conv_p(k, c_out, c_in, prefix):
        kw, kb = jax.random.split(k)
        s = 1.0 / np.sqrt(9 * c_in)
        params[prefix + "w"] = s * jax.random.normal(kw, (c_out, c_in, 3, 3), jnp.float32)
        params[prefix + "b"] = s * jax.random.normal(kb, (c_out,), jnp.float32)

    conv_p(keys[0], nhidden, feature_nc, "s0_sh_")   # SPADE_0 mlp_shared
    conv_p(keys[1], fin, nhidden, "s0_g_")           # SPADE_0 mlp_gamma
    conv_p(keys[2], fin, nhidden, "s0_b_")           # SPADE_0 mlp_beta
    conv_p(keys[3], fmiddle, fin, "c0_")             # conv_0
    conv_p(keys[4], nhidden, feature_nc, "s1_sh_")   # SPADE_1 mlp_shared
    conv_p(keys[5], fmiddle, nhidden, "s1_g_")       # SPADE_1 mlp_gamma
    conv_p(keys[6], fmiddle, nhidden, "s1_b_")       # SPADE_1 mlp_beta
    conv_p(keys[7], fout, fmiddle, "c1_")            # conv_1
    return params


# --------------------------------------------------------------------------- main


if __name__ == "__main__":
    N, C, H, W = 2, 4, 16, 16        # fin = fout = 4 -> identity shortcut
    FEATURE_NC = 4
    NHIDDEN = 128                    # SPADE hidden width (standard)

    key = jax.random.PRNGKey(0)
    kx, kf, kp = jax.random.split(key, 3)
    x = jax.random.normal(kx, (N, C, H, W), jnp.float32)
    feature = jax.random.normal(kf, (N, FEATURE_NC, H, W), jnp.float32)
    params = init_params(kp, fin=C, fout=C, feature_nc=FEATURE_NC, nhidden=NHIDDEN)

    fwd = jax.jit(spade_resnet_block_forward)
    out = jax.block_until_ready(fwd(x, feature, params))

    ref = ref_forward(x, feature, params)
    # Tolerance accounts for bf16 MXU operands (f32 accumulation) vs the pure-f32 reference.
    np.testing.assert_allclose(np.asarray(out), np.asarray(ref), rtol=5e-2, atol=5e-2)
    print("KERNEL_OK")
</pallas_src>

<mosaic_0001>
module attributes {stable_mosaic.version = 11 : i64} {
  func.func @_conv3x3_kernel(%arg0: i32, %arg1: memref<1x4x290xbf16, #tpu.memory_space<vmem>>, %arg2: memref<9x128x4xbf16, #tpu.memory_space<vmem>>, %arg3: memref<128x1xf32, #tpu.memory_space<vmem>>, %arg4: memref<9x256xbf16, #tpu.memory_space<vmem>>, %arg5: memref<1x128x256xf32, #tpu.memory_space<vmem>>) attributes {dimension_semantics = [#tpu.dimension_semantics<parallel>], iteration_bounds = array<i64: 2>, scalar_prefetch = 0 : i64, scratch_operands = 0 : i64, tpu.core_type = #tpu.core_type<tc>, window_params = [{transform_indices = @transform_0, window_bounds = array<i64: 1, 4, 290>}, {pipeline_mode = #tpu.pipeline_mode<synchronous>, transform_indices = @transform_1, window_bounds = array<i64: 9, 128, 4>}, {pipeline_mode = #tpu.pipeline_mode<synchronous>, transform_indices = @transform_2, window_bounds = array<i64: 128, 1>}, {pipeline_mode = #tpu.pipeline_mode<synchronous>, transform_indices = @transform_3, window_bounds = array<i64: 9, 256>}, {transform_indices = @transform_4, window_bounds = array<i64: 1, 128, 256>}]} {
    %cst = arith.constant 0.000000e+00 : f32
    %0 = vector.broadcast %cst : f32 to vector<128x256xf32>
    %c0 = arith.constant 0 : index
    %c0_0 = arith.constant 0 : index
    %c0_1 = arith.constant 0 : index
    %1 = vector.load %arg1[%c0, %c0_0, %c0_1] : memref<1x4x290xbf16, #tpu.memory_space<vmem>>, vector<1x4x256xbf16>
    %2 = vector.shape_cast %1 : vector<1x4x256xbf16> to vector<4x256xbf16>
    %c0_2 = arith.constant 0 : index
    %c0_3 = arith.constant 0 : index
    %3 = vector.load %arg4[%c0_2, %c0_3] : memref<9x256xbf16, #tpu.memory_space<vmem>>, vector<1x256xbf16>
    %4 = vector.broadcast %3 : vector<1x256xbf16> to vector<4x256xbf16>
    %5 = arith.mulf %2, %4 : vector<4x256xbf16>
    %c0_4 = arith.constant 0 : index
    %c0_5 = arith.constant 0 : index
    %c0_6 = arith.constant 0 : index
    %6 = vector.load %arg2[%c0_4, %c0_5, %c0_6] : memref<9x128x4xbf16, #tpu.memory_space<vmem>>, vector<1x128x4xbf16>
    %7 = vector.shape_cast %6 : vector<1x128x4xbf16> to vector<128x4xbf16>
    %cst_7 = arith.constant dense<0.000000e+00> : vector<128x256xf32>
    %8 = tpu.matmul %7, %5, %cst_7 {dimension_numbers = #tpu.dot_dimension_numbers<[1], [0], [0], [1], [0, 0, 1, 1], [], []>} : vector<128x4xbf16>, vector<4x256xbf16>, vector<128x256xf32> -> vector<128x256xf32>
    %9 = arith.addf %0, %8 : vector<128x256xf32>
    %c0_8 = arith.constant 0 : index
    %c0_9 = arith.constant 0 : index
    %c1 = arith.constant 1 : index
    %10 = vector.load %arg1[%c0_8, %c0_9, %c1] : memref<1x4x290xbf16, #tpu.memory_space<vmem>>, vector<1x4x256xbf16>
    %11 = vector.shape_cast %10 : vector<1x4x256xbf16> to vector<4x256xbf16>
    %c1_10 = arith.constant 1 : index
    %c0_11 = arith.constant 0 : index
    %12 = vector.load %arg4[%c1_10, %c0_11] : memref<9x256xbf16, #tpu.memory_space<vmem>>, vector<1x256xbf16>
    %13 = vector.broadcast %12 : vector<1x256xbf16> to vector<4x256xbf16>
    %14 = arith.mulf %11, %13 : vector<4x256xbf16>
    %c1_12 = arith.constant 1 : index
    %c0_13 = arith.constant 0 : index
    %c0_14 = arith.constant 0 : index
    %15 = vector.load %arg2[%c1_12, %c0_13, %c0_14] : memref<9x128x4xbf16, #tpu.memory_space<vmem>>, vector<1x128x4xbf16>
    %16 = vector.shape_cast %15 : vector<1x128x4xbf16> to vector<128x4xbf16>
    %cst_15 = arith.constant dense<0.000000e+00> : vector<128x256xf32>
    %17 = tpu.matmul %16, %14, %cst_15 {dimension_numbers = #tpu.dot_dimension_numbers<[1], [0], [0], [1], [0, 0, 1, 1], [], []>} : vector<128x4xbf16>, vector<4x256xbf16>, vector<128x256xf32> -> vector<128x256xf32>
    %18 = arith.addf %9, %17 : vector<128x256xf32>
    %c0_16 = arith.constant 0 : index
    %c0_17 = arith.constant 0 : index
    %c2 = arith.constant 2 : index
    %19 = vector.load %arg1[%c0_16, %c0_17, %c2] : memref<1x4x290xbf16, #tpu.memory_space<vmem>>, vector<1x4x256xbf16>
    %20 = vector.shape_cast %19 : vector<1x4x256xbf16> to vector<4x256xbf16>
    %c2_18 = arith.constant 2 : index
    %c0_19 = arith.constant 0 : index
    %21 = vector.load %arg4[%c2_18, %c0_19] : memref<9x256xbf16, #tpu.memory_space<vmem>>, vector<1x256xbf16>
    %22 = vector.broadcast %21 : vector<1x256xbf16> to vector<4x256xbf16>
    %23 = arith.mulf %20, %22 : vector<4x256xbf16>
    %c2_20 = arith.constant 2 : index
    %c0_21 = arith.constant 0 : index
    %c0_22 = arith.constant 0 : index
    %24 = vector.load %arg2[%c2_20, %c0_21, %c0_22] : memref<9x128x4xbf16, #tpu.memory_space<vmem>>, vector<1x128x4xbf16>
    %25 = vector.shape_cast %24 : vector<1x128x4xbf16> to vector<128x4xbf16>
    %cst_23 = arith.constant dense<0.000000e+00> : vector<128x256xf32>
    %26 = tpu.matmul %25, %23, %cst_23 {dimension_numbers = #tpu.dot_dimension_numbers<[1], [0], [0], [1], [0, 0, 1, 1], [], []>} : vector<128x4xbf16>, vector<4x256xbf16>, vector<128x256xf32> -> vector<128x256xf32>
    %27 = arith.addf %18, %26 : vector<128x256xf32>
    %c0_24 = arith.constant 0 : index
    %c0_25 = arith.constant 0 : index
    %c16 = arith.constant 16 : index
    %28 = vector.load %arg1[%c0_24, %c0_25, %c16] : memref<1x4x290xbf16, #tpu.memory_space<vmem>>, vector<1x4x256xbf16>
    %29 = vector.shape_cast %28 : vector<1x4x256xbf16> to vector<4x256xbf16>
    %c3 = arith.constant 3 : index
    %c0_26 = arith.constant 0 : index
    %30 = vector.load %arg4[%c3, %c0_26] : memref<9x256xbf16, #tpu.memory_space<vmem>>, vector<1x256xbf16>
    %31 = vector.broadcast %30 : vector<1x256xbf16> to vector<4x256xbf16>
    %32 = arith.mulf %29, %31 : vector<4x256xbf16>
    %c3_27 = arith.constant 3 : index
    %c0_28 = arith.constant 0 : index
    %c0_29 = arith.constant 0 : index
    %33 = vector.load %arg2[%c3_27, %c0_28, %c0_29] : memref<9x128x4xbf16, #tpu.memory_space<vmem>>, vector<1x128x4xbf16>
    %34 = vector.shape_cast %33 : vector<1x128x4xbf16> to vector<128x4xbf16>
    %cst_30 = arith.constant dense<0.000000e+00> : vector<128x256xf32>
    %35 = tpu.matmul %34, %32, %cst_30 {dimension_numbers = #tpu.dot_dimension_numbers<[1], [0], [0], [1], [0, 0, 1, 1], [], []>} : vector<128x4xbf16>, vector<4x256xbf16>, vector<128x256xf32> -> vector<128x256xf32>
    %36 = arith.addf %27, %35 : vector<128x256xf32>
    %c0_31 = arith.constant 0 : index
    %c0_32 = arith.constant 0 : index
    %c17 = arith.constant 17 : index
    %37 = vector.load %arg1[%c0_31, %c0_32, %c17] : memref<1x4x290xbf16, #tpu.memory_space<vmem>>, vector<1x4x256xbf16>
    %38 = vector.shape_cast %37 : vector<1x4x256xbf16> to vector<4x256xbf16>
    %c4 = arith.constant 4 : index
    %c0_33 = arith.constant 0 : index
    %39 = vector.load %arg4[%c4, %c0_33] : memref<9x256xbf16, #tpu.memory_space<vmem>>, vector<1x256xbf16>
    %40 = vector.broadcast %39 : vector<1x256xbf16> to vector<4x256xbf16>
    %41 = arith.mulf %38, %40 : vector<4x256xbf16>
    %c4_34 = arith.constant 4 : index
    %c0_35 = arith.constant 0 : index
    %c0_36 = arith.constant 0 : index
    %42 = vector.load %arg2[%c4_34, %c0_35, %c0_36] : memref<9x128x4xbf16, #tpu.memory_space<vmem>>, vector<1x128x4xbf16>
    %43 = vector.shape_cast %42 : vector<1x128x4xbf16> to vector<128x4xbf16>
    %cst_37 = arith.constant dense<0.000000e+00> : vector<128x256xf32>
    %44 = tpu.matmul %43, %41, %cst_37 {dimension_numbers = #tpu.dot_dimension_numbers<[1], [0], [0], [1], [0, 0, 1, 1], [], []>} : vector<128x4xbf16>, vector<4x256xbf16>, vector<128x256xf32> -> vector<128x256xf32>
    %45 = arith.addf %36, %44 : vector<128x256xf32>
    %c0_38 = arith.constant 0 : index
    %c0_39 = arith.constant 0 : index
    %c18 = arith.constant 18 : index
    %46 = vector.load %arg1[%c0_38, %c0_39, %c18] : memref<1x4x290xbf16, #tpu.memory_space<vmem>>, vector<1x4x256xbf16>
    %47 = vector.shape_cast %46 : vector<1x4x256xbf16> to vector<4x256xbf16>
    %c5 = arith.constant 5 : index
    %c0_40 = arith.constant 0 : index
    %48 = vector.load %arg4[%c5, %c0_40] : memref<9x256xbf16, #tpu.memory_space<vmem>>, vector<1x256xbf16>
    %49 = vector.broadcast %48 : vector<1x256xbf16> to vector<4x256xbf16>
    %50 = arith.mulf %47, %49 : vector<4x256xbf16>
    %c5_41 = arith.constant 5 : index
    %c0_42 = arith.constant 0 : index
    %c0_43 = arith.constant 0 : index
    %51 = vector.load %arg2[%c5_41, %c0_42, %c0_43] : memref<9x128x4xbf16, #tpu.memory_space<vmem>>, vector<1x128x4xbf16>
    %52 = vector.shape_cast %51 : vector<1x128x4xbf16> to vector<128x4xbf16>
    %cst_44 = arith.constant dense<0.000000e+00> : vector<128x256xf32>
    %53 = tpu.matmul %52, %50, %cst_44 {dimension_numbers = #tpu.dot_dimension_numbers<[1], [0], [0], [1], [0, 0, 1, 1], [], []>} : vector<128x4xbf16>, vector<4x256xbf16>, vector<128x256xf32> -> vector<128x256xf32>
    %54 = arith.addf %45, %53 : vector<128x256xf32>
    %c0_45 = arith.constant 0 : index
    %c0_46 = arith.constant 0 : index
    %c32 = arith.constant 32 : index
    %55 = vector.load %arg1[%c0_45, %c0_46, %c32] : memref<1x4x290xbf16, #tpu.memory_space<vmem>>, vector<1x4x256xbf16>
    %56 = vector.shape_cast %55 : vector<1x4x256xbf16> to vector<4x256xbf16>
    %c6 = arith.constant 6 : index
    %c0_47 = arith.constant 0 : index
    %57 = vector.load %arg4[%c6, %c0_47] : memref<9x256xbf16, #tpu.memory_space<vmem>>, vector<1x256xbf16>
    %58 = vector.broadcast %57 : vector<1x256xbf16> to vector<4x256xbf16>
    %59 = arith.mulf %56, %58 : vector<4x256xbf16>
    %c6_48 = arith.constant 6 : index
    %c0_49 = arith.constant 0 : index
    %c0_50 = arith.constant 0 : index
    %60 = vector.load %arg2[%c6_48, %c0_49, %c0_50] : memref<9x128x4xbf16, #tpu.memory_space<vmem>>, vector<1x128x4xbf16>
    %61 = vector.shape_cast %60 : vector<1x128x4xbf16> to vector<128x4xbf16>
    %cst_51 = arith.constant dense<0.000000e+00> : vector<128x256xf32>
    %62 = tpu.matmul %61, %59, %cst_51 {dimension_numbers = #tpu.dot_dimension_numbers<[1], [0], [0], [1], [0, 0, 1, 1], [], []>} : vector<128x4xbf16>, vector<4x256xbf16>, vector<128x256xf32> -> vector<128x256xf32>
    %63 = arith.addf %54, %62 : vector<128x256xf32>
    %c0_52 = arith.constant 0 : index
    %c0_53 = arith.constant 0 : index
    %c33 = arith.constant 33 : index
    %64 = vector.load %arg1[%c0_52, %c0_53, %c33] : memref<1x4x290xbf16, #tpu.memory_space<vmem>>, vector<1x4x256xbf16>
    %65 = vector.shape_cast %64 : vector<1x4x256xbf16> to vector<4x256xbf16>
    %c7 = arith.constant 7 : index
    %c0_54 = arith.constant 0 : index
    %66 = vector.load %arg4[%c7, %c0_54] : memref<9x256xbf16, #tpu.memory_space<vmem>>, vector<1x256xbf16>
    %67 = vector.broadcast %66 : vector<1x256xbf16> to vector<4x256xbf16>
    %68 = arith.mulf %65, %67 : vector<4x256xbf16>
    %c7_55 = arith.constant 7 : index
    %c0_56 = arith.constant 0 : index
    %c0_57 = arith.constant 0 : index
    %69 = vector.load %arg2[%c7_55, %c0_56, %c0_57] : memref<9x128x4xbf16, #tpu.memory_space<vmem>>, vector<1x128x4xbf16>
    %70 = vector.shape_cast %69 : vector<1x128x4xbf16> to vector<128x4xbf16>
    %cst_58 = arith.constant dense<0.000000e+00> : vector<128x256xf32>
    %71 = tpu.matmul %70, %68, %cst_58 {dimension_numbers = #tpu.dot_dimension_numbers<[1], [0], [0], [1], [0, 0, 1, 1], [], []>} : vector<128x4xbf16>, vector<4x256xbf16>, vector<128x256xf32> -> vector<128x256xf32>
    %72 = arith.addf %63, %71 : vector<128x256xf32>
    %c0_59 = arith.constant 0 : index
    %c0_60 = arith.constant 0 : index
    %c34 = arith.constant 34 : index
    %73 = vector.load %arg1[%c0_59, %c0_60, %c34] : memref<1x4x290xbf16, #tpu.memory_space<vmem>>, vector<1x4x256xbf16>
    %74 = vector.shape_cast %73 : vector<1x4x256xbf16> to vector<4x256xbf16>
    %c8 = arith.constant 8 : index
    %c0_61 = arith.constant 0 : index
    %75 = vector.load %arg4[%c8, %c0_61] : memref<9x256xbf16, #tpu.memory_space<vmem>>, vector<1x256xbf16>
    %76 = vector.broadcast %75 : vector<1x256xbf16> to vector<4x256xbf16>
    %77 = arith.mulf %74, %76 : vector<4x256xbf16>
    %c8_62 = arith.constant 8 : index
    %c0_63 = arith.constant 0 : index
    %c0_64 = arith.constant 0 : index
    %78 = vector.load %arg2[%c8_62, %c0_63, %c0_64] : memref<9x128x4xbf16, #tpu.memory_space<vmem>>, vector<1x128x4xbf16>
    %79 = vector.shape_cast %78 : vector<1x128x4xbf16> to vector<128x4xbf16>
    %cst_65 = arith.constant dense<0.000000e+00> : vector<128x256xf32>
    %80 = tpu.matmul %79, %77, %cst_65 {dimension_numbers = #tpu.dot_dimension_numbers<[1], [0], [0], [1], [0, 0, 1, 1], [], []>} : vector<128x4xbf16>, vector<4x256xbf16>, vector<128x256xf32> -> vector<128x256xf32>
    %81 = arith.addf %72, %80 : vector<128x256xf32>
    %c0_66 = arith.constant 0 : index
    %c0_67 = arith.constant 0 : index
    %82 = vector.load %arg3[%c0_66, %c0_67] : memref<128x1xf32, #tpu.memory_space<vmem>>, vector<128x1xf32>
    %83 = vector.broadcast %82 : vector<128x1xf32> to vector<128x256xf32>
    %84 = arith.addf %81, %83 : vector<128x256xf32>
    %cst_68 = arith.constant 0.000000e+00 : f32
    %85 = vector.broadcast %cst_68 : f32 to vector<128x256xf32>
    %86 = arith.maximumf %84, %85 : vector<128x256xf32>
    %c0_69 = arith.constant 0 : index
    %c0_70 = arith.constant 0 : index
    %c0_71 = arith.constant 0 : index
    %87 = vector.load %arg5[%c0_69, %c0_70, %c0_71] : memref<1x128x256xf32, #tpu.memory_space<vmem>>, vector<1x128x256xf32>
    %88 = vector.shape_cast %87 : vector<1x128x256xf32> to vector<128x256xf32>
    %89 = vector.shape_cast %86 : vector<128x256xf32> to vector<1x128x256xf32>
    tpu.vector_store %arg5[%c0_69, %c0_70, %c0_71], %89 {strides = array<i32>} : memref<1x128x256xf32, #tpu.memory_space<vmem>>, vector<1x128x256xf32>,
    return
  }
  func.func @transform_0(%arg0: i32) -> (i32, i32, i32) {
    %c0_i32 = arith.constant 0 : i32
    %c0_i32_0 = arith.constant 0 : i32
    %c0_i32_1 = arith.constant 0 : i32
    return %arg0, %c0_i32, %c0_i32_0 : i32, i32, i32
  }
  func.func @transform_1(%arg0: i32) -> (i32, i32, i32) {
    %c0_i32 = arith.constant 0 : i32
    %c0_i32_0 = arith.constant 0 : i32
    %c0_i32_1 = arith.constant 0 : i32
    %c0_i32_2 = arith.constant 0 : i32
    return %c0_i32, %c0_i32_0, %c0_i32_1 : i32, i32, i32
  }
  func.func @transform_2(%arg0: i32) -> (i32, i32) {
    %c0_i32 = arith.constant 0 : i32
    %c0_i32_0 = arith.constant 0 : i32
    %c0_i32_1 = arith.constant 0 : i32
    return %c0_i32, %c0_i32_0 : i32, i32
  }
  func.func @transform_3(%arg0: i32) -> (i32, i32) {
    %c0_i32 = arith.constant 0 : i32
    %c0_i32_0 = arith.constant 0 : i32
    %c0_i32_1 = arith.constant 0 : i32
    return %c0_i32, %c0_i32_0 : i32, i32
  }
  func.func @transform_4(%arg0: i32) -> (i32, i32, i32) {
    %c0_i32 = arith.constant 0 : i32
    %c0_i32_0 = arith.constant 0 : i32
    %c0_i32_1 = arith.constant 0 : i32
    return %arg0, %c0_i32, %c0_i32_0 : i32, i32, i32
  }
}

module attributes {stable_mosaic.version = 11 : i64} {
  func.func @_spade_modulate_kernel(%arg0: i32, %arg1: memref<1x4x256xf32, #tpu.memory_space<vmem>>, %arg2: memref<1x4x256xf32, #tpu.memory_space<vmem>>, %arg3: memref<1x4x256xf32, #tpu.memory_space<vmem>>, %arg4: memref<1x4x256xf32, #tpu.memory_space<vmem>>) attributes {dimension_semantics = [#tpu.dimension_semantics<parallel>], iteration_bounds = array<i64: 2>, scalar_prefetch = 0 : i64, scratch_operands = 0 : i64, tpu.core_type = #tpu.core_type<tc>, window_params = [{transform_indices = @transform_0, window_bounds = array<i64: 1, 4, 256>}, {transform_indices = @transform_1, window_bounds = array<i64: 1, 4, 256>}, {transform_indices = @transform_2, window_bounds = array<i64: 1, 4, 256>}, {transform_indices = @transform_3, window_bounds = array<i64: 1, 4, 256>}]} {
    %c0 = arith.constant 0 : index
    %c0_0 = arith.constant 0 : index
    %c0_1 = arith.constant 0 : index
    %0 = vector.load %arg1[%c0, %c0_0, %c0_1] : memref<1x4x256xf32, #tpu.memory_space<vmem>>, vector<1x4x256xf32>
    %1 = vector.shape_cast %0 : vector<1x4x256xf32> to vector<4x256xf32>
    %cst = arith.constant dense<0.000000e+00> : vector<4xf32>
    %2 = vector.multi_reduction <add>, %1, %cst [1] : vector<4x256xf32> to vector<4xf32>
    %3 = vector.shape_cast %2 : vector<4xf32> to vector<4x1xf32>
    %cst_2 = arith.constant 2.560000e+02 : f32
    %4 = vector.broadcast %cst_2 : f32 to vector<4x1xf32>
    %5 = arith.divf %3, %4 : vector<4x1xf32>
    %6 = vector.broadcast %5 : vector<4x1xf32> to vector<4x256xf32>
    %7 = arith.subf %1, %6 : vector<4x256xf32>
    %8 = arith.mulf %7, %7 : vector<4x256xf32>
    %cst_3 = arith.constant dense<0.000000e+00> : vector<4xf32>
    %9 = vector.multi_reduction <add>, %8, %cst_3 [1] : vector<4x256xf32> to vector<4xf32>
    %10 = vector.shape_cast %9 : vector<4xf32> to vector<4x1xf32>
    %cst_4 = arith.constant 2.560000e+02 : f32
    %11 = vector.broadcast %cst_4 : f32 to vector<4x1xf32>
    %12 = arith.divf %10, %11 : vector<4x1xf32>
    %13 = vector.broadcast %5 : vector<4x1xf32> to vector<4x256xf32>
    %14 = arith.subf %1, %13 : vector<4x256xf32>
    %cst_5 = arith.constant 9.99999974E-6 : f32
    %15 = vector.broadcast %cst_5 : f32 to vector<4x1xf32>
    %16 = arith.addf %12, %15 : vector<4x1xf32>
    %17 = math.rsqrt %16 : vector<4x1xf32>
    %18 = vector.broadcast %17 : vector<4x1xf32> to vector<4x256xf32>
    %19 = arith.mulf %14, %18 : vector<4x256xf32>
    %c0_6 = arith.constant 0 : index
    %c0_7 = arith.constant 0 : index
    %c0_8 = arith.constant 0 : index
    %20 = vector.load %arg2[%c0_6, %c0_7, %c0_8] : memref<1x4x256xf32, #tpu.memory_space<vmem>>, vector<1x4x256xf32>
    %21 = vector.shape_cast %20 : vector<1x4x256xf32> to vector<4x256xf32>
    %cst_9 = arith.constant 1.000000e+00 : f32
    %22 = vector.broadcast %cst_9 : f32 to vector<4x256xf32>
    %23 = arith.addf %22, %21 : vector<4x256xf32>
    %24 = arith.mulf %19, %23 : vector<4x256xf32>
    %c0_10 = arith.constant 0 : index
    %c0_11 = arith.constant 0 : index
    %c0_12 = arith.constant 0 : index
    %25 = vector.load %arg3[%c0_10, %c0_11, %c0_12] : memref<1x4x256xf32, #tpu.memory_space<vmem>>, vector<1x4x256xf32>
    %26 = vector.shape_cast %25 : vector<1x4x256xf32> to vector<4x256xf32>
    %27 = arith.addf %24, %26 : vector<4x256xf32>
    %cst_13 = arith.constant 0.000000e+00 : f32
    %28 = vector.broadcast %cst_13 : f32 to vector<4x256xf32>
    %29 = arith.cmpf ogt, %27, %28 : vector<4x256xf32>
    %cst_14 = arith.constant 2.000000e-01 : f32
    %30 = vector.broadcast %cst_14 : f32 to vector<4x256xf32>
    %31 = arith.mulf %30, %27 : vector<4x256xf32>
    %32 = arith.select %29, %27, %31 : vector<4x256xi1>, vector<4x256xf32>
    %c0_15 = arith.constant 0 : index
    %c0_16 = arith.constant 0 : index
    %c0_17 = arith.constant 0 : index
    %33 = vector.load %arg4[%c0_15, %c0_16, %c0_17] : memref<1x4x256xf32, #tpu.memory_space<vmem>>, vector<1x4x256xf32>
    %34 = vector.shape_cast %33 : vector<1x4x256xf32> to vector<4x256xf32>
    %35 = vector.shape_cast %32 : vector<4x256xf32> to vector<1x4x256xf32>
    tpu.vector_store %arg4[%c0_15, %c0_16, %c0_17], %35 {strides = array<i32>} : memref<1x4x256xf32, #tpu.memory_space<vmem>>, vector<1x4x256xf32>,
    return
  }
  func.func @transform_0(%arg0: i32) -> (i32, i32, i32) {
    %c0_i32 = arith.constant 0 : i32
    %c0_i32_0 = arith.constant 0 : i32
    %c0_i32_1 = arith.constant 0 : i32
    return %arg0, %c0_i32, %c0_i32_0 : i32, i32, i32
  }
  func.func @transform_1(%arg0: i32) -> (i32, i32, i32) {
    %c0_i32 = arith.constant 0 : i32
    %c0_i32_0 = arith.constant 0 : i32
    %c0_i32_1 = arith.constant 0 : i32
    return %arg0, %c0_i32, %c0_i32_0 : i32, i32, i32
  }
  func.func @transform_2(%arg0: i32) -> (i32, i32, i32) {
    %c0_i32 = arith.constant 0 : i32
    %c0_i32_0 = arith.constant 0 : i32
    %c0_i32_1 = arith.constant 0 : i32
    return %arg0, %c0_i32, %c0_i32_0 : i32, i32, i32
  }
  func.func @transform_3(%arg0: i32) -> (i32, i32, i32) {
    %c0_i32 = arith.constant 0 : i32
    %c0_i32_0 = arith.constant 0 : i32
    %c0_i32_1 = arith.constant 0 : i32
    return %arg0, %c0_i32, %c0_i32_0 : i32, i32, i32
  }
}

module attributes {stable_mosaic.version = 11 : i64} {
  func.func @_conv3x3_kernel(%arg0: i32, %arg1: memref<1x4x290xbf16, #tpu.memory_space<vmem>>, %arg2: memref<9x4x4xbf16, #tpu.memory_space<vmem>>, %arg3: memref<4x1xf32, #tpu.memory_space<vmem>>, %arg4: memref<9x256xbf16, #tpu.memory_space<vmem>>, %arg5: memref<1x4x256xf32, #tpu.memory_space<vmem>>) attributes {dimension_semantics = [#tpu.dimension_semantics<parallel>], iteration_bounds = array<i64: 2>, scalar_prefetch = 0 : i64, scratch_operands = 0 : i64, tpu.core_type = #tpu.core_type<tc>, window_params = [{transform_indices = @transform_0, window_bounds = array<i64: 1, 4, 290>}, {pipeline_mode = #tpu.pipeline_mode<synchronous>, transform_indices = @transform_1, window_bounds = array<i64: 9, 4, 4>}, {pipeline_mode = #tpu.pipeline_mode<synchronous>, transform_indices = @transform_2, window_bounds = array<i64: 4, 1>}, {pipeline_mode = #tpu.pipeline_mode<synchronous>, transform_indices = @transform_3, window_bounds = array<i64: 9, 256>}, {transform_indices = @transform_4, window_bounds = array<i64: 1, 4, 256>}]} {
    %cst = arith.constant 0.000000e+00 : f32
    %0 = vector.broadcast %cst : f32 to vector<4x256xf32>
    %c0 = arith.constant 0 : index
    %c0_0 = arith.constant 0 : index
    %c0_1 = arith.constant 0 : index
    %1 = vector.load %arg1[%c0, %c0_0, %c0_1] : memref<1x4x290xbf16, #tpu.memory_space<vmem>>, vector<1x4x256xbf16>
    %2 = vector.shape_cast %1 : vector<1x4x256xbf16> to vector<4x256xbf16>
    %c0_2 = arith.constant 0 : index
    %c0_3 = arith.constant 0 : index
    %3 = vector.load %arg4[%c0_2, %c0_3] : memref<9x256xbf16, #tpu.memory_space<vmem>>, vector<1x256xbf16>
    %4 = vector.broadcast %3 : vector<1x256xbf16> to vector<4x256xbf16>
    %5 = arith.mulf %2, %4 : vector<4x256xbf16>
    %c0_4 = arith.constant 0 : index
    %c0_5 = arith.constant 0 : index
    %c0_6 = arith.constant 0 : index
    %6 = vector.load %arg2[%c0_4, %c0_5, %c0_6] : memref<9x4x4xbf16, #tpu.memory_space<vmem>>, vector<1x4x4xbf16>
    %7 = vector.shape_cast %6 : vector<1x4x4xbf16> to vector<4x4xbf16>
    %cst_7 = arith.constant dense<0.000000e+00> : vector<4x256xf32>
    %8 = tpu.matmul %7, %5, %cst_7 {dimension_numbers = #tpu.dot_dimension_numbers<[1], [0], [0], [1], [0, 0, 1, 1], [], []>} : vector<4x4xbf16>, vector<4x256xbf16>, vector<4x256xf32> -> vector<4x256xf32>
    %9 = arith.addf %0, %8 : vector<4x256xf32>
    %c0_8 = arith.constant 0 : index
    %c0_9 = arith.constant 0 : index
    %c1 = arith.constant 1 : index
    %10 = vector.load %arg1[%c0_8, %c0_9, %c1] : memref<1x4x290xbf16, #tpu.memory_space<vmem>>, vector<1x4x256xbf16>
    %11 = vector.shape_cast %10 : vector<1x4x256xbf16> to vector<4x256xbf16>
    %c1_10 = arith.constant 1 : index
    %c0_11 = arith.constant 0 : index
    %12 = vector.load %arg4[%c1_10, %c0_11] : memref<9x256xbf16, #tpu.memory_space<vmem>>, vector<1x256xbf16>
    %13 = vector.broadcast %12 : vector<1x256xbf16> to vector<4x256xbf16>
    %14 = arith.mulf %11, %13 : vector<4x256xbf16>
    %c1_12 = arith.constant 1 : index
    %c0_13 = arith.constant 0 : index
    %c0_14 = arith.constant 0 : index
    %15 = vector.load %arg2[%c1_12, %c0_13, %c0_14] : memref<9x4x4xbf16, #tpu.memory_space<vmem>>, vector<1x4x4xbf16>
    %16 = vector.shape_cast %15 : vector<1x4x4xbf16> to vector<4x4xbf16>
    %cst_15 = arith.constant dense<0.000000e+00> : vector<4x256xf32>
    %17 = tpu.matmul %16, %14, %cst_15 {dimension_numbers = #tpu.dot_dimension_numbers<[1], [0], [0], [1], [0, 0, 1, 1], [], []>} : vector<4x4xbf16>, vector<4x256xbf16>, vector<4x256xf32> -> vector<4x256xf32>
    %18 = arith.addf %9, %17 : vector<4x256xf32>
    %c0_16 = arith.constant 0 : index
    %c0_17 = arith.constant 0 : index
    %c2 = arith.constant 2 : index
    %19 = vector.load %arg1[%c0_16, %c0_17, %c2] : memref<1x4x290xbf16, #tpu.memory_space<vmem>>, vector<1x4x256xbf16>
    %20 = vector.shape_cast %19 : vector<1x4x256xbf16> to vector<4x256xbf16>
    %c2_18 = arith.constant 2 : index
    %c0_19 = arith.constant 0 : index
    %21 = vector.load %arg4[%c2_18, %c0_19] : memref<9x256xbf16, #tpu.memory_space<vmem>>, vector<1x256xbf16>
    %22 = vector.broadcast %21 : vector<1x256xbf16> to vector<4x256xbf16>
    %23 = arith.mulf %20, %22 : vector<4x256xbf16>
    %c2_20 = arith.constant 2 : index
    %c0_21 = arith.constant 0 : index
    %c0_22 = arith.constant 0 : index
    %24 = vector.load %arg2[%c2_20, %c0_21, %c0_22] : memref<9x4x4xbf16, #tpu.memory_space<vmem>>, vector<1x4x4xbf16>
    %25 = vector.shape_cast %24 : vector<1x4x4xbf16> to vector<4x4xbf16>
    %cst_23 = arith.constant dense<0.000000e+00> : vector<4x256xf32>
    %26 = tpu.matmul %25, %23, %cst_23 {dimension_numbers = #tpu.dot_dimension_numbers<[1], [0], [0], [1], [0, 0, 1, 1], [], []>} : vector<4x4xbf16>, vector<4x256xbf16>, vector<4x256xf32> -> vector<4x256xf32>
    %27 = arith.addf %18, %26 : vector<4x256xf32>
    %c0_24 = arith.constant 0 : index
    %c0_25 = arith.constant 0 : index
    %c16 = arith.constant 16 : index
    %28 = vector.load %arg1[%c0_24, %c0_25, %c16] : memref<1x4x290xbf16, #tpu.memory_space<vmem>>, vector<1x4x256xbf16>
    %29 = vector.shape_cast %28 : vector<1x4x256xbf16> to vector<4x256xbf16>
    %c3 = arith.constant 3 : index
    %c0_26 = arith.constant 0 : index
    %30 = vector.load %arg4[%c3, %c0_26] : memref<9x256xbf16, #tpu.memory_space<vmem>>, vector<1x256xbf16>
    %31 = vector.broadcast %30 : vector<1x256xbf16> to vector<4x256xbf16>
    %32 = arith.mulf %29, %31 : vector<4x256xbf16>
    %c3_27 = arith.constant 3 : index
    %c0_28 = arith.constant 0 : index
    %c0_29 = arith.constant 0 : index
    %33 = vector.load %arg2[%c3_27, %c0_28, %c0_29] : memref<9x4x4xbf16, #tpu.memory_space<vmem>>, vector<1x4x4xbf16>
    %34 = vector.shape_cast %33 : vector<1x4x4xbf16> to vector<4x4xbf16>
    %cst_30 = arith.constant dense<0.000000e+00> : vector<4x256xf32>
    %35 = tpu.matmul %34, %32, %cst_30 {dimension_numbers = #tpu.dot_dimension_numbers<[1], [0], [0], [1], [0, 0, 1, 1], [], []>} : vector<4x4xbf16>, vector<4x256xbf16>, vector<4x256xf32> -> vector<4x256xf32>
    %36 = arith.addf %27, %35 : vector<4x256xf32>
    %c0_31 = arith.constant 0 : index
    %c0_32 = arith.constant 0 : index
    %c17 = arith.constant 17 : index
    %37 = vector.load %arg1[%c0_31, %c0_32, %c17] : memref<1x4x290xbf16, #tpu.memory_space<vmem>>, vector<1x4x256xbf16>
    %38 = vector.shape_cast %37 : vector<1x4x256xbf16> to vector<4x256xbf16>
    %c4 = arith.constant 4 : index
    %c0_33 = arith.constant 0 : index
    %39 = vector.load %arg4[%c4, %c0_33] : memref<9x256xbf16, #tpu.memory_space<vmem>>, vector<1x256xbf16>
    %40 = vector.broadcast %39 : vector<1x256xbf16> to vector<4x256xbf16>
    %41 = arith.mulf %38, %40 : vector<4x256xbf16>
    %c4_34 = arith.constant 4 : index
    %c0_35 = arith.constant 0 : index
    %c0_36 = arith.constant 0 : index
    %42 = vector.load %arg2[%c4_34, %c0_35, %c0_36] : memref<9x4x4xbf16, #tpu.memory_space<vmem>>, vector<1x4x4xbf16>
    %43 = vector.shape_cast %42 : vector<1x4x4xbf16> to vector<4x4xbf16>
    %cst_37 = arith.constant dense<0.000000e+00> : vector<4x256xf32>
    %44 = tpu.matmul %43, %41, %cst_37 {dimension_numbers = #tpu.dot_dimension_numbers<[1], [0], [0], [1], [0, 0, 1, 1], [], []>} : vector<4x4xbf16>, vector<4x256xbf16>, vector<4x256xf32> -> vector<4x256xf32>
    %45 = arith.addf %36, %44 : vector<4x256xf32>
    %c0_38 = arith.constant 0 : index
    %c0_39 = arith.constant 0 : index
    %c18 = arith.constant 18 : index
    %46 = vector.load %arg1[%c0_38, %c0_39, %c18] : memref<1x4x290xbf16, #tpu.memory_space<vmem>>, vector<1x4x256xbf16>
    %47 = vector.shape_cast %46 : vector<1x4x256xbf16> to vector<4x256xbf16>
    %c5 = arith.constant 5 : index
    %c0_40 = arith.constant 0 : index
    %48 = vector.load %arg4[%c5, %c0_40] : memref<9x256xbf16, #tpu.memory_space<vmem>>, vector<1x256xbf16>
    %49 = vector.broadcast %48 : vector<1x256xbf16> to vector<4x256xbf16>
    %50 = arith.mulf %47, %49 : vector<4x256xbf16>
    %c5_41 = arith.constant 5 : index
    %c0_42 = arith.constant 0 : index
    %c0_43 = arith.constant 0 : index
    %51 = vector.load %arg2[%c5_41, %c0_42, %c0_43] : memref<9x4x4xbf16, #tpu.memory_space<vmem>>, vector<1x4x4xbf16>
    %52 = vector.shape_cast %51 : vector<1x4x4xbf16> to vector<4x4xbf16>
    %cst_44 = arith.constant dense<0.000000e+00> : vector<4x256xf32>
    %53 = tpu.matmul %52, %50, %cst_44 {dimension_numbers = #tpu.dot_dimension_numbers<[1], [0], [0], [1], [0, 0, 1, 1], [], []>} : vector<4x4xbf16>, vector<4x256xbf16>, vector<4x256xf32> -> vector<4x256xf32>
    %54 = arith.addf %45, %53 : vector<4x256xf32>
    %c0_45 = arith.constant 0 : index
    %c0_46 = arith.constant 0 : index
    %c32 = arith.constant 32 : index
    %55 = vector.load %arg1[%c0_45, %c0_46, %c32] : memref<1x4x290xbf16, #tpu.memory_space<vmem>>, vector<1x4x256xbf16>
    %56 = vector.shape_cast %55 : vector<1x4x256xbf16> to vector<4x256xbf16>
    %c6 = arith.constant 6 : index
    %c0_47 = arith.constant 0 : index
    %57 = vector.load %arg4[%c6, %c0_47] : memref<9x256xbf16, #tpu.memory_space<vmem>>, vector<1x256xbf16>
    %58 = vector.broadcast %57 : vector<1x256xbf16> to vector<4x256xbf16>
    %59 = arith.mulf %56, %58 : vector<4x256xbf16>
    %c6_48 = arith.constant 6 : index
    %c0_49 = arith.constant 0 : index
    %c0_50 = arith.constant 0 : index
    %60 = vector.load %arg2[%c6_48, %c0_49, %c0_50] : memref<9x4x4xbf16, #tpu.memory_space<vmem>>, vector<1x4x4xbf16>
    %61 = vector.shape_cast %60 : vector<1x4x4xbf16> to vector<4x4xbf16>
    %cst_51 = arith.constant dense<0.000000e+00> : vector<4x256xf32>
    %62 = tpu.matmul %61, %59, %cst_51 {dimension_numbers = #tpu.dot_dimension_numbers<[1], [0], [0], [1], [0, 0, 1, 1], [], []>} : vector<4x4xbf16>, vector<4x256xbf16>, vector<4x256xf32> -> vector<4x256xf32>
    %63 = arith.addf %54, %62 : vector<4x256xf32>
    %c0_52 = arith.constant 0 : index
    %c0_53 = arith.constant 0 : index
    %c33 = arith.constant 33 : index
    %64 = vector.load %arg1[%c0_52, %c0_53, %c33] : memref<1x4x290xbf16, #tpu.memory_space<vmem>>, vector<1x4x256xbf16>
    %65 = vector.shape_cast %64 : vector<1x4x256xbf16> to vector<4x256xbf16>
    %c7 = arith.constant 7 : index
    %c0_54 = arith.constant 0 : index
    %66 = vector.load %arg4[%c7, %c0_54] : memref<9x256xbf16, #tpu.memory_space<vmem>>, vector<1x256xbf16>
    %67 = vector.broadcast %66 : vector<1x256xbf16> to vector<4x256xbf16>
    %68 = arith.mulf %65, %67 : vector<4x256xbf16>
    %c7_55 = arith.constant 7 : index
    %c0_56 = arith.constant 0 : index
    %c0_57 = arith.constant 0 : index
    %69 = vector.load %arg2[%c7_55, %c0_56, %c0_57] : memref<9x4x4xbf16, #tpu.memory_space<vmem>>, vector<1x4x4xbf16>
    %70 = vector.shape_cast %69 : vector<1x4x4xbf16> to vector<4x4xbf16>
    %cst_58 = arith.constant dense<0.000000e+00> : vector<4x256xf32>
    %71 = tpu.matmul %70, %68, %cst_58 {dimension_numbers = #tpu.dot_dimension_numbers<[1], [0], [0], [1], [0, 0, 1, 1], [], []>} : vector<4x4xbf16>, vector<4x256xbf16>, vector<4x256xf32> -> vector<4x256xf32>
    %72 = arith.addf %63, %71 : vector<4x256xf32>
    %c0_59 = arith.constant 0 : index
    %c0_60 = arith.constant 0 : index
    %c34 = arith.constant 34 : index
    %73 = vector.load %arg1[%c0_59, %c0_60, %c34] : memref<1x4x290xbf16, #tpu.memory_space<vmem>>, vector<1x4x256xbf16>
    %74 = vector.shape_cast %73 : vector<1x4x256xbf16> to vector<4x256xbf16>
    %c8 = arith.constant 8 : index
    %c0_61 = arith.constant 0 : index
    %75 = vector.load %arg4[%c8, %c0_61] : memref<9x256xbf16, #tpu.memory_space<vmem>>, vector<1x256xbf16>
    %76 = vector.broadcast %75 : vector<1x256xbf16> to vector<4x256xbf16>
    %77 = arith.mulf %74, %76 : vector<4x256xbf16>
    %c8_62 = arith.constant 8 : index
    %c0_63 = arith.constant 0 : index
    %c0_64 = arith.constant 0 : index
    %78 = vector.load %arg2[%c8_62, %c0_63, %c0_64] : memref<9x4x4xbf16, #tpu.memory_space<vmem>>, vector<1x4x4xbf16>
    %79 = vector.shape_cast %78 : vector<1x4x4xbf16> to vector<4x4xbf16>
    %cst_65 = arith.constant dense<0.000000e+00> : vector<4x256xf32>
    %80 = tpu.matmul %79, %77, %cst_65 {dimension_numbers = #tpu.dot_dimension_numbers<[1], [0], [0], [1], [0, 0, 1, 1], [], []>} : vector<4x4xbf16>, vector<4x256xbf16>, vector<4x256xf32> -> vector<4x256xf32>
    %81 = arith.addf %72, %80 : vector<4x256xf32>
    %c0_66 = arith.constant 0 : index
    %c0_67 = arith.constant 0 : index
    %82 = vector.load %arg3[%c0_66, %c0_67] : memref<4x1xf32, #tpu.memory_space<vmem>>, vector<4x1xf32>
    %83 = vector.broadcast %82 : vector<4x1xf32> to vector<4x256xf32>
    %84 = arith.addf %81, %83 : vector<4x256xf32>
    %c0_68 = arith.constant 0 : index
    %c0_69 = arith.constant 0 : index
    %c0_70 = arith.constant 0 : index
    %85 = vector.load %arg5[%c0_68, %c0_69, %c0_70] : memref<1x4x256xf32, #tpu.memory_space<vmem>>, vector<1x4x256xf32>
    %86 = vector.shape_cast %85 : vector<1x4x256xf32> to vector<4x256xf32>
    %87 = vector.shape_cast %84 : vector<4x256xf32> to vector<1x4x256xf32>
    tpu.vector_store %arg5[%c0_68, %c0_69, %c0_70], %87 {strides = array<i32>} : memref<1x4x256xf32, #tpu.memory_space<vmem>>, vector<1x4x256xf32>,
    return
  }
  func.func @transform_0(%arg0: i32) -> (i32, i32, i32) {
    %c0_i32 = arith.constant 0 : i32
    %c0_i32_0 = arith.constant 0 : i32
    %c0_i32_1 = arith.constant 0 : i32
    return %arg0, %c0_i32, %c0_i32_0 : i32, i32, i32
  }
  func.func @transform_1(%arg0: i32) -> (i32, i32, i32) {
    %c0_i32 = arith.constant 0 : i32
    %c0_i32_0 = arith.constant 0 : i32
    %c0_i32_1 = arith.constant 0 : i32
    %c0_i32_2 = arith.constant 0 : i32
    return %c0_i32, %c0_i32_0, %c0_i32_1 : i32, i32, i32
  }
  func.func @transform_2(%arg0: i32) -> (i32, i32) {
    %c0_i32 = arith.constant 0 : i32
    %c0_i32_0 = arith.constant 0 : i32
    %c0_i32_1 = arith.constant 0 : i32
    return %c0_i32, %c0_i32_0 : i32, i32
  }
  func.func @transform_3(%arg0: i32) -> (i32, i32) {
    %c0_i32 = arith.constant 0 : i32
    %c0_i32_0 = arith.constant 0 : i32
    %c0_i32_1 = arith.constant 0 : i32
    return %c0_i32, %c0_i32_0 : i32, i32
  }
  func.func @transform_4(%arg0: i32) -> (i32, i32, i32) {
    %c0_i32 = arith.constant 0 : i32
    %c0_i32_0 = arith.constant 0 : i32
    %c0_i32_1 = arith.constant 0 : i32
    return %arg0, %c0_i32, %c0_i32_0 : i32, i32, i32
  }
}

module attributes {stable_mosaic.version = 11 : i64} {
  func.func @_conv3x3_kernel(%arg0: i32, %arg1: memref<1x128x290xbf16, #tpu.memory_space<vmem>>, %arg2: memref<9x4x128xbf16, #tpu.memory_space<vmem>>, %arg3: memref<4x1xf32, #tpu.memory_space<vmem>>, %arg4: memref<9x256xbf16, #tpu.memory_space<vmem>>, %arg5: memref<1x4x256xf32, #tpu.memory_space<vmem>>) attributes {dimension_semantics = [#tpu.dimension_semantics<parallel>], iteration_bounds = array<i64: 2>, scalar_prefetch = 0 : i64, scratch_operands = 0 : i64, tpu.core_type = #tpu.core_type<tc>, window_params = [{transform_indices = @transform_0, window_bounds = array<i64: 1, 128, 290>}, {pipeline_mode = #tpu.pipeline_mode<synchronous>, transform_indices = @transform_1, window_bounds = array<i64: 9, 4, 128>}, {pipeline_mode = #tpu.pipeline_mode<synchronous>, transform_indices = @transform_2, window_bounds = array<i64: 4, 1>}, {pipeline_mode = #tpu.pipeline_mode<synchronous>, transform_indices = @transform_3, window_bounds = array<i64: 9, 256>}, {transform_indices = @transform_4, window_bounds = array<i64: 1, 4, 256>}]} {
    %cst = arith.constant 0.000000e+00 : f32
    %0 = vector.broadcast %cst : f32 to vector<4x256xf32>
    %c0 = arith.constant 0 : index
    %c0_0 = arith.constant 0 : index
    %c0_1 = arith.constant 0 : index
    %1 = vector.load %arg1[%c0, %c0_0, %c0_1] : memref<1x128x290xbf16, #tpu.memory_space<vmem>>, vector<1x128x256xbf16>
    %2 = vector.shape_cast %1 : vector<1x128x256xbf16> to vector<128x256xbf16>
    %c0_2 = arith.constant 0 : index
    %c0_3 = arith.constant 0 : index
    %3 = vector.load %arg4[%c0_2, %c0_3] : memref<9x256xbf16, #tpu.memory_space<vmem>>, vector<1x256xbf16>
    %4 = vector.broadcast %3 : vector<1x256xbf16> to vector<128x256xbf16>
    %5 = arith.mulf %2, %4 : vector<128x256xbf16>
    %c0_4 = arith.constant 0 : index
    %c0_5 = arith.constant 0 : index
    %c0_6 = arith.constant 0 : index
    %6 = vector.load %arg2[%c0_4, %c0_5, %c0_6] : memref<9x4x128xbf16, #tpu.memory_space<vmem>>, vector<1x4x128xbf16>
    %7 = vector.shape_cast %6 : vector<1x4x128xbf16> to vector<4x128xbf16>
    %cst_7 = arith.constant dense<0.000000e+00> : vector<4x256xf32>
    %8 = tpu.matmul %7, %5, %cst_7 {dimension_numbers = #tpu.dot_dimension_numbers<[1], [0], [0], [1], [0, 0, 1, 1], [], []>} : vector<4x128xbf16>, vector<128x256xbf16>, vector<4x256xf32> -> vector<4x256xf32>
    %9 = arith.addf %0, %8 : vector<4x256xf32>
    %c0_8 = arith.constant 0 : index
    %c0_9 = arith.constant 0 : index
    %c1 = arith.constant 1 : index
    %10 = vector.load %arg1[%c0_8, %c0_9, %c1] : memref<1x128x290xbf16, #tpu.memory_space<vmem>>, vector<1x128x256xbf16>
    %11 = vector.shape_cast %10 : vector<1x128x256xbf16> to vector<128x256xbf16>
    %c1_10 = arith.constant 1 : index
    %c0_11 = arith.constant 0 : index
    %12 = vector.load %arg4[%c1_10, %c0_11] : memref<9x256xbf16, #tpu.memory_space<vmem>>, vector<1x256xbf16>
    %13 = vector.broadcast %12 : vector<1x256xbf16> to vector<128x256xbf16>
    %14 = arith.mulf %11, %13 : vector<128x256xbf16>
    %c1_12 = arith.constant 1 : index
    %c0_13 = arith.constant 0 : index
    %c0_14 = arith.constant 0 : index
    %15 = vector.load %arg2[%c1_12, %c0_13, %c0_14] : memref<9x4x128xbf16, #tpu.memory_space<vmem>>, vector<1x4x128xbf16>
    %16 = vector.shape_cast %15 : vector<1x4x128xbf16> to vector<4x128xbf16>
    %cst_15 = arith.constant dense<0.000000e+00> : vector<4x256xf32>
    %17 = tpu.matmul %16, %14, %cst_15 {dimension_numbers = #tpu.dot_dimension_numbers<[1], [0], [0], [1], [0, 0, 1, 1], [], []>} : vector<4x128xbf16>, vector<128x256xbf16>, vector<4x256xf32> -> vector<4x256xf32>
    %18 = arith.addf %9, %17 : vector<4x256xf32>
    %c0_16 = arith.constant 0 : index
    %c0_17 = arith.constant 0 : index
    %c2 = arith.constant 2 : index
    %19 = vector.load %arg1[%c0_16, %c0_17, %c2] : memref<1x128x290xbf16, #tpu.memory_space<vmem>>, vector<1x128x256xbf16>
    %20 = vector.shape_cast %19 : vector<1x128x256xbf16> to vector<128x256xbf16>
    %c2_18 = arith.constant 2 : index
    %c0_19 = arith.constant 0 : index
    %21 = vector.load %arg4[%c2_18, %c0_19] : memref<9x256xbf16, #tpu.memory_space<vmem>>, vector<1x256xbf16>
    %22 = vector.broadcast %21 : vector<1x256xbf16> to vector<128x256xbf16>
    %23 = arith.mulf %20, %22 : vector<128x256xbf16>
    %c2_20 = arith.constant 2 : index
    %c0_21 = arith.constant 0 : index
    %c0_22 = arith.constant 0 : index
    %24 = vector.load %arg2[%c2_20, %c0_21, %c0_22] : memref<9x4x128xbf16, #tpu.memory_space<vmem>>, vector<1x4x128xbf16>
    %25 = vector.shape_cast %24 : vector<1x4x128xbf16> to vector<4x128xbf16>
    %cst_23 = arith.constant dense<0.000000e+00> : vector<4x256xf32>
    %26 = tpu.matmul %25, %23, %cst_23 {dimension_numbers = #tpu.dot_dimension_numbers<[1], [0], [0], [1], [0, 0, 1, 1], [], []>} : vector<4x128xbf16>, vector<128x256xbf16>, vector<4x256xf32> -> vector<4x256xf32>
    %27 = arith.addf %18, %26 : vector<4x256xf32>
    %c0_24 = arith.constant 0 : index
    %c0_25 = arith.constant 0 : index
    %c16 = arith.constant 16 : index
    %28 = vector.load %arg1[%c0_24, %c0_25, %c16] : memref<1x128x290xbf16, #tpu.memory_space<vmem>>, vector<1x128x256xbf16>
    %29 = vector.shape_cast %28 : vector<1x128x256xbf16> to vector<128x256xbf16>
    %c3 = arith.constant 3 : index
    %c0_26 = arith.constant 0 : index
    %30 = vector.load %arg4[%c3, %c0_26] : memref<9x256xbf16, #tpu.memory_space<vmem>>, vector<1x256xbf16>
    %31 = vector.broadcast %30 : vector<1x256xbf16> to vector<128x256xbf16>
    %32 = arith.mulf %29, %31 : vector<128x256xbf16>
    %c3_27 = arith.constant 3 : index
    %c0_28 = arith.constant 0 : index
    %c0_29 = arith.constant 0 : index
    %33 = vector.load %arg2[%c3_27, %c0_28, %c0_29] : memref<9x4x128xbf16, #tpu.memory_space<vmem>>, vector<1x4x128xbf16>
    %34 = vector.shape_cast %33 : vector<1x4x128xbf16> to vector<4x128xbf16>
    %cst_30 = arith.constant dense<0.000000e+00> : vector<4x256xf32>
    %35 = tpu.matmul %34, %32, %cst_30 {dimension_numbers = #tpu.dot_dimension_numbers<[1], [0], [0], [1], [0, 0, 1, 1], [], []>} : vector<4x128xbf16>, vector<128x256xbf16>, vector<4x256xf32> -> vector<4x256xf32>
    %36 = arith.addf %27, %35 : vector<4x256xf32>
    %c0_31 = arith.constant 0 : index
    %c0_32 = arith.constant 0 : index
    %c17 = arith.constant 17 : index
    %37 = vector.load %arg1[%c0_31, %c0_32, %c17] : memref<1x128x290xbf16, #tpu.memory_space<vmem>>, vector<1x128x256xbf16>
    %38 = vector.shape_cast %37 : vector<1x128x256xbf16> to vector<128x256xbf16>
    %c4 = arith.constant 4 : index
    %c0_33 = arith.constant 0 : index
    %39 = vector.load %arg4[%c4, %c0_33] : memref<9x256xbf16, #tpu.memory_space<vmem>>, vector<1x256xbf16>
    %40 = vector.broadcast %39 : vector<1x256xbf16> to vector<128x256xbf16>
    %41 = arith.mulf %38, %40 : vector<128x256xbf16>
    %c4_34 = arith.constant 4 : index
    %c0_35 = arith.constant 0 : index
    %c0_36 = arith.constant 0 : index
    %42 = vector.load %arg2[%c4_34, %c0_35, %c0_36] : memref<9x4x128xbf16, #tpu.memory_space<vmem>>, vector<1x4x128xbf16>
    %43 = vector.shape_cast %42 : vector<1x4x128xbf16> to vector<4x128xbf16>
    %cst_37 = arith.constant dense<0.000000e+00> : vector<4x256xf32>
    %44 = tpu.matmul %43, %41, %cst_37 {dimension_numbers = #tpu.dot_dimension_numbers<[1], [0], [0], [1], [0, 0, 1, 1], [], []>} : vector<4x128xbf16>, vector<128x256xbf16>, vector<4x256xf32> -> vector<4x256xf32>
    %45 = arith.addf %36, %44 : vector<4x256xf32>
    %c0_38 = arith.constant 0 : index
    %c0_39 = arith.constant 0 : index
    %c18 = arith.constant 18 : index
    %46 = vector.load %arg1[%c0_38, %c0_39, %c18] : memref<1x128x290xbf16, #tpu.memory_space<vmem>>, vector<1x128x256xbf16>
    %47 = vector.shape_cast %46 : vector<1x128x256xbf16> to vector<128x256xbf16>
    %c5 = arith.constant 5 : index
    %c0_40 = arith.constant 0 : index
    %48 = vector.load %arg4[%c5, %c0_40] : memref<9x256xbf16, #tpu.memory_space<vmem>>, vector<1x256xbf16>
    %49 = vector.broadcast %48 : vector<1x256xbf16> to vector<128x256xbf16>
    %50 = arith.mulf %47, %49 : vector<128x256xbf16>
    %c5_41 = arith.constant 5 : index
    %c0_42 = arith.constant 0 : index
    %c0_43 = arith.constant 0 : index
    %51 = vector.load %arg2[%c5_41, %c0_42, %c0_43] : memref<9x4x128xbf16, #tpu.memory_space<vmem>>, vector<1x4x128xbf16>
    %52 = vector.shape_cast %51 : vector<1x4x128xbf16> to vector<4x128xbf16>
    %cst_44 = arith.constant dense<0.000000e+00> : vector<4x256xf32>
    %53 = tpu.matmul %52, %50, %cst_44 {dimension_numbers = #tpu.dot_dimension_numbers<[1], [0], [0], [1], [0, 0, 1, 1], [], []>} : vector<4x128xbf16>, vector<128x256xbf16>, vector<4x256xf32> -> vector<4x256xf32>
    %54 = arith.addf %45, %53 : vector<4x256xf32>
    %c0_45 = arith.constant 0 : index
    %c0_46 = arith.constant 0 : index
    %c32 = arith.constant 32 : index
    %55 = vector.load %arg1[%c0_45, %c0_46, %c32] : memref<1x128x290xbf16, #tpu.memory_space<vmem>>, vector<1x128x256xbf16>
    %56 = vector.shape_cast %55 : vector<1x128x256xbf16> to vector<128x256xbf16>
    %c6 = arith.constant 6 : index
    %c0_47 = arith.constant 0 : index
    %57 = vector.load %arg4[%c6, %c0_47] : memref<9x256xbf16, #tpu.memory_space<vmem>>, vector<1x256xbf16>
    %58 = vector.broadcast %57 : vector<1x256xbf16> to vector<128x256xbf16>
    %59 = arith.mulf %56, %58 : vector<128x256xbf16>
    %c6_48 = arith.constant 6 : index
    %c0_49 = arith.constant 0 : index
    %c0_50 = arith.constant 0 : index
    %60 = vector.load %arg2[%c6_48, %c0_49, %c0_50] : memref<9x4x128xbf16, #tpu.memory_space<vmem>>, vector<1x4x128xbf16>
    %61 = vector.shape_cast %60 : vector<1x4x128xbf16> to vector<4x128xbf16>
    %cst_51 = arith.constant dense<0.000000e+00> : vector<4x256xf32>
    %62 = tpu.matmul %61, %59, %cst_51 {dimension_numbers = #tpu.dot_dimension_numbers<[1], [0], [0], [1], [0, 0, 1, 1], [], []>} : vector<4x128xbf16>, vector<128x256xbf16>, vector<4x256xf32> -> vector<4x256xf32>
    %63 = arith.addf %54, %62 : vector<4x256xf32>
    %c0_52 = arith.constant 0 : index
    %c0_53 = arith.constant 0 : index
    %c33 = arith.constant 33 : index
    %64 = vector.load %arg1[%c0_52, %c0_53, %c33] : memref<1x128x290xbf16, #tpu.memory_space<vmem>>, vector<1x128x256xbf16>
    %65 = vector.shape_cast %64 : vector<1x128x256xbf16> to vector<128x256xbf16>
    %c7 = arith.constant 7 : index
    %c0_54 = arith.constant 0 : index
    %66 = vector.load %arg4[%c7, %c0_54] : memref<9x256xbf16, #tpu.memory_space<vmem>>, vector<1x256xbf16>
    %67 = vector.broadcast %66 : vector<1x256xbf16> to vector<128x256xbf16>
    %68 = arith.mulf %65, %67 : vector<128x256xbf16>
    %c7_55 = arith.constant 7 : index
    %c0_56 = arith.constant 0 : index
    %c0_57 = arith.constant 0 : index
    %69 = vector.load %arg2[%c7_55, %c0_56, %c0_57] : memref<9x4x128xbf16, #tpu.memory_space<vmem>>, vector<1x4x128xbf16>
    %70 = vector.shape_cast %69 : vector<1x4x128xbf16> to vector<4x128xbf16>
    %cst_58 = arith.constant dense<0.000000e+00> : vector<4x256xf32>
    %71 = tpu.matmul %70, %68, %cst_58 {dimension_numbers = #tpu.dot_dimension_numbers<[1], [0], [0], [1], [0, 0, 1, 1], [], []>} : vector<4x128xbf16>, vector<128x256xbf16>, vector<4x256xf32> -> vector<4x256xf32>
    %72 = arith.addf %63, %71 : vector<4x256xf32>
    %c0_59 = arith.constant 0 : index
    %c0_60 = arith.constant 0 : index
    %c34 = arith.constant 34 : index
    %73 = vector.load %arg1[%c0_59, %c0_60, %c34] : memref<1x128x290xbf16, #tpu.memory_space<vmem>>, vector<1x128x256xbf16>
    %74 = vector.shape_cast %73 : vector<1x128x256xbf16> to vector<128x256xbf16>
    %c8 = arith.constant 8 : index
    %c0_61 = arith.constant 0 : index
    %75 = vector.load %arg4[%c8, %c0_61] : memref<9x256xbf16, #tpu.memory_space<vmem>>, vector<1x256xbf16>
    %76 = vector.broadcast %75 : vector<1x256xbf16> to vector<128x256xbf16>
    %77 = arith.mulf %74, %76 : vector<128x256xbf16>
    %c8_62 = arith.constant 8 : index
    %c0_63 = arith.constant 0 : index
    %c0_64 = arith.constant 0 : index
    %78 = vector.load %arg2[%c8_62, %c0_63, %c0_64] : memref<9x4x128xbf16, #tpu.memory_space<vmem>>, vector<1x4x128xbf16>
    %79 = vector.shape_cast %78 : vector<1x4x128xbf16> to vector<4x128xbf16>
    %cst_65 = arith.constant dense<0.000000e+00> : vector<4x256xf32>
    %80 = tpu.matmul %79, %77, %cst_65 {dimension_numbers = #tpu.dot_dimension_numbers<[1], [0], [0], [1], [0, 0, 1, 1], [], []>} : vector<4x128xbf16>, vector<128x256xbf16>, vector<4x256xf32> -> vector<4x256xf32>
    %81 = arith.addf %72, %80 : vector<4x256xf32>
    %c0_66 = arith.constant 0 : index
    %c0_67 = arith.constant 0 : index
    %82 = vector.load %arg3[%c0_66, %c0_67] : memref<4x1xf32, #tpu.memory_space<vmem>>, vector<4x1xf32>
    %83 = vector.broadcast %82 : vector<4x1xf32> to vector<4x256xf32>
    %84 = arith.addf %81, %83 : vector<4x256xf32>
    %c0_68 = arith.constant 0 : index
    %c0_69 = arith.constant 0 : index
    %c0_70 = arith.constant 0 : index
    %85 = vector.load %arg5[%c0_68, %c0_69, %c0_70] : memref<1x4x256xf32, #tpu.memory_space<vmem>>, vector<1x4x256xf32>
    %86 = vector.shape_cast %85 : vector<1x4x256xf32> to vector<4x256xf32>
    %87 = vector.shape_cast %84 : vector<4x256xf32> to vector<1x4x256xf32>
    tpu.vector_store %arg5[%c0_68, %c0_69, %c0_70], %87 {strides = array<i32>} : memref<1x4x256xf32, #tpu.memory_space<vmem>>, vector<1x4x256xf32>,
    return
  }
  func.func @transform_0(%arg0: i32) -> (i32, i32, i32) {
    %c0_i32 = arith.constant 0 : i32
    %c0_i32_0 = arith.constant 0 : i32
    %c0_i32_1 = arith.constant 0 : i32
    return %arg0, %c0_i32, %c0_i32_0 : i32, i32, i32
  }
  func.func @transform_1(%arg0: i32) -> (i32, i32, i32) {
    %c0_i32 = arith.constant 0 : i32
    %c0_i32_0 = arith.constant 0 : i32
    %c0_i32_1 = arith.constant 0 : i32
    %c0_i32_2 = arith.constant 0 : i32
    return %c0_i32, %c0_i32_0, %c0_i32_1 : i32, i32, i32
  }
  func.func @transform_2(%arg0: i32) -> (i32, i32) {
    %c0_i32 = arith.constant 0 : i32
    %c0_i32_0 = arith.constant 0 : i32
    %c0_i32_1 = arith.constant 0 : i32
    return %c0_i32, %c0_i32_0 : i32, i32
  }
  func.func @transform_3(%arg0: i32) -> (i32, i32) {
    %c0_i32 = arith.constant 0 : i32
    %c0_i32_0 = arith.constant 0 : i32
    %c0_i32_1 = arith.constant 0 : i32
    return %c0_i32, %c0_i32_0 : i32, i32
  }
  func.func @transform_4(%arg0: i32) -> (i32, i32, i32) {
    %c0_i32 = arith.constant 0 : i32
    %c0_i32_0 = arith.constant 0 : i32
    %c0_i32_1 = arith.constant 0 : i32
    return %arg0, %c0_i32, %c0_i32_0 : i32, i32, i32
  }
}

module attributes {stable_mosaic.version = 11 : i64} {
  func.func @_conv3x3_kernel(%arg0: i32, %arg1: memref<1x4x290xbf16, #tpu.memory_space<vmem>>, %arg2: memref<9x4x4xbf16, #tpu.memory_space<vmem>>, %arg3: memref<4x1xf32, #tpu.memory_space<vmem>>, %arg4: memref<9x256xbf16, #tpu.memory_space<vmem>>, %arg5: memref<1x4x256xf32, #tpu.memory_space<vmem>>, %arg6: memref<1x4x256xf32, #tpu.memory_space<vmem>>) attributes {dimension_semantics = [#tpu.dimension_semantics<parallel>], iteration_bounds = array<i64: 2>, scalar_prefetch = 0 : i64, scratch_operands = 0 : i64, tpu.core_type = #tpu.core_type<tc>, window_params = [{transform_indices = @transform_0, window_bounds = array<i64: 1, 4, 290>}, {pipeline_mode = #tpu.pipeline_mode<synchronous>, transform_indices = @transform_1, window_bounds = array<i64: 9, 4, 4>}, {pipeline_mode = #tpu.pipeline_mode<synchronous>, transform_indices = @transform_2, window_bounds = array<i64: 4, 1>}, {pipeline_mode = #tpu.pipeline_mode<synchronous>, transform_indices = @transform_3, window_bounds = array<i64: 9, 256>}, {transform_indices = @transform_4, window_bounds = array<i64: 1, 4, 256>}, {transform_indices = @transform_5, window_bounds = array<i64: 1, 4, 256>}]} {
    %cst = arith.constant 0.000000e+00 : f32
    %0 = vector.broadcast %cst : f32 to vector<4x256xf32>
    %c0 = arith.constant 0 : index
    %c0_0 = arith.constant 0 : index
    %c0_1 = arith.constant 0 : index
    %1 = vector.load %arg1[%c0, %c0_0, %c0_1] : memref<1x4x290xbf16, #tpu.memory_space<vmem>>, vector<1x4x256xbf16>
    %2 = vector.shape_cast %1 : vector<1x4x256xbf16> to vector<4x256xbf16>
    %c0_2 = arith.constant 0 : index
    %c0_3 = arith.constant 0 : index
    %3 = vector.load %arg4[%c0_2, %c0_3] : memref<9x256xbf16, #tpu.memory_space<vmem>>, vector<1x256xbf16>
    %4 = vector.broadcast %3 : vector<1x256xbf16> to vector<4x256xbf16>
    %5 = arith.mulf %2, %4 : vector<4x256xbf16>
    %c0_4 = arith.constant 0 : index
    %c0_5 = arith.constant 0 : index
    %c0_6 = arith.constant 0 : index
    %6 = vector.load %arg2[%c0_4, %c0_5, %c0_6] : memref<9x4x4xbf16, #tpu.memory_space<vmem>>, vector<1x4x4xbf16>
    %7 = vector.shape_cast %6 : vector<1x4x4xbf16> to vector<4x4xbf16>
    %cst_7 = arith.constant dense<0.000000e+00> : vector<4x256xf32>
    %8 = tpu.matmul %7, %5, %cst_7 {dimension_numbers = #tpu.dot_dimension_numbers<[1], [0], [0], [1], [0, 0, 1, 1], [], []>} : vector<4x4xbf16>, vector<4x256xbf16>, vector<4x256xf32> -> vector<4x256xf32>
    %9 = arith.addf %0, %8 : vector<4x256xf32>
    %c0_8 = arith.constant 0 : index
    %c0_9 = arith.constant 0 : index
    %c1 = arith.constant 1 : index
    %10 = vector.load %arg1[%c0_8, %c0_9, %c1] : memref<1x4x290xbf16, #tpu.memory_space<vmem>>, vector<1x4x256xbf16>
    %11 = vector.shape_cast %10 : vector<1x4x256xbf16> to vector<4x256xbf16>
    %c1_10 = arith.constant 1 : index
    %c0_11 = arith.constant 0 : index
    %12 = vector.load %arg4[%c1_10, %c0_11] : memref<9x256xbf16, #tpu.memory_space<vmem>>, vector<1x256xbf16>
    %13 = vector.broadcast %12 : vector<1x256xbf16> to vector<4x256xbf16>
    %14 = arith.mulf %11, %13 : vector<4x256xbf16>
    %c1_12 = arith.constant 1 : index
    %c0_13 = arith.constant 0 : index
    %c0_14 = arith.constant 0 : index
    %15 = vector.load %arg2[%c1_12, %c0_13, %c0_14] : memref<9x4x4xbf16, #tpu.memory_space<vmem>>, vector<1x4x4xbf16>
    %16 = vector.shape_cast %15 : vector<1x4x4xbf16> to vector<4x4xbf16>
    %cst_15 = arith.constant dense<0.000000e+00> : vector<4x256xf32>
    %17 = tpu.matmul %16, %14, %cst_15 {dimension_numbers = #tpu.dot_dimension_numbers<[1], [0], [0], [1], [0, 0, 1, 1], [], []>} : vector<4x4xbf16>, vector<4x256xbf16>, vector<4x256xf32> -> vector<4x256xf32>
    %18 = arith.addf %9, %17 : vector<4x256xf32>
    %c0_16 = arith.constant 0 : index
    %c0_17 = arith.constant 0 : index
    %c2 = arith.constant 2 : index
    %19 = vector.load %arg1[%c0_16, %c0_17, %c2] : memref<1x4x290xbf16, #tpu.memory_space<vmem>>, vector<1x4x256xbf16>
    %20 = vector.shape_cast %19 : vector<1x4x256xbf16> to vector<4x256xbf16>
    %c2_18 = arith.constant 2 : index
    %c0_19 = arith.constant 0 : index
    %21 = vector.load %arg4[%c2_18, %c0_19] : memref<9x256xbf16, #tpu.memory_space<vmem>>, vector<1x256xbf16>
    %22 = vector.broadcast %21 : vector<1x256xbf16> to vector<4x256xbf16>
    %23 = arith.mulf %20, %22 : vector<4x256xbf16>
    %c2_20 = arith.constant 2 : index
    %c0_21 = arith.constant 0 : index
    %c0_22 = arith.constant 0 : index
    %24 = vector.load %arg2[%c2_20, %c0_21, %c0_22] : memref<9x4x4xbf16, #tpu.memory_space<vmem>>, vector<1x4x4xbf16>
    %25 = vector.shape_cast %24 : vector<1x4x4xbf16> to vector<4x4xbf16>
    %cst_23 = arith.constant dense<0.000000e+00> : vector<4x256xf32>
    %26 = tpu.matmul %25, %23, %cst_23 {dimension_numbers = #tpu.dot_dimension_numbers<[1], [0], [0], [1], [0, 0, 1, 1], [], []>} : vector<4x4xbf16>, vector<4x256xbf16>, vector<4x256xf32> -> vector<4x256xf32>
    %27 = arith.addf %18, %26 : vector<4x256xf32>
    %c0_24 = arith.constant 0 : index
    %c0_25 = arith.constant 0 : index
    %c16 = arith.constant 16 : index
    %28 = vector.load %arg1[%c0_24, %c0_25, %c16] : memref<1x4x290xbf16, #tpu.memory_space<vmem>>, vector<1x4x256xbf16>
    %29 = vector.shape_cast %28 : vector<1x4x256xbf16> to vector<4x256xbf16>
    %c3 = arith.constant 3 : index
    %c0_26 = arith.constant 0 : index
    %30 = vector.load %arg4[%c3, %c0_26] : memref<9x256xbf16, #tpu.memory_space<vmem>>, vector<1x256xbf16>
    %31 = vector.broadcast %30 : vector<1x256xbf16> to vector<4x256xbf16>
    %32 = arith.mulf %29, %31 : vector<4x256xbf16>
    %c3_27 = arith.constant 3 : index
    %c0_28 = arith.constant 0 : index
    %c0_29 = arith.constant 0 : index
    %33 = vector.load %arg2[%c3_27, %c0_28, %c0_29] : memref<9x4x4xbf16, #tpu.memory_space<vmem>>, vector<1x4x4xbf16>
    %34 = vector.shape_cast %33 : vector<1x4x4xbf16> to vector<4x4xbf16>
    %cst_30 = arith.constant dense<0.000000e+00> : vector<4x256xf32>
    %35 = tpu.matmul %34, %32, %cst_30 {dimension_numbers = #tpu.dot_dimension_numbers<[1], [0], [0], [1], [0, 0, 1, 1], [], []>} : vector<4x4xbf16>, vector<4x256xbf16>, vector<4x256xf32> -> vector<4x256xf32>
    %36 = arith.addf %27, %35 : vector<4x256xf32>
    %c0_31 = arith.constant 0 : index
    %c0_32 = arith.constant 0 : index
    %c17 = arith.constant 17 : index
    %37 = vector.load %arg1[%c0_31, %c0_32, %c17] : memref<1x4x290xbf16, #tpu.memory_space<vmem>>, vector<1x4x256xbf16>
    %38 = vector.shape_cast %37 : vector<1x4x256xbf16> to vector<4x256xbf16>
    %c4 = arith.constant 4 : index
    %c0_33 = arith.constant 0 : index
    %39 = vector.load %arg4[%c4, %c0_33] : memref<9x256xbf16, #tpu.memory_space<vmem>>, vector<1x256xbf16>
    %40 = vector.broadcast %39 : vector<1x256xbf16> to vector<4x256xbf16>
    %41 = arith.mulf %38, %40 : vector<4x256xbf16>
    %c4_34 = arith.constant 4 : index
    %c0_35 = arith.constant 0 : index
    %c0_36 = arith.constant 0 : index
    %42 = vector.load %arg2[%c4_34, %c0_35, %c0_36] : memref<9x4x4xbf16, #tpu.memory_space<vmem>>, vector<1x4x4xbf16>
    %43 = vector.shape_cast %42 : vector<1x4x4xbf16> to vector<4x4xbf16>
    %cst_37 = arith.constant dense<0.000000e+00> : vector<4x256xf32>
    %44 = tpu.matmul %43, %41, %cst_37 {dimension_numbers = #tpu.dot_dimension_numbers<[1], [0], [0], [1], [0, 0, 1, 1], [], []>} : vector<4x4xbf16>, vector<4x256xbf16>, vector<4x256xf32> -> vector<4x256xf32>
    %45 = arith.addf %36, %44 : vector<4x256xf32>
    %c0_38 = arith.constant 0 : index
    %c0_39 = arith.constant 0 : index
    %c18 = arith.constant 18 : index
    %46 = vector.load %arg1[%c0_38, %c0_39, %c18] : memref<1x4x290xbf16, #tpu.memory_space<vmem>>, vector<1x4x256xbf16>
    %47 = vector.shape_cast %46 : vector<1x4x256xbf16> to vector<4x256xbf16>
    %c5 = arith.constant 5 : index
    %c0_40 = arith.constant 0 : index
    %48 = vector.load %arg4[%c5, %c0_40] : memref<9x256xbf16, #tpu.memory_space<vmem>>, vector<1x256xbf16>
    %49 = vector.broadcast %48 : vector<1x256xbf16> to vector<4x256xbf16>
    %50 = arith.mulf %47, %49 : vector<4x256xbf16>
    %c5_41 = arith.constant 5 : index
    %c0_42 = arith.constant 0 : index
    %c0_43 = arith.constant 0 : index
    %51 = vector.load %arg2[%c5_41, %c0_42, %c0_43] : memref<9x4x4xbf16, #tpu.memory_space<vmem>>, vector<1x4x4xbf16>
    %52 = vector.shape_cast %51 : vector<1x4x4xbf16> to vector<4x4xbf16>
    %cst_44 = arith.constant dense<0.000000e+00> : vector<4x256xf32>
    %53 = tpu.matmul %52, %50, %cst_44 {dimension_numbers = #tpu.dot_dimension_numbers<[1], [0], [0], [1], [0, 0, 1, 1], [], []>} : vector<4x4xbf16>, vector<4x256xbf16>, vector<4x256xf32> -> vector<4x256xf32>
    %54 = arith.addf %45, %53 : vector<4x256xf32>
    %c0_45 = arith.constant 0 : index
    %c0_46 = arith.constant 0 : index
    %c32 = arith.constant 32 : index
    %55 = vector.load %arg1[%c0_45, %c0_46, %c32] : memref<1x4x290xbf16, #tpu.memory_space<vmem>>, vector<1x4x256xbf16>
    %56 = vector.shape_cast %55 : vector<1x4x256xbf16> to vector<4x256xbf16>
    %c6 = arith.constant 6 : index
    %c0_47 = arith.constant 0 : index
    %57 = vector.load %arg4[%c6, %c0_47] : memref<9x256xbf16, #tpu.memory_space<vmem>>, vector<1x256xbf16>
    %58 = vector.broadcast %57 : vector<1x256xbf16> to vector<4x256xbf16>
    %59 = arith.mulf %56, %58 : vector<4x256xbf16>
    %c6_48 = arith.constant 6 : index
    %c0_49 = arith.constant 0 : index
    %c0_50 = arith.constant 0 : index
    %60 = vector.load %arg2[%c6_48, %c0_49, %c0_50] : memref<9x4x4xbf16, #tpu.memory_space<vmem>>, vector<1x4x4xbf16>
    %61 = vector.shape_cast %60 : vector<1x4x4xbf16> to vector<4x4xbf16>
    %cst_51 = arith.constant dense<0.000000e+00> : vector<4x256xf32>
    %62 = tpu.matmul %61, %59, %cst_51 {dimension_numbers = #tpu.dot_dimension_numbers<[1], [0], [0], [1], [0, 0, 1, 1], [], []>} : vector<4x4xbf16>, vector<4x256xbf16>, vector<4x256xf32> -> vector<4x256xf32>
    %63 = arith.addf %54, %62 : vector<4x256xf32>
    %c0_52 = arith.constant 0 : index
    %c0_53 = arith.constant 0 : index
    %c33 = arith.constant 33 : index
    %64 = vector.load %arg1[%c0_52, %c0_53, %c33] : memref<1x4x290xbf16, #tpu.memory_space<vmem>>, vector<1x4x256xbf16>
    %65 = vector.shape_cast %64 : vector<1x4x256xbf16> to vector<4x256xbf16>
    %c7 = arith.constant 7 : index
    %c0_54 = arith.constant 0 : index
    %66 = vector.load %arg4[%c7, %c0_54] : memref<9x256xbf16, #tpu.memory_space<vmem>>, vector<1x256xbf16>
    %67 = vector.broadcast %66 : vector<1x256xbf16> to vector<4x256xbf16>
    %68 = arith.mulf %65, %67 : vector<4x256xbf16>
    %c7_55 = arith.constant 7 : index
    %c0_56 = arith.constant 0 : index
    %c0_57 = arith.constant 0 : index
    %69 = vector.load %arg2[%c7_55, %c0_56, %c0_57] : memref<9x4x4xbf16, #tpu.memory_space<vmem>>, vector<1x4x4xbf16>
    %70 = vector.shape_cast %69 : vector<1x4x4xbf16> to vector<4x4xbf16>
    %cst_58 = arith.constant dense<0.000000e+00> : vector<4x256xf32>
    %71 = tpu.matmul %70, %68, %cst_58 {dimension_numbers = #tpu.dot_dimension_numbers<[1], [0], [0], [1], [0, 0, 1, 1], [], []>} : vector<4x4xbf16>, vector<4x256xbf16>, vector<4x256xf32> -> vector<4x256xf32>
    %72 = arith.addf %63, %71 : vector<4x256xf32>
    %c0_59 = arith.constant 0 : index
    %c0_60 = arith.constant 0 : index
    %c34 = arith.constant 34 : index
    %73 = vector.load %arg1[%c0_59, %c0_60, %c34] : memref<1x4x290xbf16, #tpu.memory_space<vmem>>, vector<1x4x256xbf16>
    %74 = vector.shape_cast %73 : vector<1x4x256xbf16> to vector<4x256xbf16>
    %c8 = arith.constant 8 : index
    %c0_61 = arith.constant 0 : index
    %75 = vector.load %arg4[%c8, %c0_61] : memref<9x256xbf16, #tpu.memory_space<vmem>>, vector<1x256xbf16>
    %76 = vector.broadcast %75 : vector<1x256xbf16> to vector<4x256xbf16>
    %77 = arith.mulf %74, %76 : vector<4x256xbf16>
    %c8_62 = arith.constant 8 : index
    %c0_63 = arith.constant 0 : index
    %c0_64 = arith.constant 0 : index
    %78 = vector.load %arg2[%c8_62, %c0_63, %c0_64] : memref<9x4x4xbf16, #tpu.memory_space<vmem>>, vector<1x4x4xbf16>
    %79 = vector.shape_cast %78 : vector<1x4x4xbf16> to vector<4x4xbf16>
    %cst_65 = arith.constant dense<0.000000e+00> : vector<4x256xf32>
    %80 = tpu.matmul %79, %77, %cst_65 {dimension_numbers = #tpu.dot_dimension_numbers<[1], [0], [0], [1], [0, 0, 1, 1], [], []>} : vector<4x4xbf16>, vector<4x256xbf16>, vector<4x256xf32> -> vector<4x256xf32>
    %81 = arith.addf %72, %80 : vector<4x256xf32>
    %c0_66 = arith.constant 0 : index
    %c0_67 = arith.constant 0 : index
    %82 = vector.load %arg3[%c0_66, %c0_67] : memref<4x1xf32, #tpu.memory_space<vmem>>, vector<4x1xf32>
    %83 = vector.broadcast %82 : vector<4x1xf32> to vector<4x256xf32>
    %84 = arith.addf %81, %83 : vector<4x256xf32>
    %c0_68 = arith.constant 0 : index
    %c0_69 = arith.constant 0 : index
    %c0_70 = arith.constant 0 : index
    %85 = vector.load %arg5[%c0_68, %c0_69, %c0_70] : memref<1x4x256xf32, #tpu.memory_space<vmem>>, vector<1x4x256xf32>
    %86 = vector.shape_cast %85 : vector<1x4x256xf32> to vector<4x256xf32>
    %87 = arith.addf %84, %86 : vector<4x256xf32>
    %c0_71 = arith.constant 0 : index
    %c0_72 = arith.constant 0 : index
    %c0_73 = arith.constant 0 : index
    %88 = vector.load %arg6[%c0_71, %c0_72, %c0_73] : memref<1x4x256xf32, #tpu.memory_space<vmem>>, vector<1x4x256xf32>
    %89 = vector.shape_cast %88 : vector<1x4x256xf32> to vector<4x256xf32>
    %90 = vector.shape_cast %87 : vector<4x256xf32> to vector<1x4x256xf32>
    tpu.vector_store %arg6[%c0_71, %c0_72, %c0_73], %90 {strides = array<i32>} : memref<1x4x256xf32, #tpu.memory_space<vmem>>, vector<1x4x256xf32>,
    return
  }
  func.func @transform_0(%arg0: i32) -> (i32, i32, i32) {
    %c0_i32 = arith.constant 0 : i32
    %c0_i32_0 = arith.constant 0 : i32
    %c0_i32_1 = arith.constant 0 : i32
    return %arg0, %c0_i32, %c0_i32_0 : i32, i32, i32
  }
  func.func @transform_1(%arg0: i32) -> (i32, i32, i32) {
    %c0_i32 = arith.constant 0 : i32
    %c0_i32_0 = arith.constant 0 : i32
    %c0_i32_1 = arith.constant 0 : i32
    %c0_i32_2 = arith.constant 0 : i32
    return %c0_i32, %c0_i32_0, %c0_i32_1 : i32, i32, i32
  }
  func.func @transform_2(%arg0: i32) -> (i32, i32) {
    %c0_i32 = arith.constant 0 : i32
    %c0_i32_0 = arith.constant 0 : i32
    %c0_i32_1 = arith.constant 0 : i32
    return %c0_i32, %c0_i32_0 : i32, i32
  }
  func.func @transform_3(%arg0: i32) -> (i32, i32) {
    %c0_i32 = arith.constant 0 : i32
    %c0_i32_0 = arith.constant 0 : i32
    %c0_i32_1 = arith.constant 0 : i32
    return %c0_i32, %c0_i32_0 : i32, i32
  }
  func.func @transform_4(%arg0: i32) -> (i32, i32, i32) {
    %c0_i32 = arith.constant 0 : i32
    %c0_i32_0 = arith.constant 0 : i32
    %c0_i32_1 = arith.constant 0 : i32
    return %arg0, %c0_i32, %c0_i32_0 : i32, i32, i32
  }
  func.func @transform_5(%arg0: i32) -> (i32, i32, i32) {
    %c0_i32 = arith.constant 0 : i32
    %c0_i32_0 = arith.constant 0 : i32
    %c0_i32_1 = arith.constant 0 : i32
    return %arg0, %c0_i32, %c0_i32_0 : i32, i32, i32
  }
}

</mosaic_0001>

<bundles_post_ra>
// kernel: spade_resnet_block_forward.13
= control target key start
LH: loop header
LB: loop body
LE: loop exit
PB: predicated region body
PF: predicated region fallthrough
CT: control target
= control target key end

     0   :  { %s403_s12 = smov 0   ;;  %s436_s0 = inlined_call_operand.vmem [shape: f32[2,4,256], index: 0, kind: input, shape index: {}]   ;;  %s437_s1 = inlined_call_operand.vmem [shape: f32[2,4,256], index: 1, kind: input, shape index: {}]   ;;  %s438_s2 = inlined_call_operand.vmem [shape: f32[2,4,256], index: 2, kind: input, shape index: {}]   ;;  %s439_s3 = inlined_call_operand.vmem [shape: f32[2,4,256], index: 3, kind: output, shape index: {}]  }
   0x1 LB: > { %s343_s13 = sadd.s32 4294967295, %s380_s12   ;;  %p347_p0 = scmp.ge.s32.totalorder %s380_s12, 1  ;;  %s380_s12 = sphi %s403_s12, %s13_s12  }
   0x2   : > { %p157_p1 = scmp.lt.s32.totalorder %s380_s12, 3 }
   0x4   : > { %p158_p2 = pnand %p347_p0, %p157_p1 }
   0x5   : > { %p191_p3 = scmp.lt.s32.totalorder (!%p158_p2), %s343_s13, 1  ;;  %vm215_vm0 = vcmask (!%p158_p2), 1043456   ;;  %v382_v5 = vmov (!%p158_p2), 839922192   ;;  %v227_v7 = vlaneseq (!%p158_p2) }
   0x6   : > { %161 = sbr.rel (%p158_p2) target bundleno = 346 (0x15a), region = 32  ;;  %v225_v6 = vunpack.c.l.s4 (!%p158_p2), %v382_v5 }
   0x7   : > { %v228_v9 = vshrl.u32 (!%p158_p2), %v227_v7, 7 }
   0x8   : > { %v226_v8 = vunpack.c.0.s8 (!%p158_p2), %v225_v6 }
   0xa   : > { %v229_v10 = vsub.s32 (!%p158_p2), %v226_v8, %v228_v9 }
   0xd   : > { %s441_s13 = smov (!%p191_p3, %s343_s13), 1 }
   0xe   : > { %s411_s14 = sshll.u32 %s441_s13, 3 }
   0xf   : > { %s195_s17 = scalar_lea.vmem %s436_s0, %s411_s14  ;;  %s200_s20 = scalar_lea.vmem %s437_s1, %s411_s14 }
  0x10   : > { %v211_v0 = vld [vmem:[%s195_s17] sm:$0xff]  ;;  %s205_s23 = scalar_lea.vmem %s438_s2, %s411_s14  ;;  %s210_s26 = scalar_lea.vmem %s439_s3, %s411_s14 }
  0x11   : > { %v213_v1 = vcombine.high %v211_v0, %v211_v0  ;;  %v216_v2 = vsel %vm215_vm0, %v211_v0, 0.0  ;;  %v255_v23 = vld [vmem:[%s200_s20] sm:$0xff] }
  0x12   : > { %v256_v25 = vadd.f32 1.0, %v255_v23  ;;  %v258_v28 = vld [vmem:[%s205_s23] sm:$0xff] }
  0x13   : > { %v217_v3 = vsel %vm215_vm0, %v213_v1, 0.0 }
  0x14   : > { %v218_v4 = vadd.f32 %v217_v3, %v216_v2 }
  0x16   : > { %219 = vadd.xlane.f32.xlu0 %v218_v4 }
  0xa3   : > { %v220_v11 = vpop.xlane.xlu0 %219 }
  0xa4   : > { %v222_v12 = vmul.f32 0.00390625, %v220_v11 }
  0xa6   : > { %v230_v13 = vrot.slane %v222_v12, %v229_v10 }
  0xa8   : > { %v232_v14 = vsub.f32 %v211_v0, %v230_v13 }
  0xaa   : > { %v233_v15 = vmul.f32 %v232_v14, %v232_v14 }
  0xac   : > { %v235_v16 = vcombine.high %v233_v15, %v233_v15  ;;  %v237_v17 = vsel %vm215_vm0, %v233_v15, 0.0 }
  0xae   : > { %v238_v18 = vsel %vm215_vm0, %v235_v16, 0.0 }
  0xaf   : > { %v239_v19 = vadd.f32 %v238_v18, %v237_v17 }
  0xb1   : > { %240 = vadd.xlane.f32.xlu0 %v239_v19 }
 0x13e   : > { %v241_v20 = vpop.xlane.xlu0 %240 }
 0x13f   : > { %v242_v21 = vmul.f32 0.00390625, %v241_v20 }
 0x141   : > { %v243_v22 = vadd.f32 1e-05, %v242_v21 }
 0x143   : > { %372 = vrsqrt.f32 %v243_v22 }
 0x14d   : > { %v373_v24 = vpop.eup %372 }
 0x14e   : > { %v252_v26 = vrot.slane %v373_v24, %v229_v10 }
 0x150   : > { %v254_v27 = vmul.f32 %v252_v26, %v232_v14 }
 0x152   : > { %v257_v29 = vmul.f32 %v256_v25, %v254_v27 }
 0x154   : > { %v259_v30 = vadd.f32 %v258_v28, %v257_v29 }
 0x156   : > { %vm260_vm1 = vcmp.gt.f32.partialorder %v259_v30, 0.0  ;;  %v261_v31 = vmul.f32 0.2, %v259_v30 }
 0x158   : > { %v262_v32 = vsel %vm260_vm1, %v259_v30, %v261_v31 }
 0x159   : > { %263 = vst [vmem:[%s210_s26] sm:$0xff] %v262_v32 }
 0x15a PF: > { %s13_s12 = sadd.s32 1, %s380_s12  }
 0x15b   : > { %p10_p4 = scmp.ge.s32.totalorder %s13_s12, 4  }
 0x15d   :  { %12 = sbr.rel (!%p10_p4) target bundleno = 1 (0x1), region = 68 }

// kernel: spade_resnet_block_forward.14
= control target key start
LH: loop header
LB: loop body
LE: loop exit
PB: predicated region body
PF: predicated region fallthrough
CT: control target
= control target key end

     0   :  { %s1452_s15 = smov 0   ;;  %s1650_s0 = inlined_call_operand.vmem [shape: bf16[2,4,290], index: 0, kind: input, shape index: {}]   ;;  %s1651_s1 = inlined_call_operand.vmem [shape: bf16[9,4,4], index: 1, kind: input, shape index: {}]   ;;  %s1652_s2 = inlined_call_operand.vmem [shape: f32[4,1], index: 2, kind: input, shape index: {}]   ;;  %s1653_s3 = inlined_call_operand.vmem [shape: bf16[9,256], index: 3, kind: input, shape index: {}]   ;;  %s1654_s4 = inlined_call_operand.vmem [shape: f32[2,4,256], index: 4, kind: output, shape index: {}]  }
   0x1 LB: > { %s1304_s16 = sadd.s32 4294967295, %s1407_s15   ;;  %p1308_p0 = scmp.ge.s32.totalorder %s1407_s15, 1  ;;  %s1407_s15 = sphi %s1452_s15, %s14_s15  }
   0x2   : > { %p162_p1 = scmp.lt.s32.totalorder %s1407_s15, 3 }
   0x4   : > { %p163_p2 = pnand %p1308_p0, %p162_p1 }
   0x5   : > { %v200_v0 = vld [vmem:[%s1653_s3] sm:$0x11] (!%p163_p2)  ;;  %v209_v1 = vlaneseq (!%p163_p2)  ;;  %v1409_v4 = vmov (!%p163_p2), 1983009808   ;;  %v523_v6 = vld [vmem:[%s1653_s3] sm:$0x22] (!%p163_p2) }
   0x6   : > { %166 = sbr.rel (%p163_p2) target bundleno = 528 (0x210), region = 36  ;;  %v1463_v2 = vcombine.low (!%p163_p2), %v200_v0, %v200_v0  ;;  %v1465_v3 = vcombine.high (!%p163_p2), %v200_v0, %v200_v0  ;;  %v224_v5 = vunpack.c.l.s4 (!%p163_p2), %v1409_v4  ;;  %v405_v7 = vld [vmem:[%s1653_s3] sm:$0x22] (!%p163_p2)  ;;  %v1324_v9 = vcombine.low (!%p163_p2), %v523_v6, %v523_v6  ;;  %v643_v15 = vld [vmem:[%s1653_s3] sm:$0x44] (!%p163_p2)  ;;  %s1410_s5 = smov (!%p163_p2), 1  }
   0x7   : > { %v210_v8 = vshrl.u32 (!%p163_p2), %v209_v1, 7  ;;  %v1325_v10 = vcombine.high (!%p163_p2), %v523_v6, %v523_v6  ;;  %v1319_v11 = vcombine.low (!%p163_p2), %v405_v7, %v405_v7  ;;  %v1320_v24 = vcombine.high (!%p163_p2), %v405_v7, %v405_v7  ;;  %v761_v31 = vld [vmem:[%s1653_s3] sm:$0x44] (!%p163_p2)  ;;  %v881_v32 = vld [vmem:[%s1653_s3] sm:$0x88] (!%p163_p2)  ;;  %s1411_s8 = smov (!%p163_p2), 16  }
   0x8   : > { %v225_v12 = vunpack.c.0.s8 (!%p163_p2), %v224_v5  ;;  %v234_v13 = vshrl.u32 (!%p163_p2), %v1463_v2, 16  ;;  %v241_v14 = vshrl.u32 (!%p163_p2), %v1465_v3, 16  ;;  %v530_v18 = vshrl.u32 (!%p163_p2), %v1324_v9, 16  ;;  %v999_v53 = vld [vmem:[%s1653_s3] sm:$0x88] (!%p163_p2)  ;;  %s1412_s9 = smov (!%p163_p2), 2  }
   0x9   : > { %v1478_v16 = vsub.s32 (!%p163_p2), 0, %v210_v8  ;;  %v416_v17 = vsub.s32 (!%p163_p2), 1, %v210_v8  ;;  %v538_v22 = vshrl.u32 (!%p163_p2), %v1325_v10, 16  ;;  %v412_v25 = vpack.i.b16 (!%p163_p2), %v1319_v11, %v1319_v11  ;;  %v1119_v58 = vld [vmem:[%s1653_s3 + $0x8] sm:$0x11] (!%p163_p2)  ;;  %s1413_s10 = smov (!%p163_p2), 17  }
   0xa   : > { %v1480_v19 = vsub.s32 (!%p163_p2), %v225_v12, %v210_v8  ;;  %v235_v20 = vpack.i.b16 (!%p163_p2), %v234_v13, %v234_v13  ;;  %v242_v21 = vpack.i.b16 (!%p163_p2), %v241_v14, %v241_v14  ;;  %v531_v23 = vpack.i.b16 (!%p163_p2), %v530_v18, %v530_v18  ;;  %s1414_s11 = smov (!%p163_p2), 18   ;;  %s1415_s12 = smov (!%p163_p2), 32  }
   0xb   : > { %v1329_v26 = vcombine.low (!%p163_p2), %v643_v15, %v643_v15  ;;  %v539_v29 = vpack.i.b16 (!%p163_p2), %v538_v22, %v538_v22  ;;  %v1330_v30 = vcombine.high (!%p163_p2), %v643_v15, %v643_v15  ;;  %v417_v34 = vrot.slane (!%p163_p2), %v412_v25, %v416_v17  ;;  %s1416_s13 = smov (!%p163_p2), 33   ;;  %s1417_s14 = smov (!%p163_p2), 34  }
   0xc   : > { %v240_v27 = vrot.slane (!%p163_p2), %v235_v20, %v1478_v16  ;;  %v247_v28 = vrot.slane (!%p163_p2), %v242_v21, %v1478_v16  ;;  %v536_v33 = vrot.slane (!%p163_p2), %v531_v23, %v416_v17  ;;  %v419_v35 = vpack.i.b16 (!%p163_p2), %v1320_v24, %v1320_v24  ;;  %p188_p3 = scmp.lt.s32.totalorder (!%p163_p2), %s1304_s16, 1  ;;  %s1418_s21 = smov (!%p163_p2), 127  }
   0xd   : > { %v650_v36 = vpack.i.b16 %v1329_v26, %v1329_v26  ;;  %v544_v38 = vrot.slane %v539_v29, %v416_v17  ;;  %v654_v39 = vsub.s32 2, %v210_v8  ;;  %v657_v40 = vpack.i.b16 %v1330_v30, %v1330_v30  ;;  %s1419_s22 = smov 126   ;;  %s1420_s23 = smov 112  }
   0xe   : > { %v250_v37 = vcombine.low %v240_v27, %v247_v28  ;;  %v424_v41 = vrot.slane %v419_v35, %v416_v17  ;;  %v1334_v42 = vcombine.low %v761_v31, %v761_v31  ;;  %v1335_v43 = vcombine.high %v761_v31, %v761_v31  ;;  %s1656_s16 = smov (!%p188_p3, %s1304_s16), 1  ;;  %s1421_s24 = smov 111  }
   0xf   : > { %v1339_v44 = vcombine.low %v881_v32, %v881_v32  ;;  %v547_v46 = vcombine.low %v536_v33, %v544_v38  ;;  %v655_v47 = vrot.slane %v650_v36, %v654_v39  ;;  %v662_v48 = vrot.slane %v657_v40, %v654_v39  ;;  %s1357_s17 = smul.u32 6, %s1656_s16  ;;  %s1423_s27 = smov 110  }
  0x10   : > { %v257_v45 = vrot.slane %v250_v37, %v1480_v19  ;;  %v427_v49 = vcombine.low %v417_v34, %v424_v41  ;;  %v768_v50 = vshrl.u32 %v1334_v42, 16  ;;  %v776_v51 = vshrl.u32 %v1335_v43, 16  ;;  %s1424_s28 = smov 96   ;;  %s1425_s29 = smov 95  }
  0x11   : > { %v1340_v52 = vcombine.high %v881_v32, %v881_v32  ;;  %v554_v54 = vrot.slane %v547_v46, %v1480_v19  ;;  %v665_v55 = vcombine.low %v655_v47, %v662_v48  ;;  %v888_v56 = vpack.i.b16 %v1339_v44, %v1339_v44  ;;  %s1520_s20 = scalar_lea.vmem %s1650_s0, %s1357_s17  ;;  %s1426_s30 = smov 94  }
  0x12   : > { %258 = vrot.lane.b32.xlu0 %v257_v45, %s1410_s5  ;;  %v892_v57 = vsub.s32 3, %v210_v8  ;;  %v434_v59 = vrot.slane %v427_v49, %v1480_v19  ;;  %v769_v60 = vpack.i.b16 %v768_v50, %v768_v50  ;;  %v777_v61 = vpack.i.b16 %v776_v51, %v776_v51  ;;  %v233_v33 = vld [vmem:[%s1520_s20] sm:$0x3f]  ;;  %s1356_s25 = sshll.u32 %s1656_s16, 3 }
  0x13   : > { %v895_v62 = vpack.i.b16 %v1340_v52, %v1340_v52  ;;  %555 = vrot.lane.b32.xlu1 %v554_v54, %s1411_s8  ;;  %v672_v63 = vrot.slane %v665_v55, %v1480_v19  ;;  %v1344_v1 = vcombine.low %v999_v53, %v999_v53  ;;  %v1345_v4 = vcombine.high %v999_v53, %v999_v53  ;;  %v522_v37 = vld [vmem:[%s1520_s20] sm:$0x3f] }
  0x14   : > { %v893_v0 = vrot.slane %v888_v56, %v892_v57  ;;  %v774_v5 = vrot.slane %v769_v60, %v654_v39  ;;  %v782_v6 = vrot.slane %v777_v61, %v654_v39  ;;  %v1349_v8 = vcombine.low %v1119_v58, %v1119_v58  ;;  %v404_v43 = vld [vmem:[%s1520_s20] sm:$0x3f] }
  0x15   : > { %v900_v7 = vrot.slane %v895_v62, %v892_v57  ;;  %v1006_v9 = vshrl.u32 %v1344_v1, 16  ;;  %v1014_v10 = vshrl.u32 %v1345_v4, 16  ;;  %v1350_v11 = vcombine.high %v1119_v58, %v1119_v58  ;;  %v199_v48 = vld [vmem:[%s1520_s20] sm:$0xf] }
  0x16   : > { %435 = vrot.lane.b32.xlu0 %v434_v59, %s1412_s9  ;;  %v785_v12 = vcombine.low %v774_v5, %v782_v6  ;;  %v1126_v14 = vpack.i.b16 %v1349_v8, %v1349_v8  ;;  %v214_v30 = vpack.i.b16 %v1465_v3, %v1465_v3  ;;  %v207_v31 = vpack.i.b16 %v1463_v2, %v1463_v2  ;;  %v642_v50 = vld [vmem:[%s1520_s20] sm:$0x3f] }
  0x17   : > { %v903_v13 = vcombine.low %v893_v0, %v900_v7  ;;  %673 = vrot.lane.b32.xlu1 %v672_v63, %s1413_s10  ;;  %v1007_v15 = vpack.i.b16 %v1006_v9, %v1006_v9  ;;  %v1015_v17 = vpack.i.b16 %v1014_v10, %v1014_v10  ;;  %v1133_v18 = vpack.i.b16 %v1350_v11, %v1350_v11  ;;  %v760_v6 = vld [vmem:[%s1520_s20] sm:$0x3f] }
  0x18   : > { %v792_v20 = vrot.slane %v785_v12, %v1480_v19  ;;  %v1131_v22 = vrot.slane %v1126_v14, %v1478_v16  ;;  %vm261_vm0 = vcmask 7168   ;;  %v212_v35 = vrot.slane %v207_v31, %v1478_v16  ;;  %v232_v11 = vld [vmem:[%s1651_s1] sm:$0x3] }
  0x19   : > { %v910_v21 = vrot.slane %v903_v13, %v1480_v19  ;;  %v1012_v23 = vrot.slane %v1007_v15, %v892_v57  ;;  %v1020_v24 = vrot.slane %v1015_v17, %v892_v57  ;;  %v1138_v25 = vrot.slane %v1133_v18, %v1478_v16  ;;  %v880_v18 = vld [vmem:[%s1520_s20] sm:$0x3f] }
  0x1a   : > { %793 = vrot.lane.b32.xlu0 %v792_v20, %s1414_s11  ;;  %v219_v36 = vrot.slane %v214_v30, %v1478_v16  ;;  %vm558_vm1 = vcmask 130048   ;;  %vm438_vm2 = vcmask 15360   ;;  %vm676_vm3 = vcmask 138240   ;;  %v998_v30 = vld [vmem:[%s1520_s20] sm:$0x3f] }
  0x1b   : > { %911 = vrot.lane.b32.xlu1 %v910_v21, %s1415_s12  ;;  %v1023_v26 = vcombine.low %v1012_v23, %v1020_v24  ;;  %v1141_v27 = vcombine.low %v1131_v22, %v1138_v25  ;;  %vm796_vm4 = vcmask 146432   ;;  %vm297_vm5 = vcmask 1041408  }
  0x1c   : > { %v222_v39 = vcombine.low %v212_v35, %v219_v36  ;;  %v1422_v8 = vmov 0   ;;  %vm293_vm6 = vcmask 31744   ;;  %vm914_vm7 = vcmask 261120  }
  0x1d   : > { %v1030_v28 = vrot.slane %v1023_v26, %v1480_v19  ;;  %v1148_v29 = vrot.slane %v1141_v27, %v1480_v19  ;;  %336 = vmatprep.mubr.bf16.mxu0 %v1422_v8  ;;  %395 = vmatprep.mubr.bf16.mxu1 %v1422_v8  ;;  %vm1034_vm8 = vcmask 269312   ;;  %vm1152_vm9 = vcmask 277504  }
  0x1e   : > { %v229_v45 = vrot.slane %v222_v39, %v1480_v19  ;;  %1384 = vset.pattern.permute.xlu0 %v1422_v8  ;;  %vm290_vm10 = vcmask 1039360   ;;  %vm467_vm11 = vcmask 1031168   ;;  %vm705_vm12 = vcmask 908288  }
  0x1f   : > { %1031 = vrot.lane.b32.xlu0 %v1030_v28, %s1416_s13  ;;  %1149 = vrot.lane.b32.xlu1 %v1148_v29, %s1417_s14  ;;  %vm587_vm13 = vcmask 916480   ;;  %vm943_vm14 = vcmask 785408   ;;  %vm825_vm15 = vcmask 900096  }
  0x20   : > { %v231_v52 = vmul.bf16 %v229_v45, %v199_v48  ;;  %v1236_v48 = vld [vmem:[%s1652_s2] sm:$0xf] }
  0x22   : > { %v352_v55 = vrot.slane %v231_v52, %v1480_v19 }
  0x24   : > { %v353_v61 = vcombine.high %v352_v55, %v352_v55  ;;  %v358_v5 = vsel %vm297_vm5, %v352_v55, 0 }
  0x26   : > { %1317 = vmatprep.subr.msk.bf16.mxu1 %vm297_vm5, %v353_v61 }
  0x27   : > { %364 = vmatpush1.bf16.msra.mxu1 %v358_v5 }
  0x2a   : > { %1318 = vmatmul.mubr.msk.bf16.vlgmr.msra.gmra.mrb[0].mxu1 %vm293_vm6, %v232_v11 }
  0x2b   : > { %631 = vmatprep.mubr.bf16.mxu1 %v1422_v8 }
  0x84   : > { %v259_v32 = vpop.permute.xlu0 %258 }
  0x85   : > { %v260_v34 = vrot.slane %v259_v32, 6  ;;  %v556_v3 = vpop.permute.xlu1 %555 }
  0x86   : > { %v557_v38 = vrot.slane %v556_v3, 6 }
  0x87   : > { %v262_v2 = vsel %vm261_vm0, %v260_v34, %v259_v32  ;;  %vm1063_vm0 = vcmask 777216  }
  0x88   : > { %v264_v40 = vmul.bf16 %v262_v2, %v233_v33  ;;  %v436_v41 = vpop.permute.xlu0 %435  ;;  %v559_v42 = vsel %vm558_vm1, %v557_v38, %v556_v3  ;;  %v1118_v38 = vld [vmem:[%s1520_s20] sm:$0x3f]  ;;  %vm1181_vm1 = vcmask 769024  }
  0x89   : > { %v437_v44 = vrot.slane %v436_v41, 6  ;;  %v1528_v46 = vmul.bf16 %v559_v42, %v522_v37  ;;  %v674_v16 = vpop.permute.xlu1 %673 }
  0x8a   : > { %v275_v47 = vrot.slane %v264_v40, %v1480_v19  ;;  %v675_v51 = vrot.slane %v674_v16, 6  ;;  %v268_v62 = vcombine.high %v264_v40, %v264_v40 }
  0x8b   : > { %v439_v49 = vsel %vm438_vm2, %v437_v44, %v436_v41  ;;  %v1538_v58 = vrot.slane %v1528_v46, %v1480_v19  ;;  %v565_v22 = vcombine.high %v1528_v46, %v1528_v46 }
  0x8c   : > { %v441_v53 = vmul.bf16 %v439_v49, %v404_v43  ;;  %284 = vrot.lane.b32.xlu0 %v275_v47, %s1418_s21  ;;  %v677_v54 = vsel %vm676_vm3, %v675_v51, %v674_v16  ;;  %v794_v59 = vpop.permute.xlu0 %793  ;;  %v282_v10 = vrot.slane %v268_v62, %v1480_v19  ;;  %v283_v15 = vcombine.high %v275_v47, %v275_v47 }
  0x8d   : > { %v679_v56 = vmul.bf16 %v677_v54, %v642_v50  ;;  %v795_v60 = vrot.slane %v794_v59, 6  ;;  %v912_v4 = vpop.permute.xlu1 %911  ;;  %v579_v28 = vrot.slane %v565_v22, %v1480_v19  ;;  %v580_v34 = vcombine.high %v1538_v58, %v1538_v58 }
  0x8e   : > { %v452_v57 = vrot.slane %v441_v53, %v1480_v19  ;;  %v445_v63 = vcombine.high %v441_v53, %v441_v53  ;;  %v913_v12 = vrot.slane %v912_v4, 6 }
  0x8f   : > { %v690_v0 = vrot.slane %v679_v56, %v1480_v19  ;;  %v797_v7 = vsel %vm796_vm4, %v795_v60, %v794_v59  ;;  %v683_v14 = vcombine.high %v679_v56, %v679_v56 }
  0x90   : > { %461 = vrot.lane.b32.xlu1 %v452_v57, %s1419_s22  ;;  %581 = vrot.lane.b32.xlu0 %v1538_v58, %s1420_s23  ;;  %v460_v1 = vcombine.high %v452_v57, %v452_v57  ;;  %v459_v9 = vrot.slane %v445_v63, %v1480_v19  ;;  %v799_v13 = vmul.bf16 %v797_v7, %v760_v6  ;;  %v1314_v63 = vld [vmem:[%s1651_s1 + $0x2] sm:$0x3] }
  0x91   : > { %v698_v17 = vcombine.high %v690_v0, %v690_v0  ;;  %v915_v20 = vsel %vm914_vm7, %v913_v12, %v912_v4  ;;  %v697_v24 = vrot.slane %v683_v14, %v1480_v19  ;;  %v1032_v25 = vpop.permute.xlu0 %1031  ;;  %v1150_v29 = vpop.permute.xlu1 %1149 }
  0x92   : > { %v810_v21 = vrot.slane %v799_v13, %v1480_v19  ;;  %v917_v23 = vmul.bf16 %v915_v20, %v880_v18  ;;  %v1033_v26 = vrot.slane %v1032_v25, 6  ;;  %v803_v32 = vcombine.high %v799_v13, %v799_v13  ;;  %v1326_v18 = vld [vmem:[%s1651_s1 + $0x6] sm:$0x3] }
  0x93   : > { %v1151_v36 = vrot.slane %v1150_v29, 6 }
  0x94   : > { %699 = vrot.lane.b32.xlu1 %v690_v0, %s1421_s24  ;;  %463 = vrot.lane.b32.xlu0 %v460_v1, %s1419_s22  ;;  %v928_v27 = vrot.slane %v917_v23, %v1480_v19  ;;  %v1035_v31 = vsel %vm1034_vm8, %v1033_v26, %v1032_v25  ;;  %v921_v33 = vcombine.high %v917_v23, %v917_v23 }
  0x95   : > { %v1037_v3 = vmul.bf16 %v1035_v31, %v998_v30  ;;  %v817_v37 = vrot.slane %v803_v32, %v1480_v19  ;;  %v1153_v39 = vsel %vm1152_vm9, %v1151_v36, %v1150_v29  ;;  %v818_v43 = vcombine.high %v810_v21, %v810_v21  ;;  %v1336_v31 = vld [vmem:[%s1651_s1 + $0xa] sm:$0x3] }
  0x96   : > { %v936_v35 = vcombine.high %v928_v27, %v928_v27  ;;  %v935_v2 = vrot.slane %v921_v33, %v1480_v19  ;;  %v1155_v42 = vmul.bf16 %v1153_v39, %v1118_v38  ;;  %v1346_v39 = vld [vmem:[%s1651_s1 + $0xe] sm:$0x3] }
  0x97   : > { %v1041_v40 = vcombine.high %v1037_v3, %v1037_v3  ;;  %v1048_v41 = vrot.slane %v1037_v3, %v1480_v19 }
  0x98   : > { %465 = vrot.lane.b32.xlu1 %v459_v9, %s1419_s22  ;;  %288 = vrot.lane.b32.xlu0 %v282_v10, %s1418_s21  ;;  %v1166_v45 = vrot.slane %v1155_v42, %v1480_v19  ;;  %v1159_v46 = vcombine.high %v1155_v42, %v1155_v42  ;;  %v1321_v10 = vld [vmem:[%s1651_s1 + $0x4] sm:$0x3] }
  0x99   : > { %v1055_v44 = vrot.slane %v1041_v40, %v1480_v19  ;;  %v1056_v16 = vcombine.high %v1048_v41, %v1048_v41 }
  0x9a   : > { %v1174_v47 = vcombine.high %v1166_v45, %v1166_v45  ;;  %v1173_v49 = vrot.slane %v1159_v46, %v1480_v19 }
  0x9c   : > { %286 = vrot.lane.b32.xlu1 %v283_v15, %s1418_s21  ;;  %701 = vrot.lane.b32.xlu0 %v698_v17, %s1421_s24 }
  0xa0   : > { %703 = vrot.lane.b32.xlu1 %v697_v24, %s1421_s24  ;;  %819 = vrot.lane.b32.xlu0 %v810_v21, %s1423_s27  ;;  %v1331_v24 = vld [vmem:[%s1651_s1 + $0x8] sm:$0x3] }
  0xa4   : > { %937 = vrot.lane.b32.xlu1 %v928_v27, %s1424_s28  ;;  %585 = vrot.lane.b32.xlu0 %v579_v28, %s1420_s23 }
  0xa8   : > { %583 = vrot.lane.b32.xlu1 %v580_v34, %s1420_s23  ;;  %939 = vrot.lane.b32.xlu0 %v936_v35, %s1424_s28  ;;  %v1341_v34 = vld [vmem:[%s1651_s1 + $0xc] sm:$0x3] }
  0xac   : > { %941 = vrot.lane.b32.xlu1 %v935_v2, %s1424_s28  ;;  %823 = vrot.lane.b32.xlu0 %v817_v37, %s1423_s27  ;;  %s197_s28 = scalar_lea.vmem %s1654_s4, %s1356_s25 }
  0xb0   : > { %821 = vrot.lane.b32.xlu1 %v818_v43, %s1423_s27  ;;  %1057 = vrot.lane.b32.xlu0 %v1048_v41, %s1425_s29  ;;  %v1351_v43 = vld [vmem:[%s1651_s1 + $0x10] sm:$0x3] }
  0xb4   : > { %1175 = vrot.lane.b32.xlu1 %v1166_v45, %s1426_s30  ;;  %1061 = vrot.lane.b32.xlu0 %v1055_v44, %s1425_s29 }
  0xb8   : > { %1059 = vrot.lane.b32.xlu1 %v1056_v16, %s1425_s29  ;;  %1177 = vrot.lane.b32.xlu0 %v1174_v47, %s1426_s30 }
  0xbc   : > { %1179 = vrot.lane.b32.xlu1 %v1173_v49, %s1426_s30  ;;  %1239 = vperm.xlu0 %1384, %v1236_v48  }
  0xfd   : > { %v397_v44 = vpop.f32.mrb[0].mxu1 }
  0xfe   : > { %v285_v50 = vpop.permute.xlu0 %284  ;;  %v399_v45 = vpop.f32.mrb[1].mxu1 }
  0xff   : > { %v401_v46 = vpop.f32.mrb[2].mxu1 }
 0x100   : > { %v402_v16 = vpop.f32.mrb[3].mxu1 }
 0x102   : > { %v462_v51 = vpop.permute.xlu1 %461  ;;  %v582_v52 = vpop.permute.xlu0 %581 }
 0x106   : > { %v700_v53 = vpop.permute.xlu1 %699  ;;  %v464_v54 = vpop.permute.xlu0 %463 }
 0x107   : > { %v468_v19 = vsel %vm467_vm11, %v462_v51, %v464_v54 }
 0x108   : > { %v474_v4 = vsel %vm297_vm5, %v468_v19, 0 }
 0x10a   : > { %v466_v55 = vpop.permute.xlu1 %465  ;;  %v289_v56 = vpop.permute.xlu0 %288 }
 0x10b   : > { %v469_v62 = vsel %vm467_vm11, %v464_v54, %v466_v55 }
 0x10e   : > { %v287_v57 = vpop.permute.xlu1 %286  ;;  %v702_v58 = vpop.permute.xlu0 %701 }
 0x10f   : > { %v292_v59 = vsel %vm290_vm10, %v287_v57, %v289_v56  ;;  %v291_v60 = vsel %vm290_vm10, %v285_v50, %v287_v57  ;;  %v706_v9 = vsel %vm705_vm12, %v700_v53, %v702_v58 }
 0x110   : > { %1315 = vmatprep.subr.msk.bf16.mxu0 %vm297_vm5, %v292_v59  ;;  %v299_v61 = vsel %vm297_vm5, %v291_v60, 0  ;;  %v712_v15 = vsel %vm297_vm5, %v706_v9, 0 }
 0x111   : > { %305 = vmatpush1.bf16.msra.mxu0 %v299_v61 }
 0x112   : > { %v704_v0 = vpop.permute.xlu1 %703  ;;  %1322 = vmatprep.subr.msk.bf16.mxu0 %vm297_vm5, %v469_v62  ;;  %v820_v1 = vpop.permute.xlu0 %819 }
 0x113   : > { %v707_v5 = vsel %vm705_vm12, %v702_v58, %v704_v0 }
 0x114   : > { %1316 = vmatmul.mubr.msk.bf16.vlgmr.msra.gmra.mrb[0].mxu0 %vm293_vm6, %v1314_v63 }
 0x115   : > { %480 = vmatpush1.bf16.msra.mxu0 %v474_v4  ;;  %511 = vmatprep.mubr.bf16.mxu0 %v1422_v8 }
 0x116   : > { %v938_v6 = vpop.permute.xlu1 %937  ;;  %1332 = vmatprep.subr.msk.bf16.mxu0 %vm297_vm5, %v707_v5  ;;  %v586_v7 = vpop.permute.xlu0 %585 }
 0x11a   : > { %v584_v11 = vpop.permute.xlu1 %583  ;;  %v940_v12 = vpop.permute.xlu0 %939 }
 0x11b   : > { %v588_v13 = vsel %vm587_vm13, %v582_v52, %v584_v11  ;;  %v589_v14 = vsel %vm587_vm13, %v584_v11, %v586_v7  ;;  %v944_v23 = vsel %vm943_vm14, %v938_v6, %v940_v12 }
 0x11c   : > { %v594_v17 = vsel %vm297_vm5, %v588_v13, 0  ;;  %1323 = vmatmul.mubr.msk.bf16.vlgmr.msra.gmra.mrb[4].mxu0 %vm293_vm6, %v1321_v10  ;;  %1327 = vmatprep.subr.msk.bf16.mxu1 %vm297_vm5, %v589_v14  ;;  %v950_v29 = vsel %vm297_vm5, %v944_v23, 0 }
 0x11d   : > { %718 = vmatpush1.bf16.msra.mxu0 %v712_v15  ;;  %600 = vmatpush1.bf16.msra.mxu1 %v594_v17 }
 0x11e   : > { %v942_v20 = vpop.permute.xlu1 %941  ;;  %v824_v21 = vpop.permute.xlu0 %823  ;;  %749 = vmatprep.mubr.bf16.mxu0 %v1422_v8 }
 0x11f   : > { %v945_v22 = vsel %vm943_vm14, %v940_v12, %v942_v20 }
 0x120   : > { %1328 = vmatmul.mubr.msk.bf16.vlgmr.msra.gmra.mrb[4].mxu1 %vm293_vm6, %v1326_v18  ;;  %1342 = vmatprep.subr.msk.bf16.mxu0 %vm297_vm5, %v945_v22 }
 0x121   : > { %869 = vmatprep.mubr.bf16.mxu1 %v1422_v8 }
 0x122   : > { %v822_v25 = vpop.permute.xlu1 %821  ;;  %v1058_v26 = vpop.permute.xlu0 %1057 }
 0x123   : > { %v826_v27 = vsel %vm825_vm15, %v820_v1, %v822_v25  ;;  %v827_v28 = vsel %vm825_vm15, %v822_v25, %v824_v21 }
 0x124   : > { %v832_v30 = vsel %vm297_vm5, %v826_v27, 0  ;;  %1333 = vmatmul.mubr.msk.bf16.vlgmr.msra.gmra.mrb[8].mxu0 %vm293_vm6, %v1331_v24  ;;  %1337 = vmatprep.subr.msk.bf16.mxu1 %vm297_vm5, %v827_v28 }
 0x125   : > { %956 = vmatpush1.bf16.msra.mxu0 %v950_v29  ;;  %838 = vmatpush1.bf16.msra.mxu1 %v832_v30 }
 0x126   : > { %v1176_v32 = vpop.permute.xlu1 %1175  ;;  %v1062_v33 = vpop.permute.xlu0 %1061  ;;  %987 = vmatprep.mubr.bf16.mxu0 %v1422_v8 }
 0x128   : > { %1338 = vmatmul.mubr.msk.bf16.vlgmr.msra.gmra.mrb[8].mxu1 %vm293_vm6, %v1336_v31 }
 0x129   : > { %1107 = vmatprep.mubr.bf16.mxu1 %v1422_v8 }
 0x12a   : > { %v1060_v35 = vpop.permute.xlu1 %1059  ;;  %v1178_v36 = vpop.permute.xlu0 %1177 }
 0x12b   : > { %v1064_v3 = vsel %vm1063_vm0, %v1058_v26, %v1060_v35  ;;  %v1065_v2 = vsel %vm1063_vm0, %v1060_v35, %v1062_v33  ;;  %v1182_v38 = vsel %vm1181_vm1, %v1176_v32, %v1178_v36 }
 0x12c   : > { %v1070_v37 = vsel %vm297_vm5, %v1064_v3, 0  ;;  %1343 = vmatmul.mubr.msk.bf16.vlgmr.msra.gmra.mrb[12].mxu0 %vm293_vm6, %v1341_v34  ;;  %1347 = vmatprep.subr.msk.bf16.mxu1 %vm297_vm5, %v1065_v2  ;;  %v1188_v42 = vsel %vm297_vm5, %v1182_v38, 0 }
 0x12d   : > { %1076 = vmatpush1.bf16.msra.mxu1 %v1070_v37  ;;  %1225 = vmatprep.mubr.bf16.mxu0 %v1422_v8 }
 0x12e   : > { %v1180_v40 = vpop.permute.xlu1 %1179 }
 0x12f   : > { %v1183_v41 = vsel %vm1181_vm1, %v1178_v36, %v1180_v40 }
 0x130   : > { %1348 = vmatmul.mubr.msk.bf16.vlgmr.msra.gmra.mrb[12].mxu1 %vm293_vm6, %v1346_v39  ;;  %1352 = vmatprep.subr.msk.bf16.mxu0 %vm297_vm5, %v1183_v41 }
 0x131   : > { %1194 = vmatpush1.bf16.msra.mxu0 %v1188_v42 }
 0x134   : > { %1353 = vmatmul.mubr.msk.bf16.vlgmr.msra.gmra.mrb[16].mxu0 %vm293_vm6, %v1351_v43 }
 0x13b   : > { %v1240_v29 = vpop.permute.xlu0 %1239 }
 0x1e7   : > { %v338_v8 = vpop.f32.mrb[0].mxu0 }
 0x1e8   : > { %v340_v47 = vpop.f32.mrb[1].mxu0  ;;  %v398_v48 = vadd.f32 %v397_v44, %v338_v8 }
 0x1e9   : > { %v342_v49 = vpop.f32.mrb[2].mxu0  ;;  %v400_v50 = vadd.f32 %v399_v45, %v340_v47 }
 0x1ea   : > { %v343_v51 = vpop.f32.mrb[3].mxu0 }
 0x1ef   : > { %v513_v52 = vpop.f32.mrb[4].mxu0 }
 0x1f0   : > { %v520_v53 = vadd.f32 %v513_v52, %v398_v48  ;;  %v515_v54 = vpop.f32.mrb[5].mxu0 }
 0x1f1   : > { %v521_v55 = vadd.f32 %v515_v54, %v400_v50  ;;  %v517_v56 = vpop.f32.mrb[6].mxu0 }
 0x1f2   : > { %v518_v57 = vpop.f32.mrb[7].mxu0 }
 0x1f3   : > { %v633_v58 = vpop.f32.mrb[4].mxu1 }
 0x1f4   : > { %v640_v59 = vadd.f32 %v633_v58, %v520_v53  ;;  %v635_v60 = vpop.f32.mrb[5].mxu1 }
 0x1f5   : > { %v641_v61 = vadd.f32 %v635_v60, %v521_v55  ;;  %v637_v19 = vpop.f32.mrb[6].mxu1 }
 0x1f6   : > { %v638_v62 = vpop.f32.mrb[7].mxu1 }
 0x1f7   : > { %v751_v63 = vpop.f32.mrb[8].mxu0 }
 0x1f8   : > { %v758_v0 = vadd.f32 %v751_v63, %v640_v59  ;;  %v753_v1 = vpop.f32.mrb[9].mxu0 }
 0x1f9   : > { %v759_v4 = vadd.f32 %v753_v1, %v641_v61  ;;  %v755_v5 = vpop.f32.mrb[10].mxu0 }
 0x1fa   : > { %v756_v6 = vpop.f32.mrb[11].mxu0 }
 0x1fb   : > { %v871_v7 = vpop.f32.mrb[8].mxu1 }
 0x1fc   : > { %v878_v9 = vadd.f32 %v871_v7, %v758_v0  ;;  %v873_v10 = vpop.f32.mrb[9].mxu1 }
 0x1fd   : > { %v879_v11 = vadd.f32 %v873_v10, %v759_v4  ;;  %v875_v12 = vpop.f32.mrb[10].mxu1 }
 0x1fe   : > { %v876_v13 = vpop.f32.mrb[11].mxu1 }
 0x1ff   : > { %v989_v14 = vpop.f32.mrb[12].mxu0 }
 0x200   : > { %v996_v15 = vadd.f32 %v989_v14, %v878_v9  ;;  %v991_v17 = vpop.f32.mrb[13].mxu0 }
 0x201   : > { %v997_v18 = vadd.f32 %v991_v17, %v879_v11  ;;  %v993_v20 = vpop.f32.mrb[14].mxu0 }
 0x202   : > { %v994_v21 = vpop.f32.mrb[15].mxu0 }
 0x203   : > { %v1109_v22 = vpop.f32.mrb[12].mxu1 }
 0x204   : > { %v1116_v23 = vadd.f32 %v1109_v22, %v996_v15  ;;  %v1111_v24 = vpop.f32.mrb[13].mxu1 }
 0x205   : > { %v1117_v25 = vadd.f32 %v1111_v24, %v997_v18  ;;  %v1113_v26 = vpop.f32.mrb[14].mxu1 }
 0x206   : > { %v1114_v27 = vpop.f32.mrb[15].mxu1 }
 0x207   : > { %v1227_v28 = vpop.f32.mrb[16].mxu0 }
 0x208   : > { %v1234_v30 = vadd.f32 %v1227_v28, %v1116_v23  ;;  %v1229_v31 = vpop.f32.mrb[17].mxu0 }
 0x209   : > { %v1235_v32 = vadd.f32 %v1229_v31, %v1117_v25  ;;  %v1231_v33 = vpop.f32.mrb[18].mxu0 }
 0x20a   : > { %v1242_v34 = vadd.f32 %v1240_v29, %v1234_v30  ;;  %v1232_v35 = vpop.f32.mrb[19].mxu0 }
 0x20b   : > { %v1243_v36 = vadd.f32 %v1240_v29, %v1235_v32 }
 0x20d   : > { %v1246_v3 = vcombine.low %v1242_v34, %v1243_v36 }
 0x20f   : > { %1248 = vst [vmem:[%s197_s28] sm:$0xff] %v1246_v3 }
 0x210 PF: > { %s14_s15 = sadd.s32 1, %s1407_s15  }
 0x211   : > { %p11_p4 = scmp.ge.s32.totalorder %s14_s15, 4  }
 0x213   :  { %13 = sbr.rel (!%p11_p4) target bundleno = 1 (0x1), region = 74 }

// kernel: spade_resnet_block_forward.10
= control target key start
LH: loop header
LB: loop body
LE: loop exit
PB: predicated region body
PF: predicated region fallthrough
CT: control target
= control target key end

     0   :  { %s3759_s15 = smov 0   ;;  %s4366_s0 = inlined_call_operand.vmem [shape: bf16[2,4,290], index: 0, kind: input, shape index: {}]   ;;  %s4367_s1 = inlined_call_operand.vmem [shape: bf16[9,128,4], index: 1, kind: input, shape index: {}]   ;;  %s4368_s2 = inlined_call_operand.vmem [shape: f32[128,1], index: 2, kind: input, shape index: {}]   ;;  %s4369_s3 = inlined_call_operand.vmem [shape: bf16[9,256], index: 3, kind: input, shape index: {}]   ;;  %s4370_s4 = inlined_call_operand.vmem [shape: f32[2,128,256], index: 4, kind: output, shape index: {}]  }
   0x1 LB: > { %s3025_s16 = sadd.s32 4294967295, %s3714_s15   ;;  %p3029_p0 = scmp.ge.s32.totalorder %s3714_s15, 1  ;;  %s3714_s15 = sphi %s3759_s15, %s14_s15  }
   0x2   : > { %p162_p1 = scmp.lt.s32.totalorder %s3714_s15, 3 }
   0x4   : > { %p163_p2 = pnand %p3029_p0, %p162_p1 }
   0x5   : > { %v200_v0 = vld [vmem:[%s4369_s3] sm:$0x11] (!%p163_p2)  ;;  %v209_v1 = vlaneseq (!%p163_p2)  ;;  %v3716_v4 = vmov (!%p163_p2), 1983009808   ;;  %v1295_v6 = vld [vmem:[%s4369_s3] sm:$0x44] (!%p163_p2) }
   0x6   : > { %166 = sbr.rel (%p163_p2) target bundleno = 836 (0x344), region = 36  ;;  %v3770_v2 = vcombine.low (!%p163_p2), %v200_v0, %v200_v0  ;;  %v3772_v3 = vcombine.high (!%p163_p2), %v200_v0, %v200_v0  ;;  %v224_v5 = vunpack.c.l.s4 (!%p163_p2), %v3716_v4  ;;  %v1591_v7 = vld [vmem:[%s4369_s3] sm:$0x44] (!%p163_p2)  ;;  %v3155_v9 = vcombine.low (!%p163_p2), %v1295_v6, %v1295_v6  ;;  %s3717_s23 = smov (!%p163_p2), 1   ;;  %v1889_v39 = vld [vmem:[%s4369_s3] sm:$0x88] (!%p163_p2) }
   0x7   : > { %v3780_v8 = vshrl.u32 (!%p163_p2), %v209_v1, 7  ;;  %v3156_v10 = vcombine.high (!%p163_p2), %v1295_v6, %v1295_v6  ;;  %v3190_v14 = vcombine.low (!%p163_p2), %v1591_v7, %v1591_v7  ;;  %v3191_v23 = vcombine.high (!%p163_p2), %v1591_v7, %v1591_v7  ;;  %s3718_s24 = smov (!%p163_p2), 17   ;;  %s3719_s25 = smov (!%p163_p2), 18   ;;  %v701_v51 = vld [vmem:[%s4369_s3] sm:$0x22] (!%p163_p2) }
   0x8   : > { %v225_v11 = vunpack.c.0.s8 (!%p163_p2), %v224_v5  ;;  %v249_v12 = vshrl.u32 (!%p163_p2), %v3770_v2, 16  ;;  %v256_v13 = vshrl.u32 (!%p163_p2), %v3772_v3, 16  ;;  %v1302_v16 = vpack.i.b16 (!%p163_p2), %v3155_v9, %v3155_v9  ;;  %p188_p3 = scmp.lt.s32.totalorder (!%p163_p2), %s3025_s16, 1  ;;  %v2185_v52 = vld [vmem:[%s4369_s3] sm:$0x88] (!%p163_p2)  ;;  %s3720_s10 = smov (!%p163_p2), 127  }
   0x9   : > { %v3785_v15 = vsub.s32 (!%p163_p2), 0, %v3780_v8  ;;  %v1306_v17 = vsub.s32 (!%p163_p2), 2, %v3780_v8  ;;  %v1309_v20 = vpack.i.b16 (!%p163_p2), %v3156_v10, %v3156_v10  ;;  %v1598_v27 = vshrl.u32 (!%p163_p2), %v3190_v14, 16  ;;  %s3721_s11 = smov (!%p163_p2), 111   ;;  %s3722_s12 = smov (!%p163_p2), 32  }
   0xa   : > { %v250_v18 = vpack.i.b16 (!%p163_p2), %v249_v12, %v249_v12  ;;  %v257_v19 = vpack.i.b16 (!%p163_p2), %v256_v13, %v256_v13  ;;  %v3789_v21 = vsub.s32 (!%p163_p2), %v225_v11, %v3780_v8  ;;  %v1606_v28 = vshrl.u32 (!%p163_p2), %v3191_v23, 16  ;;  %s3723_s13 = smov (!%p163_p2), 110   ;;  %s3724_s14 = smov (!%p163_p2), 2  }
   0xb   : > { %v1307_v22 = vrot.slane (!%p163_p2), %v1302_v16, %v1306_v17  ;;  %v1314_v26 = vrot.slane (!%p163_p2), %v1309_v20, %v1306_v17  ;;  %v1599_v31 = vpack.i.b16 (!%p163_p2), %v1598_v27, %v1598_v27  ;;  %vm276_vm0 = vcmask (!%p163_p2), 7168   ;;  %s3726_s17 = smov (!%p163_p2), 33   ;;  %s3727_s28 = smov (!%p163_p2), 96  }
   0xc   : > { %v255_v24 = vrot.slane (!%p163_p2), %v250_v18, %v3785_v15  ;;  %v262_v25 = vrot.slane (!%p163_p2), %v257_v19, %v3785_v15  ;;  %v1607_v32 = vpack.i.b16 (!%p163_p2), %v1606_v28, %v1606_v28  ;;  %v3225_v41 = vcombine.low (!%p163_p2), %v1889_v39, %v1889_v39  ;;  %s3728_s6 = smov (!%p163_p2), 16   ;;  %s3729_s9 = smov (!%p163_p2), 126  }
   0xd   : > { %v1317_v30 = vcombine.low %v1307_v22, %v1314_v26  ;;  %v1604_v34 = vrot.slane %v1599_v31, %v1306_v17  ;;  %s4372_s16 = smov (!%p188_p3, %s3025_s16), 1  ;;  %v3226_v42 = vcombine.high %v1889_v39, %v1889_v39  ;;  %vm1328_vm1 = vcmask 138240  }
   0xe   : > { %v265_v29 = vcombine.low %v255_v24, %v262_v25  ;;  %v1612_v35 = vrot.slane %v1607_v32, %v1306_v17  ;;  %s3591_s26 = smul.u32 6, %s4372_s16  ;;  %v1896_v48 = vpack.i.b16 %v3225_v41, %v3225_v41  ;;  %v1900_v49 = vsub.s32 3, %v3780_v8 }
   0xf   : > { %v1324_v36 = vrot.slane %v1317_v30, %v3789_v21  ;;  %v1903_v50 = vpack.i.b16 %v3226_v42, %v3226_v42  ;;  %vm1626_vm2 = vcmask 146432   ;;  %v3085_v60 = vcombine.low %v701_v51, %v701_v51 }
  0x10   : > { %v272_v33 = vrot.slane %v265_v29, %v3789_v21  ;;  %v1615_v37 = vcombine.low %v1604_v34, %v1612_v35  ;;  %s3809_s5 = scalar_lea.vmem %s4366_s0, %s3591_s26  ;;  %v3086_v61 = vcombine.high %v701_v51, %v701_v51  ;;  %v3260_v62 = vcombine.low %v2185_v52, %v2185_v52 }
  0x11   : > { %v248_v43 = vld [vmem:[%s3809_s5] sm:$0x3f]  ;;  %v1901_v0 = vrot.slane %v1896_v48, %v1900_v49  ;;  %v1908_v1 = vrot.slane %v1903_v50, %v1900_v49  ;;  %v3261_v4 = vcombine.high %v2185_v52, %v2185_v52  ;;  %v708_v10 = vpack.i.b16 %v3085_v60, %v3085_v60 }
  0x12   : > { %273 = vrot.lane.b32.xlu0 %v272_v33, %s3717_s23  ;;  %v1622_v38 = vrot.slane %v1615_v37, %v3789_v21  ;;  %v1294_v53 = vld [vmem:[%s3809_s5] sm:$0x3f]  ;;  %v3825_v11 = vsub.s32 1, %v3780_v8  ;;  %v715_v12 = vpack.i.b16 %v3086_v61, %v3086_v61  ;;  %v2192_v13 = vshrl.u32 %v3260_v62, 16 }
  0x13   : > { %v1590_v5 = vld [vmem:[%s3809_s5] sm:$0x3f]  ;;  %v1911_v16 = vcombine.low %v1901_v0, %v1908_v1  ;;  %v2200_v17 = vshrl.u32 %v3261_v4, 16  ;;  %v3725_v37 = vmov 0   ;;  %v207_v39 = vpack.i.b16 %v3770_v2, %v3770_v2 }
  0x14   : > { %1623 = vrot.lane.b32.xlu1 %v1622_v38, %s3719_s25  ;;  %v713_v22 = vrot.slane %v708_v10, %v3825_v11  ;;  %v720_v23 = vrot.slane %v715_v12, %v3825_v11  ;;  %v2193_v24 = vpack.i.b16 %v2192_v13, %v2192_v13  ;;  %1477 = vmatprep.mubr.bf16.mxu0 %v3725_v37  ;;  %v199_v51 = vld [vmem:[%s3809_s5] sm:$0xf]  ;;  %vm360_vm3 = vcmask 1039360  }
  0x15   : > { %v1918_v8 = vrot.slane %v1911_v16, %v3789_v21  ;;  %v2201_v26 = vpack.i.b16 %v2200_v17, %v2200_v17  ;;  %427 = vmatprep.mubr.bf16.mxu1 %v3725_v37  ;;  %3618 = vset.pattern.permute.xlu0 %v3725_v37  ;;  %v214_v38 = vpack.i.b16 %v3772_v3, %v3772_v3  ;;  %vm388_vm4 = vcmask 1041408   ;;  %v3639_v60 = vld [vmem:[%s4367_s1 + $0x40] sm:$0xff]  }
  0x16   : > { %1325 = vrot.lane.b32.xlu0 %v1324_v36, %s3718_s24  ;;  %v723_v28 = vcombine.low %v713_v22, %v720_v23  ;;  %v2198_v29 = vrot.slane %v2193_v24, %v1900_v49  ;;  %3619 = vset.pattern.permute.xlu1 %v3725_v37  ;;  %v212_v42 = vrot.slane %v207_v39, %v3785_v15  ;;  %vm1412_vm5 = vcmask 908288   ;;  %v3637_v39 = vld [vmem:[%s4367_s1 + $0x108] sm:$0xff]  }
  0x17   : > { %v2206_v32 = vrot.slane %v2201_v26, %v1900_v49  ;;  %v219_v41 = vrot.slane %v214_v38, %v3785_v15  ;;  %vm1922_vm6 = vcmask 261120   ;;  %vm363_vm7 = vcmask 31744   ;;  %v3641_v26 = vld [vmem:[%s4367_s1 + $0x48] sm:$0xff]  }
  0x18   : > { %v730_v33 = vrot.slane %v723_v28, %v3789_v21  ;;  %vm1710_vm8 = vcmask 900096   ;;  %vm734_vm9 = vcmask 15360   ;;  %vm2220_vm10 = vcmask 269312  }
  0x19   : > { %v2209_v35 = vcombine.low %v2198_v29, %v2206_v32  ;;  %vm2006_vm11 = vcmask 785408   ;;  %vm1032_vm12 = vcmask 130048   ;;  %vm818_vm13 = vcmask 1031168  }
  0x1a   : > { %vm2516_vm14 = vcmask 277504   ;;  %vm2304_vm15 = vcmask 777216  }
  0x1b   : > { %v2216_v36 = vrot.slane %v2209_v35, %v3789_v21 }
  0x84   : > { %v274_v40 = vpop.permute.xlu0 %273 }
  0x85   : > { %v275_v44 = vrot.slane %v274_v40, 6 }
  0x86   : > { %v1624_v55 = vpop.permute.xlu1 %1623 }
  0x87   : > { %v277_v45 = vsel %vm276_vm0, %v275_v44, %v274_v40  ;;  %v1625_v58 = vrot.slane %v1624_v55, 6  ;;  %v997_v40 = vld [vmem:[%s4369_s3] sm:$0x22]  ;;  %vm1116_vm0 = vcmask 916480  }
  0x88   : > { %v279_v46 = vmul.bf16 %v277_v45, %v248_v43  ;;  %v1326_v47 = vpop.permute.xlu0 %1325  ;;  %v3120_v44 = vcombine.low %v997_v40, %v997_v40  ;;  %v3121_v45 = vcombine.high %v997_v40, %v997_v40 }
  0x89   : > { %v1327_v54 = vrot.slane %v1326_v47, 6  ;;  %v1627_v6 = vsel %vm1626_vm2, %v1625_v58, %v1624_v55 }
  0x8a   : > { %v338_v56 = vcombine.high %v279_v46, %v279_v46  ;;  %v345_v57 = vrot.slane %v279_v46, %v3789_v21  ;;  %v1629_v14 = vmul.bf16 %v1627_v6, %v1590_v5  ;;  %v222_v46 = vcombine.low %v212_v42, %v219_v41  ;;  %v1888_v6 = vld [vmem:[%s3809_s5] sm:$0x3f] }
  0x8b   : > { %v1329_v59 = vsel %vm1328_vm1, %v1327_v54, %v1326_v47  ;;  %v1004_v49 = vshrl.u32 %v3120_v44, 16  ;;  %v1012_v50 = vshrl.u32 %v3121_v45, 16  ;;  %vm2600_vm1 = vcmask 769024  }
  0x8c   : > { %v1331_v63 = vmul.bf16 %v1329_v59, %v1294_v53  ;;  %354 = vrot.lane.b32.xlu1 %v345_v57, %s3720_s10  ;;  %v352_v9 = vrot.slane %v338_v56, %v3789_v21  ;;  %v353_v19 = vcombine.high %v345_v57, %v345_v57  ;;  %v1695_v25 = vrot.slane %v1629_v14, %v3789_v21 }
  0x8d   : > { %v1688_v30 = vcombine.high %v1629_v14, %v1629_v14  ;;  %v229_v3 = vrot.slane %v222_v46, %v3789_v21  ;;  %v1005_v54 = vpack.i.b16 %v1004_v49, %v1004_v49  ;;  %v1013_v55 = vpack.i.b16 %v1012_v50, %v1012_v50 }
  0x8e   : > { %v1397_v7 = vrot.slane %v1331_v63, %v3789_v21  ;;  %v1390_v18 = vcombine.high %v1331_v63, %v1331_v63  ;;  %v1703_v31 = vcombine.high %v1695_v25, %v1695_v25  ;;  %v2483_v63 = vld [vmem:[%s4369_s3 + $0x8] sm:$0x11] }
  0x8f   : > { %v1702_v34 = vrot.slane %v1688_v30, %v3789_v21  ;;  %v231_v2 = vmul.bf16 %v229_v3, %v199_v51  ;;  %v1010_v4 = vrot.slane %v1005_v54, %v3825_v11  ;;  %v1018_v5 = vrot.slane %v1013_v55, %v3825_v11  ;;  %v3636_v11 = vld [vmem:[%s4367_s1 + $0x100] sm:$0xff]   ;;  %v3645_v55 = vld [vmem:[%s4367_s1 + $0x58] sm:$0xff]  }
  0x90   : > { %1406 = vrot.lane.b32.xlu0 %v1397_v7, %s3721_s11  ;;  %358 = vrot.lane.b32.xlu1 %v352_v9, %s3720_s10  ;;  %v1405_v20 = vcombine.high %v1397_v7, %v1397_v7  ;;  %v1404_v27 = vrot.slane %v1390_v18, %v3789_v21  ;;  %v3295_v13 = vcombine.low %v2483_v63, %v2483_v63 }
  0x91   : > { %v555_v56 = vrot.slane %v231_v2, %v3789_v21  ;;  %v3296_v14 = vcombine.high %v2483_v63, %v2483_v63  ;;  %v3638_v2 = vld [vmem:[%s4367_s1 + $0x110] sm:$0xff]  }
  0x92   : > { %v3646_v63 = vld [vmem:[%s4367_s1 + $0x150] sm:$0xff]  }
  0x93   : > { %v556_v61 = vcombine.high %v555_v56, %v555_v56  ;;  %v582_v10 = vsel %vm388_vm4, %v555_v56, 0 }
  0x94   : > { %356 = vrot.lane.b32.xlu0 %v353_v19, %s3720_s10  ;;  %1408 = vrot.lane.b32.xlu1 %v1405_v20, %s3721_s11  ;;  %v1021_v20 = vcombine.low %v1010_v4, %v1018_v5  ;;  %v3656_v4 = vld [vmem:[%s4367_s1] sm:$0xff]  }
  0x95   : > { %v3650_v5 = vld [vmem:[%s4367_s1 + $0x160] sm:$0xff]  }
  0x98   : > { %1410 = vrot.lane.b32.xlu0 %v1404_v27, %s3721_s11  ;;  %1919 = vrot.lane.b32.xlu1 %v1918_v8, %s3722_s12  ;;  %v2497_v8 = vpack.i.b16 %v3296_v14, %v3296_v14  ;;  %s3730_s12 = smov 34   ;;  %v3661_v14 = vld [vmem:[%s4367_s1 + $0x18] sm:$0xff]  }
  0x9a   : > { %v2502_v38 = vrot.slane %v2497_v8, %v3785_v15 }
  0x9c   : > { %1706 = vrot.lane.b32.xlu1 %v1703_v31, %s3723_s13  ;;  %1704 = vrot.lane.b32.xlu0 %v1695_v25, %s3723_s13  ;;  %v2490_v25 = vpack.i.b16 %v3295_v13, %v3295_v13  ;;  %v700_v31 = vld [vmem:[%s3809_s5] sm:$0x3f]  ;;  %v3654_v13 = vld [vmem:[%s4367_s1 + $0x170] sm:$0xff]  }
  0xa0   : > { %731 = vrot.lane.b32.xlu1 %v730_v33, %s3724_s14  ;;  %1708 = vrot.lane.b32.xlu0 %v1702_v34, %s3723_s13  ;;  %v1028_v33 = vrot.slane %v1021_v20, %v3789_v21  ;;  %s3732_s14 = smov 112  }
  0xa4   : > { %2217 = vrot.lane.b32.xlu0 %v2216_v36, %s3726_s17  ;;  %v2495_v36 = vrot.slane %v2490_v25, %v3785_v15  ;;  %s3731_s17 = smov 95  }
  0xa6   : > { %v2505_v46 = vcombine.low %v2495_v36, %v2502_v38 }
  0xa8   : > { %v2512_v51 = vrot.slane %v2505_v46, %v3789_v21 }
  0xfe   : > { %v355_v43 = vpop.permute.xlu1 %354 }
 0x102   : > { %v1407_v47 = vpop.permute.xlu0 %1406  ;;  %v359_v48 = vpop.permute.xlu1 %358 }
 0x106   : > { %v357_v52 = vpop.permute.xlu0 %356  ;;  %v1409_v53 = vpop.permute.xlu1 %1408 }
 0x107   : > { %v362_v57 = vsel %vm360_vm3, %v357_v52, %v359_v48  ;;  %v361_v58 = vsel %vm360_vm3, %v355_v43, %v357_v52  ;;  %v1413_v62 = vsel %vm1412_vm5, %v1407_v47, %v1409_v53  ;;  %v2184_v43 = vld [vmem:[%s3809_s5] sm:$0x3f]  ;;  %v3643_v48 = vld [vmem:[%s4367_s1 + $0x50] sm:$0xff]  }
 0x108   : > { %3059 = vmatprep.subr.msk.bf16.mxu1 %vm388_vm4, %v362_v57  ;;  %v390_v59 = vsel %vm388_vm4, %v361_v58, 0  ;;  %v3871_v12 = vsel %vm388_vm4, %v1413_v62, 0  ;;  %v3640_v57 = vld [vmem:[%s4367_s1 + $0x118] sm:$0xff]   ;;  %v3647_v58 = vld [vmem:[%s4367_s1 + $0x60] sm:$0xff]   ;;  %v3651_v62 = vld [vmem:[%s4367_s1 + $0x70] sm:$0xff]  }
 0x109   : > { %396 = vmatpush1.bf16.msra.mxu1 %v390_v59  ;;  %v3642_v59 = vld [vmem:[%s4367_s1 + $0x140] sm:$0xff]  }
 0x10a   : > { %v1411_v0 = vpop.permute.xlu0 %1410  ;;  %v1920_v1 = vpop.permute.xlu1 %1919  ;;  %3076 = vmatprep.subr.msk.bf16.mxu1 %vm388_vm4, %v556_v61  ;;  %v3644_v61 = vld [vmem:[%s4367_s1 + $0x148] sm:$0xff]  }
 0x10b   : > { %v1921_v7 = vrot.slane %v1920_v1, 6  ;;  %v3865_v9 = vsel %vm1412_vm5, %v1409_v53, %v1411_v0  ;;  %v3653_v0 = vld [vmem:[%s4367_s1 + $0x78] sm:$0xff]  }
 0x10c   : > { %3181 = vmatprep.subr.msk.bf16.mxu0 %vm388_vm4, %v3865_v9  ;;  %3060 = vmatmul.mubr.msk.bf16.vlgmr.msra.gmra.mrb[0].mxu1 %vm363_vm7, %v3639_v60  ;;  %v3649_v60 = vld [vmem:[%s4367_s1 + $0x68] sm:$0xff]  }
 0x10d   : > { %v1923_v16 = vsel %vm1922_vm6, %v1921_v7, %v1920_v1  ;;  %1446 = vmatpush1.bf16.msra.mxu0 %v3871_v12  ;;  %437 = vmatprep.mubr.bf16.mxu1 %v3725_v37  ;;  %v3648_v1 = vld [vmem:[%s4367_s1 + $0x158] sm:$0xff]   ;;  %v3652_v7 = vld [vmem:[%s4367_s1 + $0x168] sm:$0xff]  }
 0x10e   : > { %v1925_v17 = vmul.bf16 %v1923_v16, %v1888_v6  ;;  %v1707_v18 = vpop.permute.xlu1 %1706  ;;  %v1705_v19 = vpop.permute.xlu0 %1704  ;;  %588 = vmatpush1.bf16.msra.mxu1 %v582_v10  ;;  %v3657_v6 = vld [vmem:[%s4367_s1 + $0x8] sm:$0xff]   ;;  %v3660_v10 = vld [vmem:[%s4367_s1 + $0x10] sm:$0xff]   ;;  %v3663_v16 = vld [vmem:[%s4367_s1 + $0x20] sm:$0xff]  }
 0x10f   : > { %v1711_v22 = vsel %vm1710_vm8, %v1705_v19, %v1707_v18  ;;  %v3669_v19 = vld [vmem:[%s4367_s1 + $0x38] sm:$0xff]  }
 0x110   : > { %v1984_v23 = vcombine.high %v1925_v17, %v1925_v17  ;;  %v1991_v24 = vrot.slane %v1925_v17, %v3789_v21  ;;  %3182 = vmatmul.mubr.msk.bf16.vlgmr.msra.gmra.mrb[0].mxu0 %vm363_vm7, %v3636_v11  ;;  %v1738_v29 = vsel %vm388_vm4, %v1711_v22, 0  ;;  %v3655_v11 = vld [vmem:[%s4367_s1 + $0x178] sm:$0xff]   ;;  %v3665_v17 = vld [vmem:[%s4367_s1 + $0x28] sm:$0xff]  }
 0x111   : > { %1487 = vmatprep.mubr.bf16.mxu0 %v3725_v37 }
 0x112   : > { %2000 = vrot.lane.b32.xlu1 %v1991_v24, %s3727_s28  ;;  %v732_v27 = vpop.permute.xlu1 %731  ;;  %v1999_v28 = vcombine.high %v1991_v24, %v1991_v24  ;;  %v1709_v30 = vpop.permute.xlu0 %1708  ;;  %v1998_v35 = vrot.slane %v1984_v23, %v3789_v21 }
 0x113   : > { %v733_v32 = vrot.slane %v732_v27, 6  ;;  %v1712_v34 = vsel %vm1710_vm8, %v1707_v18, %v1709_v30  ;;  %v3667_v18 = vld [vmem:[%s4367_s1 + $0x30] sm:$0xff]  }
 0x114   : > { %2002 = vrot.lane.b32.xlu0 %v1999_v28, %s3727_s28  ;;  %3216 = vmatprep.subr.msk.bf16.mxu0 %vm388_vm4, %v1712_v34  ;;  %v996_v28 = vld [vmem:[%s3809_s5] sm:$0x3f] }
 0x115   : > { %v735_v40 = vsel %vm734_vm9, %v733_v32, %v732_v27  ;;  %1744 = vmatpush1.bf16.msra.mxu0 %v1738_v29  ;;  %3061 = vmatmul.mubr.msk.bf16.gmra.mrb[4].mxu1 %vm363_vm7, %v3641_v26  ;;  %v3658_v27 = vld [vmem:[%s4367_s1 + $0x180] sm:$0xff]  }
 0x116   : > { %v737_v41 = vmul.bf16 %v735_v40, %v700_v31  ;;  %2004 = vrot.lane.b32.xlu1 %v1998_v35, %s3727_s28  ;;  %v2218_v42 = vpop.permute.xlu0 %2217  ;;  %447 = vmatprep.mubr.bf16.mxu1 %v3725_v37 }
 0x117   : > { %v2219_v44 = vrot.slane %v2218_v42, 6 }
 0x118   : > { %v796_v45 = vcombine.high %v737_v41, %v737_v41  ;;  %v803_v15 = vrot.slane %v737_v41, %v3789_v21  ;;  %1029 = vrot.lane.b32.xlu0 %v1028_v33, %s3728_s6  ;;  %3183 = vmatmul.mubr.msk.bf16.gmra.mrb[4].mxu0 %vm363_vm7, %v3637_v39 }
 0x119   : > { %1497 = vmatprep.mubr.bf16.mxu0 %v3725_v37  ;;  %v2221_v47 = vsel %vm2220_vm10, %v2219_v44, %v2218_v42  ;;  %v2482_v44 = vld [vmem:[%s3809_s5] sm:$0x3f]  ;;  %s3733_s5 = smov 94  }
 0x11a   : > { %v811_v49 = vcombine.high %v803_v15, %v803_v15  ;;  %812 = vrot.lane.b32.xlu1 %v803_v15, %s3729_s9  ;;  %v810_v50 = vrot.slane %v796_v45, %v3789_v21  ;;  %v2223_v3 = vmul.bf16 %v2221_v47, %v2184_v43  ;;  %v3659_v43 = vld [vmem:[%s4367_s1 + $0x188] sm:$0xff]   ;;  %v3671_v15 = vld [vmem:[%s4367_s1 + $0x80] sm:$0xff]  }
 0x11c   : > { %814 = vrot.lane.b32.xlu0 %v811_v49, %s3729_s9  ;;  %v2282_v52 = vcombine.high %v2223_v3, %v2223_v3  ;;  %v2289_v53 = vrot.slane %v2223_v3, %v3789_v21 }
 0x11d   : > { %3062 = vmatmul.mubr.msk.bf16.gmra.mrb[8].mxu1 %vm363_vm7, %v3643_v48 }
 0x11e   : > { %816 = vrot.lane.b32.xlu1 %v810_v50, %s3729_s9  ;;  %457 = vmatprep.mubr.bf16.mxu1 %v3725_v37  ;;  %v2297_v54 = vcombine.high %v2289_v53, %v2289_v53  ;;  %v2296_v56 = vrot.slane %v2282_v52, %v3789_v21 }
 0x120   : > { %2513 = vrot.lane.b32.xlu0 %v2512_v51, %s3730_s12  ;;  %3184 = vmatmul.mubr.msk.bf16.gmra.mrb[8].mxu0 %vm363_vm7, %v3638_v2 }
 0x121   : > { %1507 = vmatprep.mubr.bf16.mxu0 %v3725_v37 }
 0x122   : > { %2298 = vrot.lane.b32.xlu1 %v2289_v53, %s3731_s17 }
 0x124   : > { %2300 = vrot.lane.b32.xlu0 %v2297_v54, %s3731_s17 }
 0x125   : > { %3063 = vmatmul.mubr.msk.bf16.gmra.mrb[12].mxu1 %vm363_vm7, %v3645_v55 }
 0x126   : > { %2302 = vrot.lane.b32.xlu1 %v2296_v56, %s3731_s17  ;;  %467 = vmatprep.mubr.bf16.mxu1 %v3725_v37 }
 0x128   : > { %3185 = vmatmul.mubr.msk.bf16.gmra.mrb[12].mxu0 %vm363_vm7, %v3640_v57  ;;  %v3662_v57 = vld [vmem:[%s4367_s1 + $0x190] sm:$0xff]  }
 0x129   : > { %1775 = vmatprep.mubr.bf16.mxu0 %v3725_v37 }
 0x12d   : > { %3064 = vmatmul.mubr.msk.bf16.gmra.mrb[16].mxu1 %vm363_vm7, %v3647_v58  ;;  %v3673_v58 = vld [vmem:[%s4367_s1 + $0x88] sm:$0xff]  }
 0x12e   : > { %477 = vmatprep.mubr.bf16.mxu1 %v3725_v37 }
 0x130   : > { %3217 = vmatmul.mubr.msk.bf16.vlgmr.msra.gmra.mrb[0].mxu0 %vm363_vm7, %v3642_v59  ;;  %v3675_v59 = vld [vmem:[%s4367_s1 + $0x90] sm:$0xff]  }
 0x131   : > { %1785 = vmatprep.mubr.bf16.mxu0 %v3725_v37 }
 0x135   : > { %3065 = vmatmul.mubr.msk.bf16.gmra.mrb[20].mxu1 %vm363_vm7, %v3649_v60  ;;  %v3666_v60 = vld [vmem:[%s4367_s1 + $0x1a0] sm:$0xff]  }
 0x136   : > { %487 = vmatprep.mubr.bf16.mxu1 %v3725_v37 }
 0x138   : > { %3218 = vmatmul.mubr.msk.bf16.gmra.mrb[4].mxu0 %vm363_vm7, %v3644_v61  ;;  %v3677_v61 = vld [vmem:[%s4367_s1 + $0x98] sm:$0xff]  }
 0x139   : > { %1795 = vmatprep.mubr.bf16.mxu0 %v3725_v37 }
 0x13d   : > { %3066 = vmatmul.mubr.msk.bf16.gmra.mrb[24].mxu1 %vm363_vm7, %v3651_v62  ;;  %v3668_v62 = vld [vmem:[%s4367_s1 + $0x1a8] sm:$0xff]  }
 0x13e   : > { %497 = vmatprep.mubr.bf16.mxu1 %v3725_v37 }
 0x140   : > { %3219 = vmatmul.mubr.msk.bf16.gmra.mrb[8].mxu0 %vm363_vm7, %v3646_v63  ;;  %v3679_v63 = vld [vmem:[%s4367_s1 + $0xa0] sm:$0xff]  }
 0x141   : > { %1805 = vmatprep.mubr.bf16.mxu0 %v3725_v37 }
 0x145   : > { %3067 = vmatmul.mubr.msk.bf16.gmra.mrb[28].mxu1 %vm363_vm7, %v3653_v0  ;;  %v3670_v0 = vld [vmem:[%s4367_s1 + $0x1b0] sm:$0xff]  }
 0x146   : > { %619 = vmatprep.mubr.bf16.mxu1 %v3725_v37 }
 0x148   : > { %3220 = vmatmul.mubr.msk.bf16.gmra.mrb[12].mxu0 %vm363_vm7, %v3648_v1  ;;  %v3681_v1 = vld [vmem:[%s4367_s1 + $0xa8] sm:$0xff]  }
 0x149   : > { %1815 = vmatprep.mubr.bf16.mxu0 %v3725_v37 }
 0x14d   : > { %3077 = vmatmul.mubr.msk.bf16.vlgmr.msra.gmra.mrb[0].mxu1 %vm363_vm7, %v3656_v4  ;;  %v3672_v4 = vld [vmem:[%s4367_s1 + $0x1b8] sm:$0xff]  }
 0x14e   : > { %629 = vmatprep.mubr.bf16.mxu1 %v3725_v37 }
 0x150   : > { %3221 = vmatmul.mubr.msk.bf16.gmra.mrb[16].mxu0 %vm363_vm7, %v3650_v5  ;;  %v3683_v5 = vld [vmem:[%s4367_s1 + $0xb0] sm:$0xff]  }
 0x151   : > { %1825 = vmatprep.mubr.bf16.mxu0 %v3725_v37 }
 0x155   : > { %3078 = vmatmul.mubr.msk.bf16.gmra.mrb[4].mxu1 %vm363_vm7, %v3657_v6  ;;  %v3674_v6 = vld [vmem:[%s4367_s1 + $0x1c0] sm:$0xff]  }
 0x156   : > { %639 = vmatprep.mubr.bf16.mxu1 %v3725_v37 }
 0x158   : > { %3222 = vmatmul.mubr.msk.bf16.gmra.mrb[20].mxu0 %vm363_vm7, %v3652_v7  ;;  %v3686_v7 = vld [vmem:[%s4367_s1 + $0xb8] sm:$0xff]  }
 0x159   : > { %1835 = vmatprep.mubr.bf16.mxu0 %v3725_v37 }
 0x15d   : > { %3079 = vmatmul.mubr.msk.bf16.gmra.mrb[8].mxu1 %vm363_vm7, %v3660_v10  ;;  %v3676_v10 = vld [vmem:[%s4367_s1 + $0x1c8] sm:$0xff]  }
 0x15e   : > { %649 = vmatprep.mubr.bf16.mxu1 %v3725_v37 }
 0x160   : > { %3223 = vmatmul.mubr.msk.bf16.gmra.mrb[24].mxu0 %vm363_vm7, %v3654_v13  ;;  %v3678_v13 = vld [vmem:[%s4367_s1 + $0x1d0] sm:$0xff]  }
 0x161   : > { %1845 = vmatprep.mubr.bf16.mxu0 %v3725_v37 }
 0x165   : > { %3080 = vmatmul.mubr.msk.bf16.gmra.mrb[12].mxu1 %vm363_vm7, %v3661_v14  ;;  %v3680_v14 = vld [vmem:[%s4367_s1 + $0x1d8] sm:$0xff]  }
 0x166   : > { %659 = vmatprep.mubr.bf16.mxu1 %v3725_v37 }
 0x168   : > { %3224 = vmatmul.mubr.msk.bf16.gmra.mrb[28].mxu0 %vm363_vm7, %v3655_v11  ;;  %v2778_v11 = vld [vmem:[%s4368_s2] sm:$0xff] }
 0x169   : > { %2071 = vmatprep.mubr.bf16.mxu0 %v3725_v37 }
 0x16d   : > { %3081 = vmatmul.mubr.msk.bf16.gmra.mrb[16].mxu1 %vm363_vm7, %v3663_v16  ;;  %v2779_v16 = vld [vmem:[%s4368_s2 + $0x8] sm:$0xff] }
 0x16e   : > { %669 = vmatprep.mubr.bf16.mxu1 %v3725_v37 }
 0x175   : > { %3082 = vmatmul.mubr.msk.bf16.gmra.mrb[20].mxu1 %vm363_vm7, %v3665_v17  ;;  %v2781_v17 = vld [vmem:[%s4368_s2 + $0x18] sm:$0xff] }
 0x176   : > { %679 = vmatprep.mubr.bf16.mxu1 %v3725_v37 }
 0x17d   : > { %3083 = vmatmul.mubr.msk.bf16.gmra.mrb[24].mxu1 %vm363_vm7, %v3667_v18  ;;  %v2780_v18 = vld [vmem:[%s4368_s2 + $0x10] sm:$0xff] }
 0x17e   : > { %689 = vmatprep.mubr.bf16.mxu1 %v3725_v37 }
 0x184   : > { %v2001_v20 = vpop.permute.xlu1 %2000 }
 0x185   : > { %3084 = vmatmul.mubr.msk.bf16.gmra.mrb[28].mxu1 %vm363_vm7, %v3669_v19  ;;  %v3682_v19 = vld [vmem:[%s4367_s1 + $0x1e0] sm:$0xff]  }
 0x186   : > { %v2003_v22 = vpop.permute.xlu0 %2002  ;;  %883 = vmatprep.mubr.bf16.mxu1 %v3725_v37 }
 0x187   : > { %v2007_v23 = vsel %vm2006_vm11, %v2001_v20, %v2003_v22  ;;  %v2783_v20 = vld [vmem:[%s4368_s2 + $0x28] sm:$0xff] }
 0x188   : > { %v2005_v24 = vpop.permute.xlu1 %2004  ;;  %v2034_v8 = vsel %vm388_vm4, %v2007_v23, 0  ;;  %v2785_v23 = vld [vmem:[%s4368_s2 + $0x38] sm:$0xff] }
 0x189   : > { %v2008_v25 = vsel %vm2006_vm11, %v2003_v22, %v2005_v24  ;;  %v2782_v22 = vld [vmem:[%s4368_s2 + $0x20] sm:$0xff]  ;;  %v2784_v24 = vld [vmem:[%s4368_s2 + $0x30] sm:$0xff] }
 0x18a   : > { %v1030_v26 = vpop.permute.xlu0 %1029  ;;  %3251 = vmatprep.subr.msk.bf16.mxu0 %vm388_vm4, %v2008_v25  ;;  %v3684_v25 = vld [vmem:[%s4367_s1 + $0x1e8] sm:$0xff]  }
 0x18b   : > { %v1031_v29 = vrot.slane %v1030_v26, 6  ;;  %2040 = vmatpush1.bf16.msra.mxu0 %v2034_v8  ;;  %v2787_v8 = vld [vmem:[%s4368_s2 + $0x48] sm:$0xff] }
 0x18c   : > { %v813_v30 = vpop.permute.xlu1 %812 }
 0x18d   : > { %v1033_v31 = vsel %vm1032_vm12, %v1031_v29, %v1030_v26  ;;  %v2786_v26 = vld [vmem:[%s4368_s2 + $0x40] sm:$0xff]  ;;  %v3685_v29 = vld [vmem:[%s4367_s1 + $0x1f0] sm:$0xff]  }
 0x18e   : > { %v1035_v32 = vmul.bf16 %v1033_v31, %v996_v28  ;;  %v815_v33 = vpop.permute.xlu0 %814  ;;  %3252 = vmatmul.mubr.msk.bf16.vlgmr.msra.gmra.mrb[0].mxu0 %vm363_vm7, %v3658_v27  ;;  %v2789_v27 = vld [vmem:[%s4368_s2 + $0x58] sm:$0xff]  ;;  %v2788_v28 = vld [vmem:[%s4368_s2 + $0x50] sm:$0xff]  ;;  %v2790_v31 = vld [vmem:[%s4368_s2 + $0x60] sm:$0xff] }
 0x18f   : > { %2081 = vmatprep.mubr.bf16.mxu0 %v3725_v37  ;;  %v819_v34 = vsel %vm818_vm13, %v813_v30, %v815_v33  ;;  %v2791_v30 = vld [vmem:[%s4368_s2 + $0x68] sm:$0xff] }
 0x190   : > { %v1094_v35 = vcombine.high %v1035_v32, %v1035_v32  ;;  %v1101_v36 = vrot.slane %v1035_v32, %v3789_v21  ;;  %v846_v38 = vsel %vm388_vm4, %v819_v34, 0  ;;  %v817_v39 = vpop.permute.xlu1 %816  ;;  %v2793_v32 = vld [vmem:[%s4368_s2 + $0x78] sm:$0xff] }
 0x191   : > { %v820_v40 = vsel %vm818_vm13, %v815_v33, %v817_v39  ;;  %v2792_v33 = vld [vmem:[%s4368_s2 + $0x70] sm:$0xff]  ;;  %v3688_v34 = vld [vmem:[%s4367_s1 + $0x1f8] sm:$0xff]  }
 0x192   : > { %1110 = vrot.lane.b32.xlu0 %v1101_v36, %s3732_s14  ;;  %v2514_v41 = vpop.permute.xlu0 %2513  ;;  %v1109_v42 = vcombine.high %v1101_v36, %v1101_v36  ;;  %3111 = vmatprep.subr.msk.bf16.mxu1 %vm388_vm4, %v820_v40  ;;  %v1108_v46 = vrot.slane %v1094_v35, %v3789_v21 }
 0x193   : > { %v2515_v45 = vrot.slane %v2514_v41, 6  ;;  %852 = vmatpush1.bf16.msra.mxu1 %v846_v38 }
 0x194   : > { %1112 = vrot.lane.b32.xlu1 %v1109_v42, %s3732_s14  ;;  %v2299_v47 = vpop.permute.xlu1 %2298  ;;  %v3687_v42 = vld [vmem:[%s4367_s1 + $0xc0] sm:$0xff]  }
 0x195   : > { %v2517_v48 = vsel %vm2516_vm14, %v2515_v45, %v2514_v41 }
 0x196   : > { %v2519_v49 = vmul.bf16 %v2517_v48, %v2482_v44  ;;  %1114 = vrot.lane.b32.xlu0 %v1108_v46, %s3732_s14  ;;  %3253 = vmatmul.mubr.msk.bf16.gmra.mrb[4].mxu0 %vm363_vm7, %v3659_v43  ;;  %v2301_v50 = vpop.permute.xlu0 %2300  ;;  %v3689_v48 = vld [vmem:[%s4367_s1 + $0xc8] sm:$0xff]   ;;  %s3332_s14 = sshll.u32 %s4372_s16, 8 }
 0x197   : > { %2091 = vmatprep.mubr.bf16.mxu0 %v3725_v37  ;;  %3112 = vmatmul.mubr.msk.bf16.vlgmr.msra.gmra.mrb[0].mxu1 %vm363_vm7, %v3671_v15  ;;  %v2305_v3 = vsel %vm2304_vm15, %v2299_v47, %v2301_v50  ;;  %s4317_s19 = scalar_lea.vmem %s4370_s4, %s3332_s14 }
 0x198   : > { %v2578_v51 = vcombine.high %v2519_v49, %v2519_v49  ;;  %v2585_v2 = vrot.slane %v2519_v49, %v3789_v21  ;;  %v2332_v52 = vsel %vm388_vm4, %v2305_v3, 0  ;;  %v2303_v53 = vpop.permute.xlu1 %2302  ;;  %893 = vmatprep.mubr.bf16.mxu1 %v3725_v37  ;;  %v3692_v49 = vld [vmem:[%s4367_s1 + $0x208] sm:$0xff]   ;;  %v3694_v3 = vld [vmem:[%s4367_s1 + $0x210] sm:$0xff]  }
 0x199   : > { %v2306_v54 = vsel %vm2304_vm15, %v2301_v50, %v2303_v53  ;;  %v3693_v50 = vld [vmem:[%s4367_s1 + $0xd8] sm:$0xff]   ;;  %v3698_v53 = vld [vmem:[%s4367_s1 + $0x220] sm:$0xff]  }
 0x19a   : > { %2594 = vrot.lane.b32.xlu1 %v2585_v2, %s3733_s5  ;;  %v2593_v55 = vcombine.high %v2585_v2, %v2585_v2  ;;  %v2592_v56 = vrot.slane %v2578_v51, %v3789_v21  ;;  %3286 = vmatprep.subr.msk.bf16.mxu0 %vm388_vm4, %v2306_v54  ;;  %v3664_v21 = vld [vmem:[%s4367_s1 + $0x198] sm:$0xff]   ;;  %v3695_v51 = vld [vmem:[%s4367_s1 + $0xe0] sm:$0xff]   ;;  %v3699_v54 = vld [vmem:[%s4367_s1 + $0xf0] sm:$0xff]  }
 0x19b   : > { %2338 = vmatpush1.bf16.msra.mxu0 %v2332_v52  ;;  %v3696_v2 = vld [vmem:[%s4367_s1 + $0x218] sm:$0xff]   ;;  %v3697_v52 = vld [vmem:[%s4367_s1 + $0xe8] sm:$0xff]  }
 0x19c   : > { %2596 = vrot.lane.b32.xlu0 %v2593_v55, %s3733_s5  ;;  %v3700_v55 = vld [vmem:[%s4367_s1 + $0x228] sm:$0xff]  }
 0x19e   : > { %2598 = vrot.lane.b32.xlu1 %v2592_v56, %s3733_s5  ;;  %3254 = vmatmul.mubr.msk.bf16.gmra.mrb[8].mxu0 %vm363_vm7, %v3662_v57  ;;  %v3701_v56 = vld [vmem:[%s4367_s1 + $0xf8] sm:$0xff]   ;;  %v3702_v57 = vld [vmem:[%s4367_s1 + $0x230] sm:$0xff]  }
 0x19f   : > { %2101 = vmatprep.mubr.bf16.mxu0 %v3725_v37  ;;  %3113 = vmatmul.mubr.msk.bf16.gmra.mrb[4].mxu1 %vm363_vm7, %v3673_v58  ;;  %v3703_v58 = vld [vmem:[%s4367_s1 + $0x120] sm:$0xff]  }
 0x1a0   : > { %903 = vmatprep.mubr.bf16.mxu1 %v3725_v37  ;;  %2796 = vperm.xlu0 %3618, %v2778_v11  }
 0x1a2   : > { %2801 = vperm.xlu1 %3619, %v2779_v16  }
 0x1a4   : > { %2811 = vperm.xlu0 %3618, %v2781_v17  }
 0x1a6   : > { %3255 = vmatmul.mubr.msk.bf16.gmra.mrb[12].mxu0 %vm363_vm7, %v3664_v21  ;;  %2806 = vperm.xlu1 %3619, %v2780_v18   ;;  %v3704_v21 = vld [vmem:[%s4367_s1 + $0x238] sm:$0xff]  }
 0x1a7   : > { %2111 = vmatprep.mubr.bf16.mxu0 %v3725_v37  ;;  %3114 = vmatmul.mubr.msk.bf16.gmra.mrb[8].mxu1 %vm363_vm7, %v3675_v59  ;;  %v3705_v59 = vld [vmem:[%s4367_s1 + $0x128] sm:$0xff]  }
 0x1a8   : > { %913 = vmatprep.mubr.bf16.mxu1 %v3725_v37  ;;  %2821 = vperm.xlu0 %3618, %v2783_v20  }
 0x1aa   : > { %2816 = vperm.xlu1 %3619, %v2782_v22  }
 0x1ac   : > { %2831 = vperm.xlu0 %3618, %v2785_v23  }
 0x1ae   : > { %3256 = vmatmul.mubr.msk.bf16.gmra.mrb[16].mxu0 %vm363_vm7, %v3666_v60  ;;  %2826 = vperm.xlu1 %3619, %v2784_v24   ;;  %v3706_v60 = vld [vmem:[%s4367_s1 + $0x130] sm:$0xff]  }
 0x1af   : > { %2121 = vmatprep.mubr.bf16.mxu0 %v3725_v37  ;;  %3115 = vmatmul.mubr.msk.bf16.gmra.mrb[12].mxu1 %vm363_vm7, %v3677_v61  ;;  %v3707_v61 = vld [vmem:[%s4367_s1 + $0x138] sm:$0xff]  }
 0x1b0   : > { %923 = vmatprep.mubr.bf16.mxu1 %v3725_v37  ;;  %2841 = vperm.xlu0 %3618, %v2787_v8  }
 0x1b2   : > { %2836 = vperm.xlu1 %3619, %v2786_v26  }
 0x1b4   : > { %2851 = vperm.xlu0 %3618, %v2789_v27  }
 0x1b6   : > { %3257 = vmatmul.mubr.msk.bf16.gmra.mrb[20].mxu0 %vm363_vm7, %v3668_v62  ;;  %2846 = vperm.xlu1 %3619, %v2788_v28  }
 0x1b7   : > { %2131 = vmatprep.mubr.bf16.mxu0 %v3725_v37  ;;  %3116 = vmatmul.mubr.msk.bf16.gmra.mrb[16].mxu1 %vm363_vm7, %v3679_v63 }
 0x1b8   : > { %933 = vmatprep.mubr.bf16.mxu1 %v3725_v37  ;;  %2861 = vperm.xlu0 %3618, %v2791_v30  }
 0x1ba   : > { %2856 = vperm.xlu1 %3619, %v2790_v31  }
 0x1bc   : > { %2871 = vperm.xlu0 %3618, %v2793_v32  }
 0x1be   : > { %3258 = vmatmul.mubr.msk.bf16.gmra.mrb[24].mxu0 %vm363_vm7, %v3670_v0  ;;  %2866 = vperm.xlu1 %3619, %v2792_v33  }
 0x1bf   : > { %2141 = vmatprep.mubr.bf16.mxu0 %v3725_v37  ;;  %3117 = vmatmul.mubr.msk.bf16.gmra.mrb[20].mxu1 %vm363_vm7, %v3681_v1 }
 0x1c0   : > { %943 = vmatprep.mubr.bf16.mxu1 %v3725_v37 }
 0x1c6   : > { %3259 = vmatmul.mubr.msk.bf16.gmra.mrb[28].mxu0 %vm363_vm7, %v3672_v4 }
 0x1c7   : > { %2369 = vmatprep.mubr.bf16.mxu0 %v3725_v37  ;;  %3118 = vmatmul.mubr.msk.bf16.gmra.mrb[24].mxu1 %vm363_vm7, %v3683_v5 }
 0x1c8   : > { %953 = vmatprep.mubr.bf16.mxu1 %v3725_v37 }
 0x1ce   : > { %3287 = vmatmul.mubr.msk.bf16.vlgmr.msra.gmra.mrb[0].mxu0 %vm363_vm7, %v3674_v6 }
 0x1cf   : > { %2379 = vmatprep.mubr.bf16.mxu0 %v3725_v37  ;;  %3119 = vmatmul.mubr.msk.bf16.gmra.mrb[28].mxu1 %vm363_vm7, %v3686_v7 }
 0x1d0   : > { %1181 = vmatprep.mubr.bf16.mxu1 %v3725_v37 }
 0x1d6   : > { %3288 = vmatmul.mubr.msk.bf16.gmra.mrb[4].mxu0 %vm363_vm7, %v3676_v10 }
 0x1d7   : > { %2389 = vmatprep.mubr.bf16.mxu0 %v3725_v37 }
 0x1de   : > { %3289 = vmatmul.mubr.msk.bf16.gmra.mrb[8].mxu0 %vm363_vm7, %v3678_v13 }
 0x1df   : > { %2399 = vmatprep.mubr.bf16.mxu0 %v3725_v37 }
 0x1e6   : > { %3290 = vmatmul.mubr.msk.bf16.gmra.mrb[12].mxu0 %vm363_vm7, %v3680_v14 }
 0x1e7   : > { %2409 = vmatprep.mubr.bf16.mxu0 %v3725_v37 }
 0x1ee   : > { %3291 = vmatmul.mubr.msk.bf16.gmra.mrb[16].mxu0 %vm363_vm7, %v3682_v19 }
 0x1ef   : > { %2419 = vmatprep.mubr.bf16.mxu0 %v3725_v37 }
 0x1f6   : > { %3292 = vmatmul.mubr.msk.bf16.gmra.mrb[20].mxu0 %vm363_vm7, %v3684_v25 }
 0x1f7   : > { %2429 = vmatprep.mubr.bf16.mxu0 %v3725_v37 }
 0x1fe   : > { %3293 = vmatmul.mubr.msk.bf16.gmra.mrb[24].mxu0 %vm363_vm7, %v3685_v29 }
 0x1ff   : > { %2439 = vmatprep.mubr.bf16.mxu0 %v3725_v37 }
 0x204   : > { %v1111_v35 = vpop.permute.xlu0 %1110 }
 0x206   : > { %v1113_v36 = vpop.permute.xlu1 %1112  ;;  %3294 = vmatmul.mubr.msk.bf16.gmra.mrb[28].mxu0 %vm363_vm7, %v3688_v34 }
 0x207   : > { %v1117_v38 = vsel %vm1116_vm0, %v1111_v35, %v1113_v36  ;;  %2665 = vmatprep.mubr.bf16.mxu0 %v3725_v37 }
 0x208   : > { %v1115_v39 = vpop.permute.xlu0 %1114  ;;  %v1144_v41 = vsel %vm388_vm4, %v1117_v38, 0 }
 0x209   : > { %v1118_v40 = vsel %vm1116_vm0, %v1113_v36, %v1115_v39 }
 0x20a   : > { %3146 = vmatprep.subr.msk.bf16.mxu1 %vm388_vm4, %v1118_v40 }
 0x20b   : > { %1150 = vmatpush1.bf16.msra.mxu1 %v1144_v41 }
 0x20c   : > { %v2595_v43 = vpop.permute.xlu1 %2594  ;;  %3333 = vmatprep.subr.msk.bf16.mxu1 %vm388_vm4, %v3865_v9  ;;  %v3690_v9 = vld [vmem:[%s4367_s1 + $0x200] sm:$0xff]  }
 0x20e   : > { %3147 = vmatmul.mubr.msk.bf16.vlgmr.msra.gmra.mrb[0].mxu1 %vm363_vm7, %v3687_v42  ;;  %v2597_v44 = vpop.permute.xlu0 %2596 }
 0x20f   : > { %3334 = vmatpush1.bf16.msra.mxu1 %v3871_v12  ;;  %v2601_v45 = vsel %vm2600_vm1, %v2595_v43, %v2597_v44  ;;  %1191 = vmatprep.mubr.bf16.mxu1 %v3725_v37  ;;  %v3691_v12 = vld [vmem:[%s4367_s1 + $0xd0] sm:$0xff]  }
 0x210   : > { %v2628_v15 = vsel %vm388_vm4, %v2601_v45, 0  ;;  %v2599_v46 = vpop.permute.xlu1 %2598 }
 0x211   : > { %v2602_v47 = vsel %vm2600_vm1, %v2597_v44, %v2599_v46 }
 0x212   : > { %3321 = vmatprep.subr.msk.bf16.mxu0 %vm388_vm4, %v2602_v47 }
 0x213   : > { %2634 = vmatpush1.bf16.msra.mxu0 %v2628_v15 }
 0x216   : > { %3148 = vmatmul.mubr.msk.bf16.gmra.mrb[4].mxu1 %vm363_vm7, %v3689_v48  ;;  %3322 = vmatmul.mubr.msk.bf16.vlgmr.msra.gmra.mrb[0].mxu0 %vm363_vm7, %v3690_v9 }
 0x217   : > { %1201 = vmatprep.mubr.bf16.mxu1 %v3725_v37  ;;  %2675 = vmatprep.mubr.bf16.mxu0 %v3725_v37 }
 0x21e   : > { %3149 = vmatmul.mubr.msk.bf16.gmra.mrb[8].mxu1 %vm363_vm7, %v3691_v12  ;;  %3323 = vmatmul.mubr.msk.bf16.gmra.mrb[4].mxu0 %vm363_vm7, %v3692_v49 }
 0x21f   : > { %1211 = vmatprep.mubr.bf16.mxu1 %v3725_v37  ;;  %2685 = vmatprep.mubr.bf16.mxu0 %v3725_v37  ;;  %v2797_v4 = vpop.permute.xlu0 %2796 }
 0x221   : > { %v2802_v5 = vpop.permute.xlu1 %2801 }
 0x223   : > { %v2812_v29 = vpop.permute.xlu0 %2811 }
 0x225   : > { %v2807_v28 = vpop.permute.xlu1 %2806 }
 0x226   : > { %3150 = vmatmul.mubr.msk.bf16.gmra.mrb[12].mxu1 %vm363_vm7, %v3693_v50  ;;  %3324 = vmatmul.mubr.msk.bf16.gmra.mrb[8].mxu0 %vm363_vm7, %v3694_v3 }
 0x227   : > { %1221 = vmatprep.mubr.bf16.mxu1 %v3725_v37  ;;  %2695 = vmatprep.mubr.bf16.mxu0 %v3725_v37  ;;  %v2822_v49 = vpop.permute.xlu0 %2821 }
 0x229   : > { %v2817_v12 = vpop.permute.xlu1 %2816 }
 0x22e   : > { %3151 = vmatmul.mubr.msk.bf16.gmra.mrb[16].mxu1 %vm363_vm7, %v3695_v51  ;;  %3325 = vmatmul.mubr.msk.bf16.gmra.mrb[12].mxu0 %vm363_vm7, %v3696_v2 }
 0x22f   : > { %1231 = vmatprep.mubr.bf16.mxu1 %v3725_v37  ;;  %2705 = vmatprep.mubr.bf16.mxu0 %v3725_v37 }
 0x236   : > { %3152 = vmatmul.mubr.msk.bf16.gmra.mrb[20].mxu1 %vm363_vm7, %v3697_v52  ;;  %3326 = vmatmul.mubr.msk.bf16.gmra.mrb[16].mxu0 %vm363_vm7, %v3698_v53 }
 0x237   : > { %1241 = vmatprep.mubr.bf16.mxu1 %v3725_v37  ;;  %2715 = vmatprep.mubr.bf16.mxu0 %v3725_v37 }
 0x23e   : > { %3153 = vmatmul.mubr.msk.bf16.gmra.mrb[24].mxu1 %vm363_vm7, %v3699_v54  ;;  %3327 = vmatmul.mubr.msk.bf16.gmra.mrb[20].mxu0 %vm363_vm7, %v3700_v55 }
 0x23f   : > { %1251 = vmatprep.mubr.bf16.mxu1 %v3725_v37  ;;  %2725 = vmatprep.mubr.bf16.mxu0 %v3725_v37 }
 0x246   : > { %3154 = vmatmul.mubr.msk.bf16.gmra.mrb[28].mxu1 %vm363_vm7, %v3701_v56  ;;  %3328 = vmatmul.mubr.msk.bf16.gmra.mrb[24].mxu0 %vm363_vm7, %v3702_v57 }
 0x247   : > { %1517 = vmatprep.mubr.bf16.mxu1 %v3725_v37  ;;  %2735 = vmatprep.mubr.bf16.mxu0 %v3725_v37 }
 0x24e   : > { %3186 = vmatmul.mubr.msk.bf16.vlgmr.msra.gmra.mrb[16].mxu1 %vm363_vm7, %v3703_v58  ;;  %3329 = vmatmul.mubr.msk.bf16.gmra.mrb[28].mxu0 %vm363_vm7, %v3704_v21 }
 0x24f   : > { %1527 = vmatprep.mubr.bf16.mxu1 %v3725_v37 }
 0x256   : > { %3187 = vmatmul.mubr.msk.bf16.gmra.mrb[20].mxu1 %vm363_vm7, %v3705_v59 }
 0x257   : > { %1537 = vmatprep.mubr.bf16.mxu1 %v3725_v37 }
 0x25e   : > { %3188 = vmatmul.mubr.msk.bf16.gmra.mrb[24].mxu1 %vm363_vm7, %v3706_v60 }
 0x25f   : > { %1547 = vmatprep.mubr.bf16.mxu1 %v3725_v37 }
 0x266   : > { %3189 = vmatmul.mubr.msk.bf16.gmra.mrb[28].mxu1 %vm363_vm7, %v3707_v61 }
 0x2e1   : > { %v1183_v62 = vpop.f32.mrb[0].mxu1 }
 0x2e2   : > { %v1185_v63 = vpop.f32.mrb[1].mxu1 }
 0x2e3   : > { %v1187_v0 = vpop.f32.mrb[2].mxu1 }
 0x2e4   : > { %v1189_v1 = vpop.f32.mrb[3].mxu1 }
 0x2e9   : > { %v1193_v6 = vpop.f32.mrb[4].mxu1  ;;  %v2667_v7 = vpop.f32.mrb[0].mxu0 }
 0x2ea   : > { %v3335_v10 = vadd.f32 %v2667_v7, %v1183_v62  ;;  %v1195_v13 = vpop.f32.mrb[5].mxu1  ;;  %v2669_v14 = vpop.f32.mrb[1].mxu0 }
 0x2eb   : > { %v3336_v11 = vadd.f32 %v2669_v14, %v1185_v63  ;;  %v1197_v37 = vpop.f32.mrb[6].mxu1  ;;  %v2671_v16 = vpop.f32.mrb[2].mxu0 }
 0x2ec   : > { %v2874_v17 = vadd.f32 %v3335_v10, %v2797_v4  ;;  %v3337_v18 = vadd.f32 %v2671_v16, %v1187_v0  ;;  %v1199_v19 = vpop.f32.mrb[7].mxu1  ;;  %v2673_v20 = vpop.f32.mrb[3].mxu0 }
 0x2ed   : > { %v2875_v22 = vadd.f32 %v3336_v11, %v2797_v4  ;;  %v3338_v23 = vadd.f32 %v2673_v20, %v1189_v1  ;;  %v2827_v7 = vpop.permute.xlu1 %2826 }
 0x2ee   : > { %v2906_v24 = vmax.f32 %v2874_v17, 0.0  ;;  %v2876_v25 = vadd.f32 %v3337_v18, %v2802_v5 }
 0x2ef   : > { %v2907_v8 = vmax.f32 %v2875_v22, 0.0  ;;  %v2877_v26 = vadd.f32 %v3338_v23, %v2802_v5 }
 0x2f0   : > { %2938 = vst [vmem:[%s4317_s19] sm:$0xff] %v2906_v24  ;;  %v2908_v27 = vmax.f32 %v2876_v25, 0.0 }
 0x2f1   : > { %2939 = vst [vmem:[%s4317_s19 + $0x8] sm:$0xff] %v2907_v8  ;;  %v2909_v30 = vmax.f32 %v2877_v26, 0.0  ;;  %v1203_v31 = vpop.f32.mrb[8].mxu1  ;;  %v2677_v32 = vpop.f32.mrb[4].mxu0 }
 0x2f2   : > { %2940 = vst [vmem:[%s4317_s19 + $0x10] sm:$0xff] %v2908_v27  ;;  %v3339_v33 = vadd.f32 %v2677_v32, %v1193_v6  ;;  %v1205_v34 = vpop.f32.mrb[9].mxu1  ;;  %v2679_v35 = vpop.f32.mrb[5].mxu0 }
 0x2f3   : > { %2941 = vst [vmem:[%s4317_s19 + $0x18] sm:$0xff] %v2909_v30  ;;  %v3340_v36 = vadd.f32 %v2679_v35, %v1195_v13  ;;  %v2681_v38 = vpop.f32.mrb[6].mxu0  ;;  %v1207_v39 = vpop.f32.mrb[10].mxu1 }
 0x2f4   : > { %v3341_v40 = vadd.f32 %v2681_v38, %v1197_v37  ;;  %v2878_v41 = vadd.f32 %v3339_v33, %v2807_v28  ;;  %v1209_v42 = vpop.f32.mrb[11].mxu1  ;;  %v2683_v43 = vpop.f32.mrb[7].mxu0 }
 0x2f5   : > { %v2879_v44 = vadd.f32 %v3340_v36, %v2807_v28  ;;  %v3342_v45 = vadd.f32 %v2683_v43, %v1199_v19  ;;  %v2832_v37 = vpop.permute.xlu0 %2831 }
 0x2f6   : > { %v2910_v15 = vmax.f32 %v2878_v41, 0.0  ;;  %v2880_v46 = vadd.f32 %v3341_v40, %v2812_v29  ;;  %v2837_v40 = vpop.permute.xlu1 %2836 }
 0x2f7   : > { %v2911_v47 = vmax.f32 %v2879_v44, 0.0  ;;  %v2881_v48 = vadd.f32 %v3342_v45, %v2812_v29 }
 0x2f8   : > { %2942 = vst [vmem:[%s4317_s19 + $0x20] sm:$0xff] %v2910_v15  ;;  %v2912_v9 = vmax.f32 %v2880_v46, 0.0 }
 0x2f9   : > { %2943 = vst [vmem:[%s4317_s19 + $0x28] sm:$0xff] %v2911_v47  ;;  %v2913_v50 = vmax.f32 %v2881_v48, 0.0  ;;  %v1213_v3 = vpop.f32.mrb[12].mxu1  ;;  %v2687_v51 = vpop.f32.mrb[8].mxu0 }
 0x2fa   : > { %2944 = vst [vmem:[%s4317_s19 + $0x30] sm:$0xff] %v2912_v9  ;;  %v3343_v2 = vadd.f32 %v2687_v51, %v1203_v31  ;;  %v1215_v52 = vpop.f32.mrb[13].mxu1  ;;  %v2689_v53 = vpop.f32.mrb[9].mxu0 }
 0x2fb   : > { %2945 = vst [vmem:[%s4317_s19 + $0x38] sm:$0xff] %v2913_v50  ;;  %v3344_v54 = vadd.f32 %v2689_v53, %v1205_v34  ;;  %v2691_v55 = vpop.f32.mrb[10].mxu0  ;;  %v1217_v56 = vpop.f32.mrb[14].mxu1 }
 0x2fc   : > { %v3345_v57 = vadd.f32 %v2691_v55, %v1207_v39  ;;  %v2882_v58 = vadd.f32 %v3343_v2, %v2817_v12  ;;  %v1219_v21 = vpop.f32.mrb[15].mxu1  ;;  %v2693_v59 = vpop.f32.mrb[11].mxu0 }
 0x2fd   : > { %v2883_v60 = vadd.f32 %v3344_v54, %v2817_v12  ;;  %v3346_v61 = vadd.f32 %v2693_v59, %v1209_v42  ;;  %v2842_v51 = vpop.permute.xlu0 %2841 }
 0x2fe   : > { %v2914_v62 = vmax.f32 %v2882_v58, 0.0  ;;  %v2884_v63 = vadd.f32 %v3345_v57, %v2822_v49 }
 0x2ff   : > { %v2915_v0 = vmax.f32 %v2883_v60, 0.0  ;;  %v2885_v1 = vadd.f32 %v3346_v61, %v2822_v49  ;;  %v2847_v60 = vpop.permute.xlu1 %2846 }
 0x300   : > { %2946 = vst [vmem:[%s4317_s19 + $0x40] sm:$0xff] %v2914_v62  ;;  %v2916_v4 = vmax.f32 %v2884_v63, 0.0 }
 0x301   : > { %2947 = vst [vmem:[%s4317_s19 + $0x48] sm:$0xff] %v2915_v0  ;;  %v2917_v5 = vmax.f32 %v2885_v1, 0.0  ;;  %v2697_v6 = vpop.f32.mrb[12].mxu0 }
 0x302   : > { %2948 = vst [vmem:[%s4317_s19 + $0x50] sm:$0xff] %v2916_v4  ;;  %v3347_v10 = vadd.f32 %v2697_v6, %v1213_v3  ;;  %v2699_v13 = vpop.f32.mrb[13].mxu0 }
 0x303   : > { %2949 = vst [vmem:[%s4317_s19 + $0x58] sm:$0xff] %v2917_v5  ;;  %v3348_v14 = vadd.f32 %v2699_v13, %v1215_v52  ;;  %v2701_v11 = vpop.f32.mrb[14].mxu0  ;;  %v2852_v5 = vpop.permute.xlu0 %2851 }
 0x304   : > { %v3349_v16 = vadd.f32 %v2701_v11, %v1217_v56  ;;  %v2886_v17 = vadd.f32 %v3347_v10, %v2827_v7  ;;  %v2703_v18 = vpop.f32.mrb[15].mxu0 }
 0x305   : > { %v2887_v19 = vadd.f32 %v3348_v14, %v2827_v7  ;;  %v3350_v20 = vadd.f32 %v2703_v18, %v1219_v21 }
 0x306   : > { %v2918_v22 = vmax.f32 %v2886_v17, 0.0  ;;  %v2888_v23 = vadd.f32 %v3349_v16, %v2832_v37 }
 0x307   : > { %v2919_v24 = vmax.f32 %v2887_v19, 0.0  ;;  %v2889_v25 = vadd.f32 %v3350_v20, %v2832_v37  ;;  %v2857_v19 = vpop.permute.xlu1 %2856 }
 0x308   : > { %2950 = vst [vmem:[%s4317_s19 + $0x60] sm:$0xff] %v2918_v22  ;;  %v2920_v8 = vmax.f32 %v2888_v23, 0.0 }
 0x309   : > { %2951 = vst [vmem:[%s4317_s19 + $0x68] sm:$0xff] %v2919_v24  ;;  %v2921_v26 = vmax.f32 %v2889_v25, 0.0  ;;  %v2707_v27 = vpop.f32.mrb[16].mxu0 }
 0x30a   : > { %2952 = vst [vmem:[%s4317_s19 + $0x70] sm:$0xff] %v2920_v8  ;;  %v2709_v28 = vpop.f32.mrb[17].mxu0 }
 0x30b   : > { %2953 = vst [vmem:[%s4317_s19 + $0x78] sm:$0xff] %v2921_v26  ;;  %v2711_v29 = vpop.f32.mrb[18].mxu0  ;;  %v2862_v26 = vpop.permute.xlu0 %2861 }
 0x30c   : > { %v2713_v30 = vpop.f32.mrb[19].mxu0 }
 0x311   : > { %v2717_v31 = vpop.f32.mrb[20].mxu0 }
 0x312   : > { %v2719_v32 = vpop.f32.mrb[21].mxu0 }
 0x313   : > { %v2721_v33 = vpop.f32.mrb[22].mxu0 }
 0x314   : > { %v2723_v34 = vpop.f32.mrb[23].mxu0 }
 0x319   : > { %v2727_v35 = vpop.f32.mrb[24].mxu0 }
 0x31a   : > { %v2729_v36 = vpop.f32.mrb[25].mxu0 }
 0x31b   : > { %v2731_v38 = vpop.f32.mrb[26].mxu0 }
 0x31c   : > { %v2733_v39 = vpop.f32.mrb[27].mxu0 }
 0x321   : > { %v1519_v41 = vpop.f32.mrb[16].mxu1  ;;  %v4335_v42 = vpop.f32.mrb[28].mxu0 }
 0x322   : > { %v3351_v43 = vadd.f32 %v2707_v27, %v1519_v41  ;;  %v1521_v44 = vpop.f32.mrb[17].mxu1  ;;  %v4337_v45 = vpop.f32.mrb[29].mxu0 }
 0x323   : > { %v3352_v15 = vadd.f32 %v2709_v28, %v1521_v44  ;;  %v4339_v46 = vpop.f32.mrb[30].mxu0  ;;  %v1523_v47 = vpop.f32.mrb[18].mxu1 }
 0x324   : > { %v2890_v48 = vadd.f32 %v3351_v43, %v2837_v40  ;;  %v3353_v9 = vadd.f32 %v2711_v29, %v1523_v47  ;;  %v1525_v12 = vpop.f32.mrb[19].mxu1  ;;  %v4341_v49 = vpop.f32.mrb[31].mxu0 }
 0x325   : > { %v2891_v50 = vadd.f32 %v3352_v15, %v2837_v40  ;;  %v3354_v3 = vadd.f32 %v2713_v30, %v1525_v12  ;;  %v2872_v47 = vpop.permute.xlu0 %2871 }
 0x326   : > { %v2922_v2 = vmax.f32 %v2890_v48, 0.0  ;;  %v2892_v52 = vadd.f32 %v3353_v9, %v2842_v51 }
 0x327   : > { %v2923_v53 = vmax.f32 %v2891_v50, 0.0  ;;  %v2893_v54 = vadd.f32 %v3354_v3, %v2842_v51 }
 0x328   : > { %2954 = vst [vmem:[%s4317_s19 + $0x80] sm:$0xff] %v2922_v2  ;;  %v2924_v55 = vmax.f32 %v2892_v52, 0.0 }
 0x329   : > { %2955 = vst [vmem:[%s4317_s19 + $0x88] sm:$0xff] %v2923_v53  ;;  %v2925_v56 = vmax.f32 %v2893_v54, 0.0  ;;  %v1529_v57 = vpop.f32.mrb[20].mxu1 }
 0x32a   : > { %2956 = vst [vmem:[%s4317_s19 + $0x90] sm:$0xff] %v2924_v55  ;;  %v3355_v58 = vadd.f32 %v2717_v31, %v1529_v57  ;;  %v1531_v21 = vpop.f32.mrb[21].mxu1 }
 0x32b   : > { %2957 = vst [vmem:[%s4317_s19 + $0x98] sm:$0xff] %v2925_v56  ;;  %v3356_v59 = vadd.f32 %v2719_v32, %v1531_v21  ;;  %v1533_v61 = vpop.f32.mrb[22].mxu1 }
 0x32c   : > { %v2894_v62 = vadd.f32 %v3355_v58, %v2847_v60  ;;  %v3357_v63 = vadd.f32 %v2721_v33, %v1533_v61  ;;  %v1535_v0 = vpop.f32.mrb[23].mxu1 }
 0x32d   : > { %v2895_v1 = vadd.f32 %v3356_v59, %v2847_v60  ;;  %v3358_v4 = vadd.f32 %v2723_v34, %v1535_v0 }
 0x32e   : > { %v2926_v6 = vmax.f32 %v2894_v62, 0.0  ;;  %v2896_v7 = vadd.f32 %v3357_v63, %v2852_v5 }
 0x32f   : > { %v2927_v10 = vmax.f32 %v2895_v1, 0.0  ;;  %v2897_v13 = vadd.f32 %v3358_v4, %v2852_v5 }
 0x330   : > { %2958 = vst [vmem:[%s4317_s19 + $0xa0] sm:$0xff] %v2926_v6  ;;  %v2928_v14 = vmax.f32 %v2896_v7, 0.0 }
 0x331   : > { %2959 = vst [vmem:[%s4317_s19 + $0xa8] sm:$0xff] %v2927_v10  ;;  %v2929_v11 = vmax.f32 %v2897_v13, 0.0  ;;  %v1539_v37 = vpop.f32.mrb[24].mxu1 }
 0x332   : > { %2960 = vst [vmem:[%s4317_s19 + $0xb0] sm:$0xff] %v2928_v14  ;;  %v3359_v16 = vadd.f32 %v2727_v35, %v1539_v37  ;;  %v1541_v17 = vpop.f32.mrb[25].mxu1 }
 0x333   : > { %2961 = vst [vmem:[%s4317_s19 + $0xb8] sm:$0xff] %v2929_v11  ;;  %v3360_v18 = vadd.f32 %v2729_v36, %v1541_v17  ;;  %v1543_v20 = vpop.f32.mrb[26].mxu1 }
 0x334   : > { %v2898_v22 = vadd.f32 %v3359_v16, %v2857_v19  ;;  %v3361_v23 = vadd.f32 %v2731_v38, %v1543_v20  ;;  %v1545_v24 = vpop.f32.mrb[27].mxu1  ;;  %v2867_v38 = vpop.permute.xlu1 %2866 }
 0x335   : > { %v2899_v25 = vadd.f32 %v3360_v18, %v2857_v19  ;;  %v3362_v8 = vadd.f32 %v2733_v39, %v1545_v24 }
 0x336   : > { %v2930_v27 = vmax.f32 %v2898_v22, 0.0  ;;  %v2900_v28 = vadd.f32 %v3361_v23, %v2862_v26 }
 0x337   : > { %v2931_v29 = vmax.f32 %v2899_v25, 0.0  ;;  %v2901_v30 = vadd.f32 %v3362_v8, %v2862_v26 }
 0x338   : > { %2962 = vst [vmem:[%s4317_s19 + $0xc0] sm:$0xff] %v2930_v27  ;;  %v2932_v31 = vmax.f32 %v2900_v28, 0.0 }
 0x339   : > { %2963 = vst [vmem:[%s4317_s19 + $0xc8] sm:$0xff] %v2931_v29  ;;  %v2933_v32 = vmax.f32 %v2901_v30, 0.0  ;;  %v1549_v33 = vpop.f32.mrb[28].mxu1 }
 0x33a   : > { %2964 = vst [vmem:[%s4317_s19 + $0xd0] sm:$0xff] %v2932_v31  ;;  %v3363_v34 = vadd.f32 %v4335_v42, %v1549_v33  ;;  %v1551_v35 = vpop.f32.mrb[29].mxu1 }
 0x33b   : > { %2965 = vst [vmem:[%s4317_s19 + $0xd8] sm:$0xff] %v2933_v32  ;;  %v3364_v36 = vadd.f32 %v4337_v45, %v1551_v35  ;;  %v1553_v39 = vpop.f32.mrb[30].mxu1 }
 0x33c   : > { %v2902_v40 = vadd.f32 %v3363_v34, %v2867_v38  ;;  %v3365_v41 = vadd.f32 %v4339_v46, %v1553_v39  ;;  %v1555_v43 = vpop.f32.mrb[31].mxu1 }
 0x33d   : > { %v2903_v44 = vadd.f32 %v3364_v36, %v2867_v38  ;;  %v3366_v15 = vadd.f32 %v4341_v49, %v1555_v43 }
 0x33e   : > { %v2934_v48 = vmax.f32 %v2902_v40, 0.0  ;;  %v2904_v42 = vadd.f32 %v3365_v41, %v2872_v47 }
 0x33f   : > { %v2935_v9 = vmax.f32 %v2903_v44, 0.0  ;;  %v2905_v12 = vadd.f32 %v3366_v15, %v2872_v47 }
 0x340   : > { %2966 = vst [vmem:[%s4317_s19 + $0xe0] sm:$0xff] %v2934_v48  ;;  %v2936_v50 = vmax.f32 %v2904_v42, 0.0 }
 0x341   : > { %2967 = vst [vmem:[%s4317_s19 + $0xe8] sm:$0xff] %v2935_v9  ;;  %v2937_v45 = vmax.f32 %v2905_v12, 0.0 }
 0x342   : > { %2968 = vst [vmem:[%s4317_s19 + $0xf0] sm:$0xff] %v2936_v50 }
 0x343   : > { %2969 = vst [vmem:[%s4317_s19 + $0xf8] sm:$0xff] %v2937_v45 }
 0x344 PF: > { %s14_s15 = sadd.s32 1, %s3714_s15  }
 0x345   : > { %p11_p4 = scmp.ge.s32.totalorder %s14_s15, 4  }
 0x347   :  { %13 = sbr.rel (!%p11_p4) target bundleno = 1 (0x1), region = 74 }

// kernel: spade_resnet_block_forward.19
= control target key start
LH: loop header
LB: loop body
LE: loop exit
PB: predicated region body
PF: predicated region fallthrough
CT: control target
= control target key end

     0   :  { %s1526_s18 = smov 0   ;;  %s1727_s0 = inlined_call_operand.vmem [shape: bf16[2,4,290], index: 0, kind: input, shape index: {}]   ;;  %s1728_s1 = inlined_call_operand.vmem [shape: bf16[9,4,4], index: 1, kind: input, shape index: {}]   ;;  %s1729_s2 = inlined_call_operand.vmem [shape: f32[4,1], index: 2, kind: input, shape index: {}]   ;;  %s1730_s3 = inlined_call_operand.vmem [shape: bf16[9,256], index: 3, kind: input, shape index: {}]   ;;  %s1731_s4 = inlined_call_operand.vmem [shape: f32[2,4,256], index: 4, kind: input, shape index: {}]   ;;  %s1732_s5 = inlined_call_operand.vmem [shape: f32[2,4,256], index: 5, kind: output, shape index: {}]  }
   0x1 LB: > { %s1369_s19 = sadd.s32 4294967295, %s1476_s18   ;;  %p1373_p0 = scmp.ge.s32.totalorder %s1476_s18, 1  ;;  %s1476_s18 = sphi %s1526_s18, %s15_s18  }
   0x2   : > { %p197_p1 = scmp.lt.s32.totalorder %s1476_s18, 3 }
   0x4   : > { %p198_p2 = pnand %p1373_p0, %p197_p1 }
   0x5   : > { %v247_v0 = vld [vmem:[%s1730_s3] sm:$0x11] (!%p198_p2)  ;;  %v256_v1 = vlaneseq (!%p198_p2)  ;;  %v1478_v4 = vmov (!%p198_p2), 1983009808   ;;  %v570_v6 = vld [vmem:[%s1730_s3] sm:$0x22] (!%p198_p2) }
   0x6   : > { %201 = sbr.rel (%p198_p2) target bundleno = 530 (0x212), region = 40  ;;  %v1537_v2 = vcombine.low (!%p198_p2), %v247_v0, %v247_v0  ;;  %v1539_v3 = vcombine.high (!%p198_p2), %v247_v0, %v247_v0  ;;  %v271_v5 = vunpack.c.l.s4 (!%p198_p2), %v1478_v4  ;;  %v452_v7 = vld [vmem:[%s1730_s3] sm:$0x22] (!%p198_p2)  ;;  %v1391_v9 = vcombine.low (!%p198_p2), %v570_v6, %v570_v6  ;;  %v690_v15 = vld [vmem:[%s1730_s3] sm:$0x44] (!%p198_p2)  ;;  %s1479_s9 = smov (!%p198_p2), 1  }
   0x7   : > { %v257_v8 = vshrl.u32 (!%p198_p2), %v256_v1, 7  ;;  %v1392_v10 = vcombine.high (!%p198_p2), %v570_v6, %v570_v6  ;;  %v1386_v11 = vcombine.low (!%p198_p2), %v452_v7, %v452_v7  ;;  %v1387_v24 = vcombine.high (!%p198_p2), %v452_v7, %v452_v7  ;;  %v808_v31 = vld [vmem:[%s1730_s3] sm:$0x44] (!%p198_p2)  ;;  %v928_v32 = vld [vmem:[%s1730_s3] sm:$0x88] (!%p198_p2)  ;;  %s1480_s12 = smov (!%p198_p2), 16  }
   0x8   : > { %v272_v12 = vunpack.c.0.s8 (!%p198_p2), %v271_v5  ;;  %v281_v13 = vshrl.u32 (!%p198_p2), %v1537_v2, 16  ;;  %v288_v14 = vshrl.u32 (!%p198_p2), %v1539_v3, 16  ;;  %v577_v18 = vshrl.u32 (!%p198_p2), %v1391_v9, 16  ;;  %v1046_v53 = vld [vmem:[%s1730_s3] sm:$0x88] (!%p198_p2)  ;;  %s1481_s13 = smov (!%p198_p2), 2  }
   0x9   : > { %v1552_v16 = vsub.s32 (!%p198_p2), 0, %v257_v8  ;;  %v463_v17 = vsub.s32 (!%p198_p2), 1, %v257_v8  ;;  %v585_v22 = vshrl.u32 (!%p198_p2), %v1392_v10, 16  ;;  %v459_v25 = vpack.i.b16 (!%p198_p2), %v1386_v11, %v1386_v11  ;;  %v1166_v58 = vld [vmem:[%s1730_s3 + $0x8] sm:$0x11] (!%p198_p2)  ;;  %s1482_s14 = smov (!%p198_p2), 17  }
   0xa   : > { %v1554_v19 = vsub.s32 (!%p198_p2), %v272_v12, %v257_v8  ;;  %v282_v20 = vpack.i.b16 (!%p198_p2), %v281_v13, %v281_v13  ;;  %v289_v21 = vpack.i.b16 (!%p198_p2), %v288_v14, %v288_v14  ;;  %v578_v23 = vpack.i.b16 (!%p198_p2), %v577_v18, %v577_v18  ;;  %s1483_s15 = smov (!%p198_p2), 18   ;;  %s1484_s16 = smov (!%p198_p2), 32  }
   0xb   : > { %v1396_v26 = vcombine.low (!%p198_p2), %v690_v15, %v690_v15  ;;  %v586_v29 = vpack.i.b16 (!%p198_p2), %v585_v22, %v585_v22  ;;  %v1397_v30 = vcombine.high (!%p198_p2), %v690_v15, %v690_v15  ;;  %v464_v34 = vrot.slane (!%p198_p2), %v459_v25, %v463_v17  ;;  %s1485_s17 = smov (!%p198_p2), 33   ;;  %s1486_s20 = smov (!%p198_p2), 34  }
   0xc   : > { %v287_v27 = vrot.slane (!%p198_p2), %v282_v20, %v1552_v16  ;;  %v294_v28 = vrot.slane (!%p198_p2), %v289_v21, %v1552_v16  ;;  %v583_v33 = vrot.slane (!%p198_p2), %v578_v23, %v463_v17  ;;  %v466_v35 = vpack.i.b16 (!%p198_p2), %v1387_v24, %v1387_v24  ;;  %p230_p3 = scmp.lt.s32.totalorder (!%p198_p2), %s1369_s19, 1  ;;  %s1487_s25 = smov (!%p198_p2), 127  }
   0xd   : > { %v697_v36 = vpack.i.b16 %v1396_v26, %v1396_v26  ;;  %v591_v38 = vrot.slane %v586_v29, %v463_v17  ;;  %v701_v39 = vsub.s32 2, %v257_v8  ;;  %v704_v40 = vpack.i.b16 %v1397_v30, %v1397_v30  ;;  %s1488_s26 = smov 126   ;;  %s1489_s27 = smov 112  }
   0xe   : > { %v297_v37 = vcombine.low %v287_v27, %v294_v28  ;;  %v471_v41 = vrot.slane %v466_v35, %v463_v17  ;;  %v1401_v42 = vcombine.low %v808_v31, %v808_v31  ;;  %v1402_v43 = vcombine.high %v808_v31, %v808_v31  ;;  %s1734_s19 = smov (!%p230_p3, %s1369_s19), 1  ;;  %s1490_s28 = smov 111  }
   0xf   : > { %v1406_v44 = vcombine.low %v928_v32, %v928_v32  ;;  %v594_v46 = vcombine.low %v583_v33, %v591_v38  ;;  %v702_v47 = vrot.slane %v697_v36, %v701_v39  ;;  %v709_v48 = vrot.slane %v704_v40, %v701_v39  ;;  %s1425_s21 = smul.u32 6, %s1734_s19  ;;  %s1492_s6 = smov 110  }
  0x10   : > { %v304_v45 = vrot.slane %v297_v37, %v1554_v19  ;;  %v474_v49 = vcombine.low %v464_v34, %v471_v41  ;;  %v815_v50 = vshrl.u32 %v1401_v42, 16  ;;  %v823_v51 = vshrl.u32 %v1402_v43, 16  ;;  %s1493_s7 = smov 96   ;;  %s1494_s8 = smov 95  }
  0x11   : > { %v1407_v52 = vcombine.high %v928_v32, %v928_v32  ;;  %v601_v54 = vrot.slane %v594_v46, %v1554_v19  ;;  %v712_v55 = vcombine.low %v702_v47, %v709_v48  ;;  %v935_v56 = vpack.i.b16 %v1406_v44, %v1406_v44  ;;  %s1594_s24 = scalar_lea.vmem %s1727_s0, %s1425_s21  ;;  %s1423_s30 = sshll.u32 %s1734_s19, 3 }
  0x12   : > { %305 = vrot.lane.b32.xlu0 %v304_v45, %s1479_s9  ;;  %v939_v57 = vsub.s32 3, %v257_v8  ;;  %v481_v59 = vrot.slane %v474_v49, %v1554_v19  ;;  %v816_v60 = vpack.i.b16 %v815_v50, %v815_v50  ;;  %v824_v61 = vpack.i.b16 %v823_v51, %v823_v51  ;;  %v280_v33 = vld [vmem:[%s1594_s24] sm:$0x3f]  ;;  %s1495_s9 = smov 94   ;;  %s244_s10 = scalar_lea.vmem %s1732_s5, %s1423_s30 }
  0x13   : > { %v942_v62 = vpack.i.b16 %v1407_v52, %v1407_v52  ;;  %602 = vrot.lane.b32.xlu1 %v601_v54, %s1480_s12  ;;  %v719_v63 = vrot.slane %v712_v55, %v1554_v19  ;;  %v1411_v1 = vcombine.low %v1046_v53, %v1046_v53  ;;  %v1412_v4 = vcombine.high %v1046_v53, %v1046_v53  ;;  %v569_v37 = vld [vmem:[%s1594_s24] sm:$0x3f] }
  0x14   : > { %v940_v0 = vrot.slane %v935_v56, %v939_v57  ;;  %v821_v5 = vrot.slane %v816_v60, %v701_v39  ;;  %v829_v6 = vrot.slane %v824_v61, %v701_v39  ;;  %v1416_v8 = vcombine.low %v1166_v58, %v1166_v58  ;;  %v451_v43 = vld [vmem:[%s1594_s24] sm:$0x3f] }
  0x15   : > { %v947_v7 = vrot.slane %v942_v62, %v939_v57  ;;  %v1053_v9 = vshrl.u32 %v1411_v1, 16  ;;  %v1061_v10 = vshrl.u32 %v1412_v4, 16  ;;  %v1417_v11 = vcombine.high %v1166_v58, %v1166_v58  ;;  %v246_v48 = vld [vmem:[%s1594_s24] sm:$0xf] }
  0x16   : > { %482 = vrot.lane.b32.xlu0 %v481_v59, %s1481_s13  ;;  %v832_v12 = vcombine.low %v821_v5, %v829_v6  ;;  %v1173_v14 = vpack.i.b16 %v1416_v8, %v1416_v8  ;;  %v261_v30 = vpack.i.b16 %v1539_v3, %v1539_v3  ;;  %v254_v31 = vpack.i.b16 %v1537_v2, %v1537_v2  ;;  %v689_v50 = vld [vmem:[%s1594_s24] sm:$0x3f] }
  0x17   : > { %v950_v13 = vcombine.low %v940_v0, %v947_v7  ;;  %720 = vrot.lane.b32.xlu1 %v719_v63, %s1482_s14  ;;  %v1054_v15 = vpack.i.b16 %v1053_v9, %v1053_v9  ;;  %v1062_v17 = vpack.i.b16 %v1061_v10, %v1061_v10  ;;  %v1180_v18 = vpack.i.b16 %v1417_v11, %v1417_v11  ;;  %v807_v6 = vld [vmem:[%s1594_s24] sm:$0x3f] }
  0x18   : > { %v839_v20 = vrot.slane %v832_v12, %v1554_v19  ;;  %v1178_v22 = vrot.slane %v1173_v14, %v1552_v16  ;;  %vm308_vm0 = vcmask 7168   ;;  %v259_v35 = vrot.slane %v254_v31, %v1552_v16  ;;  %v279_v11 = vld [vmem:[%s1728_s1] sm:$0x3] }
  0x19   : > { %v957_v21 = vrot.slane %v950_v13, %v1554_v19  ;;  %v1059_v23 = vrot.slane %v1054_v15, %v939_v57  ;;  %v1067_v24 = vrot.slane %v1062_v17, %v939_v57  ;;  %v1185_v25 = vrot.slane %v1180_v18, %v1552_v16  ;;  %v927_v18 = vld [vmem:[%s1594_s24] sm:$0x3f] }
  0x1a   : > { %840 = vrot.lane.b32.xlu0 %v839_v20, %s1483_s15  ;;  %v266_v36 = vrot.slane %v261_v30, %v1552_v16  ;;  %vm605_vm1 = vcmask 130048   ;;  %vm485_vm2 = vcmask 15360   ;;  %vm723_vm3 = vcmask 138240   ;;  %v1045_v30 = vld [vmem:[%s1594_s24] sm:$0x3f] }
  0x1b   : > { %958 = vrot.lane.b32.xlu1 %v957_v21, %s1484_s16  ;;  %v1070_v26 = vcombine.low %v1059_v23, %v1067_v24  ;;  %v1188_v27 = vcombine.low %v1178_v22, %v1185_v25  ;;  %vm843_vm4 = vcmask 146432   ;;  %vm344_vm5 = vcmask 1041408  }
  0x1c   : > { %v269_v39 = vcombine.low %v259_v35, %v266_v36  ;;  %v1491_v8 = vmov 0   ;;  %vm340_vm6 = vcmask 31744   ;;  %vm961_vm7 = vcmask 261120  }
  0x1d   : > { %v1077_v28 = vrot.slane %v1070_v26, %v1554_v19  ;;  %v1195_v29 = vrot.slane %v1188_v27, %v1554_v19  ;;  %383 = vmatprep.mubr.bf16.mxu0 %v1491_v8  ;;  %442 = vmatprep.mubr.bf16.mxu1 %v1491_v8  ;;  %vm1081_vm8 = vcmask 269312   ;;  %vm1199_vm9 = vcmask 277504  }
  0x1e   : > { %v276_v45 = vrot.slane %v269_v39, %v1554_v19  ;;  %1452 = vset.pattern.permute.xlu0 %v1491_v8  ;;  %vm337_vm10 = vcmask 1039360   ;;  %vm514_vm11 = vcmask 1031168   ;;  %vm752_vm12 = vcmask 908288  }
  0x1f   : > { %1078 = vrot.lane.b32.xlu0 %v1077_v28, %s1485_s17  ;;  %1196 = vrot.lane.b32.xlu1 %v1195_v29, %s1486_s20  ;;  %vm634_vm13 = vcmask 916480   ;;  %vm990_vm14 = vcmask 785408   ;;  %vm872_vm15 = vcmask 900096  }
  0x20   : > { %v278_v52 = vmul.bf16 %v276_v45, %v246_v48  ;;  %v1283_v48 = vld [vmem:[%s1729_s2] sm:$0xf] }
  0x22   : > { %v399_v55 = vrot.slane %v278_v52, %v1554_v19 }
  0x24   : > { %v400_v61 = vcombine.high %v399_v55, %v399_v55  ;;  %v405_v5 = vsel %vm344_vm5, %v399_v55, 0 }
  0x26   : > { %1384 = vmatprep.subr.msk.bf16.mxu1 %vm344_vm5, %v400_v61 }
  0x27   : > { %411 = vmatpush1.bf16.msra.mxu1 %v405_v5 }
  0x2a   : > { %1385 = vmatmul.mubr.msk.bf16.vlgmr.msra.gmra.mrb[0].mxu1 %vm340_vm6, %v279_v11 }
  0x2b   : > { %678 = vmatprep.mubr.bf16.mxu1 %v1491_v8 }
  0x84   : > { %v306_v32 = vpop.permute.xlu0 %305 }
  0x85   : > { %v307_v34 = vrot.slane %v306_v32, 6  ;;  %v603_v3 = vpop.permute.xlu1 %602 }
  0x86   : > { %v604_v38 = vrot.slane %v603_v3, 6 }
  0x87   : > { %v309_v2 = vsel %vm308_vm0, %v307_v34, %v306_v32  ;;  %vm1110_vm0 = vcmask 777216  }
  0x88   : > { %v311_v40 = vmul.bf16 %v309_v2, %v280_v33  ;;  %v483_v41 = vpop.permute.xlu0 %482  ;;  %v606_v42 = vsel %vm605_vm1, %v604_v38, %v603_v3  ;;  %v1165_v38 = vld [vmem:[%s1594_s24] sm:$0x3f]  ;;  %vm1228_vm1 = vcmask 769024  }
  0x89   : > { %v484_v44 = vrot.slane %v483_v41, 6  ;;  %v1602_v46 = vmul.bf16 %v606_v42, %v569_v37  ;;  %v721_v16 = vpop.permute.xlu1 %720 }
  0x8a   : > { %v322_v47 = vrot.slane %v311_v40, %v1554_v19  ;;  %v722_v51 = vrot.slane %v721_v16, 6  ;;  %v315_v62 = vcombine.high %v311_v40, %v311_v40 }
  0x8b   : > { %v486_v49 = vsel %vm485_vm2, %v484_v44, %v483_v41  ;;  %v1612_v58 = vrot.slane %v1602_v46, %v1554_v19  ;;  %v612_v22 = vcombine.high %v1602_v46, %v1602_v46 }
  0x8c   : > { %v488_v53 = vmul.bf16 %v486_v49, %v451_v43  ;;  %331 = vrot.lane.b32.xlu0 %v322_v47, %s1487_s25  ;;  %v724_v54 = vsel %vm723_vm3, %v722_v51, %v721_v16  ;;  %v841_v59 = vpop.permute.xlu0 %840  ;;  %v329_v10 = vrot.slane %v315_v62, %v1554_v19  ;;  %v330_v15 = vcombine.high %v322_v47, %v322_v47 }
  0x8d   : > { %v726_v56 = vmul.bf16 %v724_v54, %v689_v50  ;;  %v842_v60 = vrot.slane %v841_v59, 6  ;;  %v959_v4 = vpop.permute.xlu1 %958  ;;  %v626_v28 = vrot.slane %v612_v22, %v1554_v19  ;;  %v627_v34 = vcombine.high %v1612_v58, %v1612_v58 }
  0x8e   : > { %v499_v57 = vrot.slane %v488_v53, %v1554_v19  ;;  %v492_v63 = vcombine.high %v488_v53, %v488_v53  ;;  %v960_v12 = vrot.slane %v959_v4, 6 }
  0x8f   : > { %v737_v0 = vrot.slane %v726_v56, %v1554_v19  ;;  %v844_v7 = vsel %vm843_vm4, %v842_v60, %v841_v59  ;;  %v730_v14 = vcombine.high %v726_v56, %v726_v56 }
  0x90   : > { %508 = vrot.lane.b32.xlu1 %v499_v57, %s1488_s26  ;;  %628 = vrot.lane.b32.xlu0 %v1612_v58, %s1489_s27  ;;  %v507_v1 = vcombine.high %v499_v57, %v499_v57  ;;  %v506_v9 = vrot.slane %v492_v63, %v1554_v19  ;;  %v846_v13 = vmul.bf16 %v844_v7, %v807_v6  ;;  %v1381_v63 = vld [vmem:[%s1728_s1 + $0x2] sm:$0x3] }
  0x91   : > { %v745_v17 = vcombine.high %v737_v0, %v737_v0  ;;  %v962_v20 = vsel %vm961_vm7, %v960_v12, %v959_v4  ;;  %v744_v24 = vrot.slane %v730_v14, %v1554_v19  ;;  %v1079_v25 = vpop.permute.xlu0 %1078  ;;  %v1197_v29 = vpop.permute.xlu1 %1196 }
  0x92   : > { %v857_v21 = vrot.slane %v846_v13, %v1554_v19  ;;  %v964_v23 = vmul.bf16 %v962_v20, %v927_v18  ;;  %v1080_v26 = vrot.slane %v1079_v25, 6  ;;  %v850_v32 = vcombine.high %v846_v13, %v846_v13  ;;  %v1393_v18 = vld [vmem:[%s1728_s1 + $0x6] sm:$0x3] }
  0x93   : > { %v1198_v36 = vrot.slane %v1197_v29, 6 }
  0x94   : > { %746 = vrot.lane.b32.xlu1 %v737_v0, %s1490_s28  ;;  %510 = vrot.lane.b32.xlu0 %v507_v1, %s1488_s26  ;;  %v975_v27 = vrot.slane %v964_v23, %v1554_v19  ;;  %v1082_v31 = vsel %vm1081_vm8, %v1080_v26, %v1079_v25  ;;  %v968_v33 = vcombine.high %v964_v23, %v964_v23 }
  0x95   : > { %v1084_v3 = vmul.bf16 %v1082_v31, %v1045_v30  ;;  %v864_v37 = vrot.slane %v850_v32, %v1554_v19  ;;  %v1200_v39 = vsel %vm1199_vm9, %v1198_v36, %v1197_v29  ;;  %v865_v43 = vcombine.high %v857_v21, %v857_v21  ;;  %v1403_v31 = vld [vmem:[%s1728_s1 + $0xa] sm:$0x3] }
  0x96   : > { %v983_v35 = vcombine.high %v975_v27, %v975_v27  ;;  %v982_v2 = vrot.slane %v968_v33, %v1554_v19  ;;  %v1202_v42 = vmul.bf16 %v1200_v39, %v1165_v38  ;;  %v1413_v39 = vld [vmem:[%s1728_s1 + $0xe] sm:$0x3] }
  0x97   : > { %v1088_v40 = vcombine.high %v1084_v3, %v1084_v3  ;;  %v1095_v41 = vrot.slane %v1084_v3, %v1554_v19 }
  0x98   : > { %512 = vrot.lane.b32.xlu1 %v506_v9, %s1488_s26  ;;  %335 = vrot.lane.b32.xlu0 %v329_v10, %s1487_s25  ;;  %v1213_v45 = vrot.slane %v1202_v42, %v1554_v19  ;;  %v1206_v46 = vcombine.high %v1202_v42, %v1202_v42  ;;  %v1388_v10 = vld [vmem:[%s1728_s1 + $0x4] sm:$0x3] }
  0x99   : > { %v1102_v44 = vrot.slane %v1088_v40, %v1554_v19  ;;  %v1103_v16 = vcombine.high %v1095_v41, %v1095_v41 }
  0x9a   : > { %v1221_v47 = vcombine.high %v1213_v45, %v1213_v45  ;;  %v1220_v49 = vrot.slane %v1206_v46, %v1554_v19 }
  0x9c   : > { %333 = vrot.lane.b32.xlu1 %v330_v15, %s1487_s25  ;;  %748 = vrot.lane.b32.xlu0 %v745_v17, %s1490_s28 }
  0xa0   : > { %750 = vrot.lane.b32.xlu1 %v744_v24, %s1490_s28  ;;  %866 = vrot.lane.b32.xlu0 %v857_v21, %s1492_s6  ;;  %v1398_v24 = vld [vmem:[%s1728_s1 + $0x8] sm:$0x3] }
  0xa4   : > { %984 = vrot.lane.b32.xlu1 %v975_v27, %s1493_s7  ;;  %632 = vrot.lane.b32.xlu0 %v626_v28, %s1489_s27 }
  0xa8   : > { %630 = vrot.lane.b32.xlu1 %v627_v34, %s1489_s27  ;;  %986 = vrot.lane.b32.xlu0 %v983_v35, %s1493_s7  ;;  %v1408_v34 = vld [vmem:[%s1728_s1 + $0xc] sm:$0x3] }
  0xac   : > { %988 = vrot.lane.b32.xlu1 %v982_v2, %s1493_s7  ;;  %870 = vrot.lane.b32.xlu0 %v864_v37, %s1492_s6 }
  0xb0   : > { %868 = vrot.lane.b32.xlu1 %v865_v43, %s1492_s6  ;;  %1104 = vrot.lane.b32.xlu0 %v1095_v41, %s1494_s8  ;;  %v1418_v43 = vld [vmem:[%s1728_s1 + $0x10] sm:$0x3] }
  0xb4   : > { %1222 = vrot.lane.b32.xlu1 %v1213_v45, %s1495_s9  ;;  %1108 = vrot.lane.b32.xlu0 %v1102_v44, %s1494_s8 }
  0xb8   : > { %1106 = vrot.lane.b32.xlu1 %v1103_v16, %s1494_s8  ;;  %1224 = vrot.lane.b32.xlu0 %v1221_v47, %s1495_s9  ;;  %s239_s8 = scalar_lea.vmem %s1731_s4, %s1423_s30 }
  0xbc   : > { %1226 = vrot.lane.b32.xlu1 %v1220_v49, %s1495_s9  ;;  %1286 = vperm.xlu0 %1452, %v1283_v48  }
  0xfd   : > { %v444_v44 = vpop.f32.mrb[0].mxu1 }
  0xfe   : > { %v332_v50 = vpop.permute.xlu0 %331  ;;  %v446_v45 = vpop.f32.mrb[1].mxu1 }
  0xff   : > { %v448_v46 = vpop.f32.mrb[2].mxu1 }
 0x100   : > { %v449_v16 = vpop.f32.mrb[3].mxu1 }
 0x102   : > { %v509_v51 = vpop.permute.xlu1 %508  ;;  %v629_v52 = vpop.permute.xlu0 %628 }
 0x106   : > { %v747_v53 = vpop.permute.xlu1 %746  ;;  %v511_v54 = vpop.permute.xlu0 %510 }
 0x107   : > { %v515_v19 = vsel %vm514_vm11, %v509_v51, %v511_v54 }
 0x108   : > { %v521_v4 = vsel %vm344_vm5, %v515_v19, 0 }
 0x10a   : > { %v513_v55 = vpop.permute.xlu1 %512  ;;  %v336_v56 = vpop.permute.xlu0 %335 }
 0x10b   : > { %v516_v62 = vsel %vm514_vm11, %v511_v54, %v513_v55 }
 0x10e   : > { %v334_v57 = vpop.permute.xlu1 %333  ;;  %v749_v58 = vpop.permute.xlu0 %748 }
 0x10f   : > { %v339_v59 = vsel %vm337_vm10, %v334_v57, %v336_v56  ;;  %v338_v60 = vsel %vm337_vm10, %v332_v50, %v334_v57  ;;  %v753_v9 = vsel %vm752_vm12, %v747_v53, %v749_v58 }
 0x110   : > { %1382 = vmatprep.subr.msk.bf16.mxu0 %vm344_vm5, %v339_v59  ;;  %v346_v61 = vsel %vm344_vm5, %v338_v60, 0  ;;  %v759_v15 = vsel %vm344_vm5, %v753_v9, 0 }
 0x111   : > { %352 = vmatpush1.bf16.msra.mxu0 %v346_v61 }
 0x112   : > { %v751_v0 = vpop.permute.xlu1 %750  ;;  %1389 = vmatprep.subr.msk.bf16.mxu0 %vm344_vm5, %v516_v62  ;;  %v867_v1 = vpop.permute.xlu0 %866 }
 0x113   : > { %v754_v5 = vsel %vm752_vm12, %v749_v58, %v751_v0 }
 0x114   : > { %1383 = vmatmul.mubr.msk.bf16.vlgmr.msra.gmra.mrb[0].mxu0 %vm340_vm6, %v1381_v63 }
 0x115   : > { %527 = vmatpush1.bf16.msra.mxu0 %v521_v4  ;;  %558 = vmatprep.mubr.bf16.mxu0 %v1491_v8 }
 0x116   : > { %v985_v6 = vpop.permute.xlu1 %984  ;;  %1399 = vmatprep.subr.msk.bf16.mxu0 %vm344_vm5, %v754_v5  ;;  %v633_v7 = vpop.permute.xlu0 %632 }
 0x11a   : > { %v631_v11 = vpop.permute.xlu1 %630  ;;  %v987_v12 = vpop.permute.xlu0 %986 }
 0x11b   : > { %v635_v13 = vsel %vm634_vm13, %v629_v52, %v631_v11  ;;  %v636_v14 = vsel %vm634_vm13, %v631_v11, %v633_v7  ;;  %v991_v23 = vsel %vm990_vm14, %v985_v6, %v987_v12 }
 0x11c   : > { %v641_v17 = vsel %vm344_vm5, %v635_v13, 0  ;;  %1390 = vmatmul.mubr.msk.bf16.vlgmr.msra.gmra.mrb[4].mxu0 %vm340_vm6, %v1388_v10  ;;  %1394 = vmatprep.subr.msk.bf16.mxu1 %vm344_vm5, %v636_v14  ;;  %v997_v29 = vsel %vm344_vm5, %v991_v23, 0 }
 0x11d   : > { %765 = vmatpush1.bf16.msra.mxu0 %v759_v15  ;;  %647 = vmatpush1.bf16.msra.mxu1 %v641_v17 }
 0x11e   : > { %v989_v20 = vpop.permute.xlu1 %988  ;;  %v871_v21 = vpop.permute.xlu0 %870  ;;  %796 = vmatprep.mubr.bf16.mxu0 %v1491_v8 }
 0x11f   : > { %v992_v22 = vsel %vm990_vm14, %v987_v12, %v989_v20 }
 0x120   : > { %1395 = vmatmul.mubr.msk.bf16.vlgmr.msra.gmra.mrb[4].mxu1 %vm340_vm6, %v1393_v18  ;;  %1409 = vmatprep.subr.msk.bf16.mxu0 %vm344_vm5, %v992_v22 }
 0x121   : > { %916 = vmatprep.mubr.bf16.mxu1 %v1491_v8 }
 0x122   : > { %v869_v25 = vpop.permute.xlu1 %868  ;;  %v1105_v26 = vpop.permute.xlu0 %1104 }
 0x123   : > { %v873_v27 = vsel %vm872_vm15, %v867_v1, %v869_v25  ;;  %v874_v28 = vsel %vm872_vm15, %v869_v25, %v871_v21 }
 0x124   : > { %v879_v30 = vsel %vm344_vm5, %v873_v27, 0  ;;  %1400 = vmatmul.mubr.msk.bf16.vlgmr.msra.gmra.mrb[8].mxu0 %vm340_vm6, %v1398_v24  ;;  %1404 = vmatprep.subr.msk.bf16.mxu1 %vm344_vm5, %v874_v28  ;;  %v1291_v27 = vld [vmem:[%s239_s8] sm:$0xff] }
 0x125   : > { %1003 = vmatpush1.bf16.msra.mxu0 %v997_v29  ;;  %885 = vmatpush1.bf16.msra.mxu1 %v879_v30 }
 0x126   : > { %v1223_v32 = vpop.permute.xlu1 %1222  ;;  %v1109_v33 = vpop.permute.xlu0 %1108  ;;  %1034 = vmatprep.mubr.bf16.mxu0 %v1491_v8 }
 0x128   : > { %1405 = vmatmul.mubr.msk.bf16.vlgmr.msra.gmra.mrb[8].mxu1 %vm340_vm6, %v1403_v31 }
 0x129   : > { %1154 = vmatprep.mubr.bf16.mxu1 %v1491_v8 }
 0x12a   : > { %v1107_v35 = vpop.permute.xlu1 %1106  ;;  %v1225_v36 = vpop.permute.xlu0 %1224 }
 0x12b   : > { %v1111_v3 = vsel %vm1110_vm0, %v1105_v26, %v1107_v35  ;;  %v1112_v2 = vsel %vm1110_vm0, %v1107_v35, %v1109_v33  ;;  %v1229_v38 = vsel %vm1228_vm1, %v1223_v32, %v1225_v36 }
 0x12c   : > { %v1117_v37 = vsel %vm344_vm5, %v1111_v3, 0  ;;  %1410 = vmatmul.mubr.msk.bf16.vlgmr.msra.gmra.mrb[12].mxu0 %vm340_vm6, %v1408_v34  ;;  %1414 = vmatprep.subr.msk.bf16.mxu1 %vm344_vm5, %v1112_v2  ;;  %v1235_v42 = vsel %vm344_vm5, %v1229_v38, 0  ;;  %v1293_v34 = vcombine.high %v1291_v27, %v1291_v27 }
 0x12d   : > { %1123 = vmatpush1.bf16.msra.mxu1 %v1117_v37  ;;  %1272 = vmatprep.mubr.bf16.mxu0 %v1491_v8 }
 0x12e   : > { %v1227_v40 = vpop.permute.xlu1 %1226 }
 0x12f   : > { %v1230_v41 = vsel %vm1228_vm1, %v1225_v36, %v1227_v40 }
 0x130   : > { %1415 = vmatmul.mubr.msk.bf16.vlgmr.msra.gmra.mrb[12].mxu1 %vm340_vm6, %v1413_v39  ;;  %1419 = vmatprep.subr.msk.bf16.mxu0 %vm344_vm5, %v1230_v41 }
 0x131   : > { %1241 = vmatpush1.bf16.msra.mxu0 %v1235_v42 }
 0x134   : > { %1420 = vmatmul.mubr.msk.bf16.vlgmr.msra.gmra.mrb[16].mxu0 %vm340_vm6, %v1418_v43 }
 0x13b   : > { %v1287_v30 = vpop.permute.xlu0 %1286 }
 0x1e7   : > { %v385_v8 = vpop.f32.mrb[0].mxu0 }
 0x1e8   : > { %v387_v47 = vpop.f32.mrb[1].mxu0  ;;  %v445_v48 = vadd.f32 %v444_v44, %v385_v8 }
 0x1e9   : > { %v389_v49 = vpop.f32.mrb[2].mxu0  ;;  %v447_v50 = vadd.f32 %v446_v45, %v387_v47 }
 0x1ea   : > { %v390_v51 = vpop.f32.mrb[3].mxu0 }
 0x1ef   : > { %v560_v52 = vpop.f32.mrb[4].mxu0 }
 0x1f0   : > { %v567_v53 = vadd.f32 %v560_v52, %v445_v48  ;;  %v562_v54 = vpop.f32.mrb[5].mxu0 }
 0x1f1   : > { %v568_v55 = vadd.f32 %v562_v54, %v447_v50  ;;  %v564_v56 = vpop.f32.mrb[6].mxu0 }
 0x1f2   : > { %v565_v57 = vpop.f32.mrb[7].mxu0 }
 0x1f3   : > { %v680_v58 = vpop.f32.mrb[4].mxu1 }
 0x1f4   : > { %v687_v59 = vadd.f32 %v680_v58, %v567_v53  ;;  %v682_v60 = vpop.f32.mrb[5].mxu1 }
 0x1f5   : > { %v688_v61 = vadd.f32 %v682_v60, %v568_v55  ;;  %v684_v19 = vpop.f32.mrb[6].mxu1 }
 0x1f6   : > { %v685_v62 = vpop.f32.mrb[7].mxu1 }
 0x1f7   : > { %v798_v63 = vpop.f32.mrb[8].mxu0 }
 0x1f8   : > { %v805_v0 = vadd.f32 %v798_v63, %v687_v59  ;;  %v800_v1 = vpop.f32.mrb[9].mxu0 }
 0x1f9   : > { %v806_v4 = vadd.f32 %v800_v1, %v688_v61  ;;  %v802_v5 = vpop.f32.mrb[10].mxu0 }
 0x1fa   : > { %v803_v6 = vpop.f32.mrb[11].mxu0 }
 0x1fb   : > { %v918_v7 = vpop.f32.mrb[8].mxu1 }
 0x1fc   : > { %v925_v9 = vadd.f32 %v918_v7, %v805_v0  ;;  %v920_v10 = vpop.f32.mrb[9].mxu1 }
 0x1fd   : > { %v926_v11 = vadd.f32 %v920_v10, %v806_v4  ;;  %v922_v12 = vpop.f32.mrb[10].mxu1 }
 0x1fe   : > { %v923_v13 = vpop.f32.mrb[11].mxu1 }
 0x1ff   : > { %v1036_v14 = vpop.f32.mrb[12].mxu0 }
 0x200   : > { %v1043_v15 = vadd.f32 %v1036_v14, %v925_v9  ;;  %v1038_v17 = vpop.f32.mrb[13].mxu0 }
 0x201   : > { %v1044_v18 = vadd.f32 %v1038_v17, %v926_v11  ;;  %v1040_v20 = vpop.f32.mrb[14].mxu0 }
 0x202   : > { %v1041_v21 = vpop.f32.mrb[15].mxu0 }
 0x203   : > { %v1156_v22 = vpop.f32.mrb[12].mxu1 }
 0x204   : > { %v1163_v23 = vadd.f32 %v1156_v22, %v1043_v15  ;;  %v1158_v24 = vpop.f32.mrb[13].mxu1 }
 0x205   : > { %v1164_v25 = vadd.f32 %v1158_v24, %v1044_v18  ;;  %v1160_v26 = vpop.f32.mrb[14].mxu1 }
 0x206   : > { %v1161_v28 = vpop.f32.mrb[15].mxu1 }
 0x207   : > { %v1274_v29 = vpop.f32.mrb[16].mxu0 }
 0x208   : > { %v1281_v31 = vadd.f32 %v1274_v29, %v1163_v23  ;;  %v1276_v32 = vpop.f32.mrb[17].mxu0 }
 0x209   : > { %v1282_v33 = vadd.f32 %v1276_v32, %v1164_v25  ;;  %v1278_v35 = vpop.f32.mrb[18].mxu0 }
 0x20a   : > { %v1289_v36 = vadd.f32 %v1287_v30, %v1281_v31  ;;  %v1279_v3 = vpop.f32.mrb[19].mxu0 }
 0x20b   : > { %v1290_v2 = vadd.f32 %v1287_v30, %v1282_v33 }
 0x20c   : > { %v1295_v37 = vadd.f32 %v1291_v27, %v1289_v36 }
 0x20d   : > { %v1296_v38 = vadd.f32 %v1293_v34, %v1290_v2 }
 0x20f   : > { %v1299_v39 = vcombine.low %v1295_v37, %v1296_v38 }
 0x211   : > { %1301 = vst [vmem:[%s244_s10] sm:$0xff] %v1299_v39 }
 0x212 PF: > { %s15_s18 = sadd.s32 1, %s1476_s18  }
 0x213   : > { %p12_p4 = scmp.ge.s32.totalorder %s15_s18, 4  }
 0x215   :  { %14 = sbr.rel (!%p12_p4) target bundleno = 1 (0x1), region = 81 }

// kernel: spade_resnet_block_forward.11
= control target key start
LH: loop header
LB: loop body
LE: loop exit
PB: predicated region body
PF: predicated region fallthrough
CT: control target
= control target key end

     0   :  { %s3154_s15 = smov 0   ;;  %s4504_s0 = inlined_call_operand.vmem [shape: bf16[2,128,290], index: 0, kind: input, shape index: {}]   ;;  %s4505_s1 = inlined_call_operand.vmem [shape: bf16[9,4,128], index: 1, kind: input, shape index: {}]   ;;  %s4506_s2 = inlined_call_operand.vmem [shape: f32[4,1], index: 2, kind: input, shape index: {}]   ;;  %s4507_s3 = inlined_call_operand.vmem [shape: bf16[9,256], index: 3, kind: input, shape index: {}]   ;;  %s4508_s4 = inlined_call_operand.vmem [shape: f32[2,4,256], index: 4, kind: output, shape index: {}]  }
   0x1 LB: > { %s2789_s16 = sadd.s32 4294967295, %s3110_s15   ;;  %p2793_p0 = scmp.ge.s32.totalorder %s3110_s15, 1  ;;  %s3110_s15 = sphi %s3154_s15, %s14_s15  }
   0x2   : > { %p162_p1 = scmp.lt.s32.totalorder %s3110_s15, 3 }
   0x4   : > { %p163_p2 = pnand %p2793_p0, %p162_p1 }
   0x6   : > { %166 = sbr.rel (%p163_p2) target bundleno = 868 (0x364), region = 36 }
   0xd   : > { %v224_v0 = vlaneseq  ;;  %v681_v1 = vld [vmem:[%s4507_s3] sm:$0x22]  ;;  %v215_v2 = vld [vmem:[%s4507_s3] sm:$0x11]  ;;  %v1263_v7 = vld [vmem:[%s4507_s3] sm:$0x44] }
   0xe   : > { %v2842_v3 = vcombine.low %v681_v1, %v681_v1  ;;  %v2843_v4 = vcombine.high %v681_v1, %v681_v1  ;;  %v2797_v5 = vcombine.low %v215_v2, %v215_v2  ;;  %v2798_v6 = vcombine.high %v215_v2, %v215_v2  ;;  %v1845_v8 = vld [vmem:[%s4507_s3] sm:$0x88]  ;;  %s3112_s25 = smov 2   ;;  %s3113_s26 = smov 17   ;;  %v2427_v53 = vld [vmem:[%s4507_s3 + $0x8] sm:$0x11] }
   0xf   : > { %v225_v9 = vshrl.u32 %v224_v0, 7  ;;  %v2896_v10 = vcombine.low %v1263_v7, %v1263_v7  ;;  %v2897_v11 = vcombine.high %v1263_v7, %v1263_v7  ;;  %v2950_v12 = vcombine.low %v1845_v8, %v1845_v8  ;;  %s3114_s29 = smov 1   ;;  %s3115_s30 = smov 32  }
  0x10   : > { %v688_v13 = vpack.i.b16 %v2842_v3, %v2842_v3  ;;  %v695_v14 = vpack.i.b16 %v2843_v4, %v2843_v4  ;;  %v229_v15 = vpack.i.b16 %v2798_v6, %v2798_v6  ;;  %v274_v16 = vshrl.u32 %v2797_v5, 16  ;;  %s3116_s5 = smov 18   ;;  %s3117_s6 = smov 16  }
  0x11   : > { %v692_v17 = vsub.s32 1, %v225_v9  ;;  %v3174_v18 = vsub.s32 0, %v225_v9  ;;  %v281_v19 = vshrl.u32 %v2798_v6, 16  ;;  %v222_v20 = vpack.i.b16 %v2797_v5, %v2797_v5  ;;  %s3118_s7 = smov 33   ;;  %s3119_s8 = smov 34  }
  0x12   : > { %v275_v21 = vpack.i.b16 %v274_v16, %v274_v16  ;;  %v1270_v22 = vpack.i.b16 %v2896_v10, %v2896_v10  ;;  %v1274_v23 = vsub.s32 2, %v225_v9  ;;  %v1277_v24 = vpack.i.b16 %v2897_v11, %v2897_v11  ;;  %p188_p3 = scmp.lt.s32.totalorder %s2789_s16, 1  ;;  %s3120_s13 = smov 126  }
  0x13   : > { %v693_v25 = vrot.slane %v688_v13, %v692_v17  ;;  %v700_v26 = vrot.slane %v695_v14, %v692_v17  ;;  %v234_v27 = vrot.slane %v229_v15, %v3174_v18  ;;  %v282_v28 = vpack.i.b16 %v281_v19, %v281_v19  ;;  %s3121_s14 = smov 111   ;;  %s3122_s17 = smov 127  }
  0x14   : > { %v280_v29 = vrot.slane %v275_v21, %v3174_v18  ;;  %v227_v30 = vrot.slane %v222_v20, %v3174_v18  ;;  %v1275_v31 = vrot.slane %v1270_v22, %v1274_v23  ;;  %v1282_v32 = vrot.slane %v1277_v24, %v1274_v23  ;;  %s4536_s16 = smov (!%p188_p3, %s2789_s16), 1  ;;  %s3123_s18 = smov 112  }
  0x15   : > { %v2844_v33 = vcombine.low %v693_v25, %v700_v26  ;;  %v287_v34 = vrot.slane %v282_v28, %v3174_v18  ;;  %v2951_v35 = vcombine.high %v1845_v8, %v1845_v8  ;;  %v1852_v36 = vpack.i.b16 %v2950_v12, %v2950_v12  ;;  %s3035_s9 = smul.u32 192, %s4536_s16  ;;  %s3125_s21 = smov 110  }
  0x16   : > { %v3180_v37 = vcombine.low %v227_v30, %v234_v27  ;;  %v2898_v38 = vcombine.low %v1275_v31, %v1282_v32  ;;  %v1856_v39 = vsub.s32 3, %v225_v9  ;;  %v975_v40 = vshrl.u32 %v2842_v3, 16  ;;  %s3126_s22 = smov 96   ;;  %s3127_s27 = smov 95  }
  0x17   : > { %706 = vrot.lane.b32.xlu0 %v2844_v33, %s3112_s25  ;;  %v2800_v41 = vcombine.low %v280_v29, %v287_v34  ;;  %v1859_v42 = vpack.i.b16 %v2951_v35, %v2951_v35  ;;  %v982_v43 = vshrl.u32 %v2843_v4, 16  ;;  %v1557_v44 = vshrl.u32 %v2896_v10, 16  ;;  %s3197_s12 = scalar_lea.vmem %s4504_s0, %s3035_s9  ;;  %s3128_s28 = smov 94  }
  0x18   : > { %1288 = vrot.lane.b32.xlu1 %v2898_v38, %s3113_s26  ;;  %v1857_v45 = vrot.slane %v1852_v36, %v1856_v39  ;;  %v976_v46 = vpack.i.b16 %v975_v40, %v975_v40  ;;  %v1564_v47 = vshrl.u32 %v2897_v11, 16  ;;  %v2139_v48 = vshrl.u32 %v2950_v12, 16  ;;  %v3202_v11 = vld [vmem:[%s3197_s12 + $0x20] sm:$0xf]  ;;  %v3205_v12 = vld [vmem:[%s3197_s12 + $0x2c] sm:$0xf] }
  0x19   : > { %v1864_v49 = vrot.slane %v1859_v42, %v1856_v39  ;;  %v983_v50 = vpack.i.b16 %v982_v43, %v982_v43  ;;  %v1558_v51 = vpack.i.b16 %v1557_v44, %v1557_v44  ;;  %v2146_v52 = vshrl.u32 %v2951_v35, 16  ;;  %v3208_v13 = vld [vmem:[%s3197_s12 + $0x8] sm:$0xf]  ;;  %v3214_v15 = vld [vmem:[%s3197_s12 + $0x14] sm:$0xf]  ;;  %s3034_s19 = sshll.u32 %s4536_s16, 3 }
  0x1a   : > { %v981_v54 = vrot.slane %v976_v46, %v692_v17  ;;  %v1565_v55 = vpack.i.b16 %v1564_v47, %v1564_v47  ;;  %v2140_v56 = vpack.i.b16 %v2139_v48, %v2139_v48  ;;  %v3004_v63 = vcombine.low %v2427_v53, %v2427_v53  ;;  %v3217_v16 = vld [vmem:[%s3197_s12 + $0x50] sm:$0xf]  ;;  %v3229_v21 = vld [vmem:[%s3197_s12 + $0x38] sm:$0xf]  ;;  %v3232_v22 = vld [vmem:[%s3197_s12 + $0x44] sm:$0xf] }
  0x1b   : > { %293 = vrot.lane.b32.xlu0 %v2800_v41, %s3114_s29  ;;  %v2952_v57 = vcombine.low %v1857_v45, %v1864_v49  ;;  %v988_v58 = vrot.slane %v983_v50, %v692_v17  ;;  %v1563_v59 = vrot.slane %v1558_v51, %v1274_v23  ;;  %v2147_v60 = vpack.i.b16 %v2146_v52, %v2146_v52  ;;  %v3220_v17 = vld [vmem:[%s3197_s12 + $0x5c] sm:$0xf]  ;;  %v3245_v30 = vld [vmem:[%s3197_s12 + $0x80] sm:$0xf]  ;;  %v3248_v31 = vld [vmem:[%s3197_s12 + $0x8c] sm:$0xf] }
  0x1c   : > { %v1570_v61 = vrot.slane %v1565_v55, %v1274_v23  ;;  %v2145_v62 = vrot.slane %v2140_v56, %v1856_v39  ;;  %v3005_v0 = vcombine.high %v2427_v53, %v2427_v53  ;;  %v2434_v4 = vpack.i.b16 %v3004_v63, %v3004_v63  ;;  %v3252_v32 = vld [vmem:[%s3197_s12 + $0x68] sm:$0xf]  ;;  %v3255_v33 = vld [vmem:[%s3197_s12 + $0x74] sm:$0xf]  ;;  %v3269_v42 = vld [vmem:[%s3197_s12 + $0xb0] sm:$0xf] }
  0x1d   : > { %1870 = vrot.lane.b32.xlu1 %v2952_v57, %s3115_s30  ;;  %v2870_v1 = vcombine.low %v981_v54, %v988_v58  ;;  %v2152_v2 = vrot.slane %v2147_v60, %v1856_v39  ;;  %v3272_v43 = vld [vmem:[%s3197_s12 + $0xbc] sm:$0xf]  ;;  %v3281_v46 = vld [vmem:[%s3197_s12 + $0x98] sm:$0xf]  ;;  %v3284_v47 = vld [vmem:[%s3197_s12 + $0xa4] sm:$0xf] }
  0x1e   : > { %v2924_v3 = vcombine.low %v1563_v59, %v1570_v61  ;;  %v2441_v5 = vpack.i.b16 %v3005_v0, %v3005_v0  ;;  %v2439_v7 = vrot.slane %v2434_v4, %v3174_v18  ;;  %vm709_vm0 = vcmask 15360  }
  0x1f   : > { %v2978_v6 = vcombine.low %v2145_v62, %v2152_v2  ;;  %vm1291_vm1 = vcmask 138240   ;;  %vm296_vm2 = vcmask 7168   ;;  %vm997_vm3 = vcmask 130048  }
  0x20   : > { %1576 = vrot.lane.b32.xlu0 %v2924_v3, %s3116_s5  ;;  %v2446_v8 = vrot.slane %v2441_v5, %v3174_v18  ;;  %vm1579_vm4 = vcmask 146432   ;;  %vm486_vm5 = vcmask 1039360   ;;  %vm1873_vm6 = vcmask 261120  }
  0x21   : > { %994 = vrot.lane.b32.xlu1 %v2870_v1, %s3117_s6  ;;  %vm899_vm7 = vcmask 1031168   ;;  %vm1187_vm8 = vcmask 916480   ;;  %vm1481_vm9 = vcmask 908288   ;;  %vm2161_vm10 = vcmask 269312  }
  0x22   : > { %v3006_v9 = vcombine.low %v2439_v7, %v2446_v8  ;;  %vm2455_vm11 = vcmask 277504   ;;  %vm1769_vm12 = vcmask 900096   ;;  %vm2063_vm13 = vcmask 785408  }
  0x23   : > { %vm2351_vm14 = vcmask 777216   ;;  %vm2645_vm15 = vcmask 769024  }
  0x24   : > { %2158 = vrot.lane.b32.xlu0 %v2978_v6, %s3118_s7 }
  0x28   : > { %2452 = vrot.lane.b32.xlu0 %v3006_v9, %s3119_s8 }
  0x89   : > { %v3199_v10 = vpop.permute.xlu0 %706 }
  0x8a   : > { %v3211_v14 = vrot.slane %v3199_v10, 4  ;;  %v3258_v34 = vpop.permute.xlu1 %1288 }
  0x8b   : > { %v3278_v45 = vrot.slane %v3258_v34, 4 }
  0x8c   : > { %v718_v18 = vmul.bf16 %v3211_v14, %v3202_v11  ;;  %v720_v19 = vmul.bf16 %v3211_v14, %v3205_v12  ;;  %v714_v20 = vmul.bf16 %v3211_v14, %v3208_v13  ;;  %v716_v23 = vmul.bf16 %v3211_v14, %v3214_v15 }
  0x8d   : > { %v726_v25 = vmul.bf16 %v3211_v14, %v3217_v16  ;;  %v728_v26 = vmul.bf16 %v3211_v14, %v3220_v17  ;;  %v722_v28 = vmul.bf16 %v3211_v14, %v3229_v21  ;;  %v724_v29 = vmul.bf16 %v3211_v14, %v3232_v22  ;;  %v3275_v44 = vpop.permute.xlu0 %293 }
  0x8e   : > { %v2851_v24 = vcombine.low %v718_v18, %v720_v19  ;;  %v2848_v27 = vcombine.low %v714_v20, %v716_v23  ;;  %v734_v36 = vmul.bf16 %v3211_v14, %v3245_v30  ;;  %v736_v38 = vmul.bf16 %v3211_v14, %v3248_v31 }
  0x8f   : > { %v2857_v35 = vcombine.low %v726_v25, %v728_v26  ;;  %v2854_v39 = vcombine.low %v722_v28, %v724_v29  ;;  %v730_v40 = vmul.bf16 %v3211_v14, %v3252_v32  ;;  %v732_v41 = vmul.bf16 %v3211_v14, %v3255_v33  ;;  %v3344_v26 = vld [vmem:[%s3197_s12 + $0x18] sm:$0xff] }
  0x90   : > { %861 = vrot.lane.b32.xlu0 %v2851_v24, %s3120_s13  ;;  %855 = vrot.lane.b32.xlu1 %v2848_v27, %s3120_s13  ;;  %v2863_v48 = vcombine.low %v734_v36, %v736_v38  ;;  %v742_v49 = vmul.bf16 %v3211_v14, %v3269_v42  ;;  %v744_v50 = vmul.bf16 %v3211_v14, %v3272_v43  ;;  %v3292_v51 = vrot.slane %v3275_v44, 4  ;;  %v3347_v27 = vld [vmem:[%s3197_s12 + $0x24] sm:$0xff] }
  0x91   : > { %v2860_v52 = vcombine.low %v730_v40, %v732_v41  ;;  %v738_v53 = vmul.bf16 %v3211_v14, %v3281_v46  ;;  %v740_v54 = vmul.bf16 %v3211_v14, %v3284_v47  ;;  %v1296_v55 = vmul.bf16 %v3278_v45, %v3208_v13 }
  0x92   : > { %v1298_v56 = vmul.bf16 %v3278_v45, %v3214_v15  ;;  %v301_v57 = vmul.bf16 %v3292_v51, %v3208_v13  ;;  %v303_v58 = vmul.bf16 %v3292_v51, %v3214_v15  ;;  %v2869_v59 = vcombine.low %v742_v49, %v744_v50  ;;  %v3368_v49 = vld [vmem:[%s3197_s12 + $0xc] sm:$0xff] }
  0x93   : > { %v2866_v60 = vcombine.low %v738_v53, %v740_v54  ;;  %v1300_v62 = vmul.bf16 %v3278_v45, %v3202_v11  ;;  %v1302_v63 = vmul.bf16 %v3278_v45, %v3205_v12  ;;  %v309_v1 = vmul.bf16 %v3292_v51, %v3229_v21  ;;  %v3372_v50 = vld [vmem:[%s3197_s12 + $0x48] sm:$0xff] }
  0x94   : > { %873 = vrot.lane.b32.xlu0 %v2857_v35, %s3120_s13  ;;  %867 = vrot.lane.b32.xlu1 %v2854_v39, %s3120_s13  ;;  %v2902_v61 = vcombine.low %v1296_v55, %v1298_v56  ;;  %v2804_v0 = vcombine.low %v301_v57, %v303_v58  ;;  %v311_v2 = vmul.bf16 %v3292_v51, %v3232_v22 }
  0x95   : > { %v2905_v3 = vcombine.low %v1300_v62, %v1302_v63  ;;  %v305_v4 = vmul.bf16 %v3292_v51, %v3202_v11  ;;  %v307_v5 = vmul.bf16 %v3292_v51, %v3205_v12  ;;  %v317_v7 = vmul.bf16 %v3292_v51, %v3252_v32  ;;  %v3392_v62 = vld [vmem:[%s3197_s12 + $0x3c] sm:$0xff] }
  0x96   : > { %v2810_v6 = vcombine.low %v309_v1, %v311_v2  ;;  %v319_v8 = vmul.bf16 %v3292_v51, %v3255_v33  ;;  %v313_v18 = vmul.bf16 %v3292_v51, %v3217_v16  ;;  %v315_v19 = vmul.bf16 %v3292_v51, %v3220_v17  ;;  %v3396_v63 = vld [vmem:[%s3197_s12 + $0x78] sm:$0xff] }
  0x97   : > { %v2807_v9 = vcombine.low %v305_v4, %v307_v5  ;;  %v325_v23 = vmul.bf16 %v3292_v51, %v3281_v46  ;;  %v327_v24 = vmul.bf16 %v3292_v51, %v3284_v47  ;;  %v3340_v25 = vsel %vm709_vm0, %v3211_v14, %v3199_v10 }
  0x98   : > { %885 = vrot.lane.b32.xlu0 %v2863_v48, %s3120_s13  ;;  %879 = vrot.lane.b32.xlu1 %v2860_v52, %s3120_s13  ;;  %v2816_v20 = vcombine.low %v317_v7, %v319_v8  ;;  %v2813_v28 = vcombine.low %v313_v18, %v315_v19  ;;  %v321_v29 = vmul.bf16 %v3292_v51, %v3245_v30  ;;  %v3365_v48 = vld [vmem:[%s3197_s12] sm:$0xff]  ;;  %v3375_v52 = vld [vmem:[%s3197_s12 + $0x54] sm:$0xff] }
  0x99   : > { %v323_v10 = vmul.bf16 %v3292_v51, %v3248_v31  ;;  %v2822_v14 = vcombine.low %v325_v23, %v327_v24  ;;  %v717_v35 = vmul.bf16 %v3340_v25, %v3344_v26  ;;  %v719_v36 = vmul.bf16 %v3340_v25, %v3347_v27  ;;  %v3416_v18 = vld [vmem:[%s3197_s12 + $0x6c] sm:$0xff] }
  0x9a   : > { %v329_v39 = vmul.bf16 %v3292_v51, %v3269_v42  ;;  %v331_v40 = vmul.bf16 %v3292_v51, %v3272_v43  ;;  %v713_v54 = vmul.bf16 %v3340_v25, %v3365_v48  ;;  %v715_v55 = vmul.bf16 %v3340_v25, %v3368_v49  ;;  %v3420_v19 = vld [vmem:[%s3197_s12 + $0xa8] sm:$0xff] }
  0x9b   : > { %v2819_v38 = vcombine.low %v321_v29, %v323_v10  ;;  %v2850_v41 = vcombine.high %v717_v35, %v719_v36  ;;  %v2849_v56 = vcombine.low %v717_v35, %v719_v36  ;;  %v725_v57 = vmul.bf16 %v3340_v25, %v3372_v50  ;;  %v3436_v35 = vpop.permute.xlu1 %1870 }
  0x9c   : > { %897 = vrot.lane.b32.xlu0 %v2869_v59, %s3120_s13  ;;  %891 = vrot.lane.b32.xlu1 %v2866_v60, %s3120_s13  ;;  %v2825_v53 = vcombine.low %v329_v39, %v331_v40  ;;  %v727_v58 = vmul.bf16 %v3340_v25, %v3375_v52  ;;  %v2847_v59 = vcombine.high %v713_v54, %v715_v55  ;;  %v3439_v39 = vld [vmem:[%s3197_s12 + $0x90] sm:$0xff]  ;;  %v3442_v40 = vld [vmem:[%s3197_s12 + $0x9c] sm:$0xff] }
  0x9d   : > { %v2846_v1 = vcombine.low %v713_v54, %v715_v55  ;;  %v733_v5 = vmul.bf16 %v3340_v25, %v3396_v63  ;;  %v741_v10 = vmul.bf16 %v3340_v25, %v3420_v19  ;;  %v737_v54 = vmul.bf16 %v3340_v25, %v3439_v39 }
  0x9e   : > { %v2856_v60 = vcombine.high %v725_v57, %v727_v58  ;;  %v2855_v4 = vcombine.low %v725_v57, %v727_v58  ;;  %v739_v55 = vmul.bf16 %v3340_v25, %v3442_v40 }
  0x9f   : > { %v3454_v57 = vpop.permute.xlu1 %994 }
  0xa0   : > { %1437 = vrot.lane.b32.xlu0 %v2902_v61, %s3121_s14  ;;  %442 = vrot.lane.b32.xlu1 %v2804_v0, %s3122_s17  ;;  %v3389_v61 = vld [vmem:[%s3197_s12 + $0x30] sm:$0xff]  ;;  %v3399_v0 = vld [vmem:[%s3197_s12 + $0x84] sm:$0xff] }
  0xa1   : > { %v721_v2 = vmul.bf16 %v3340_v25, %v3389_v61 }
  0xa4   : > { %1443 = vrot.lane.b32.xlu0 %v2905_v3, %s3121_s14  ;;  %454 = vrot.lane.b32.xlu1 %v2810_v6, %s3122_s17  ;;  %v723_v3 = vmul.bf16 %v3340_v25, %v3392_v62  ;;  %v735_v6 = vmul.bf16 %v3340_v25, %v3399_v0 }
  0xa6   : > { %v2853_v7 = vcombine.high %v721_v2, %v723_v3  ;;  %v2862_v8 = vcombine.high %v733_v5, %v735_v6  ;;  %v2852_v23 = vcombine.low %v721_v2, %v723_v3  ;;  %v2861_v29 = vcombine.low %v733_v5, %v735_v6 }
  0xa7   : > { %v2864_v5 = vcombine.low %v737_v54, %v739_v55  ;;  %v3477_v6 = vsel %vm296_vm2, %v3292_v51, %v3275_v44 }
  0xa8   : > { %448 = vrot.lane.b32.xlu0 %v2807_v9, %s3122_s17  ;;  %466 = vrot.lane.b32.xlu1 %v2816_v20, %s3122_s17  ;;  %v3413_v9 = vld [vmem:[%s3197_s12 + $0x60] sm:$0xff]  ;;  %v3423_v20 = vld [vmem:[%s3197_s12 + $0xb4] sm:$0xff] }
  0xa9   : > { %v729_v24 = vmul.bf16 %v3340_v25, %v3413_v9 }
  0xac   : > { %460 = vrot.lane.b32.xlu0 %v2813_v28, %s3122_s17  ;;  %478 = vrot.lane.b32.xlu1 %v2822_v14, %s3122_s17  ;;  %v731_v28 = vmul.bf16 %v3340_v25, %v3416_v18  ;;  %v743_v14 = vmul.bf16 %v3340_v25, %v3423_v20 }
  0xae   : > { %v2859_v36 = vcombine.high %v729_v24, %v731_v28 }
  0xb0   : > { %472 = vrot.lane.b32.xlu0 %v2819_v38, %s3122_s17  ;;  %859 = vrot.lane.b32.xlu1 %v2850_v41, %s3120_s13  ;;  %v2868_v38 = vcombine.high %v741_v10, %v743_v14  ;;  %v3446_v41 = vsel %vm1291_vm1, %v3278_v45, %v3258_v34 }
  0xb1   : > { %v1295_v58 = vmul.bf16 %v3446_v41, %v3365_v48  ;;  %v1297_v34 = vmul.bf16 %v3446_v41, %v3368_v49  ;;  %v1301_v44 = vmul.bf16 %v3446_v41, %v3347_v27 }
  0xb4   : > { %484 = vrot.lane.b32.xlu0 %v2825_v53, %s3122_s17  ;;  %857 = vrot.lane.b32.xlu1 %v2849_v56, %s3120_s13  ;;  %v2858_v53 = vcombine.low %v729_v24, %v731_v28  ;;  %v2867_v56 = vcombine.low %v741_v10, %v743_v14  ;;  %v300_v24 = vmul.bf16 %v3477_v6, %v3365_v48 }
  0xb5   : > { %v242_v10 = vmul.bf16 %v3180_v37, %v3368_v49 }
  0xb8   : > { %853 = vrot.lane.b32.xlu0 %v2847_v59, %s3120_s13  ;;  %871 = vrot.lane.b32.xlu1 %v2856_v60, %s3120_s13  ;;  %v3463_v59 = vrot.slane %v3454_v57, 4  ;;  %v2865_v60 = vcombine.high %v737_v54, %v739_v55  ;;  %v308_v54 = vmul.bf16 %v3477_v6, %v3389_v61  ;;  %v310_v55 = vmul.bf16 %v3477_v6, %v3392_v62 }
  0xba   : > { %v1002_v25 = vmul.bf16 %v3463_v59, %v3208_v13  ;;  %v1004_v2 = vmul.bf16 %v3463_v59, %v3214_v15  ;;  %v1006_v3 = vmul.bf16 %v3463_v59, %v3202_v11  ;;  %v302_v11 = vmul.bf16 %v3477_v6, %v3368_v49 }
  0xbc   : > { %851 = vrot.lane.b32.xlu0 %v2846_v1, %s3120_s13  ;;  %869 = vrot.lane.b32.xlu1 %v2855_v4, %s3120_s13  ;;  %v2901_v1 = vcombine.high %v1295_v58, %v1297_v34  ;;  %v1008_v4 = vmul.bf16 %v3463_v59, %v3205_v12  ;;  %v1299_v12 = vmul.bf16 %v3446_v41, %v3344_v26 }
  0xbd   : > { %v2803_v51 = vcombine.high %v300_v24, %v302_v11 }
  0xbe   : > { %v2904_v28 = vcombine.high %v1299_v12, %v1301_v44 }
  0xc0   : > { %865 = vrot.lane.b32.xlu0 %v2853_v7, %s3120_s13  ;;  %883 = vrot.lane.b32.xlu1 %v2862_v8, %s3120_s13  ;;  %v2900_v7 = vcombine.low %v1295_v58, %v1297_v34  ;;  %v2874_v8 = vcombine.low %v1002_v25, %v1004_v2  ;;  %v306_v58 = vmul.bf16 %v3477_v6, %v3347_v27 }
  0xc1   : > { %v243_v34 = vmul.bf16 %v3180_v37, %v3344_v26  ;;  %v2809_v2 = vcombine.high %v308_v54, %v310_v55 }
  0xc4   : > { %863 = vrot.lane.b32.xlu0 %v2852_v23, %s3120_s13  ;;  %881 = vrot.lane.b32.xlu1 %v2861_v29, %s3120_s13  ;;  %v2877_v23 = vcombine.low %v1006_v3, %v1008_v4  ;;  %v241_v29 = vmul.bf16 %v3180_v37, %v3365_v48  ;;  %v245_v4 = vmul.bf16 %v3180_v37, %v3389_v61 }
  0xc6   : > { %v2827_v14 = vcombine.high %v241_v29, %v242_v10 }
  0xc8   : > { %877 = vrot.lane.b32.xlu0 %v2859_v36, %s3120_s13  ;;  %895 = vrot.lane.b32.xlu1 %v2868_v38, %s3120_s13  ;;  %v2826_v36 = vcombine.low %v241_v29, %v242_v10  ;;  %v2903_v38 = vcombine.low %v1299_v12, %v1301_v44  ;;  %v318_v12 = vmul.bf16 %v3477_v6, %v3416_v18 }
  0xc9   : > { %640 = vmatprep.subr.bf16.mxu1 %v2827_v14  ;;  %v312_v44 = vmul.bf16 %v3477_v6, %v3372_v50  ;;  %v248_v29 = vmul.bf16 %v3180_v37, %v3375_v52 }
  0xca   : > { %641 = vmatpush1.bf16.msra.mxu1 %v2826_v36 }
  0xcc   : > { %875 = vrot.lane.b32.xlu0 %v2858_v53, %s3120_s13  ;;  %893 = vrot.lane.b32.xlu1 %v2867_v56, %s3120_s13  ;;  %v2802_v53 = vcombine.low %v300_v24, %v302_v11  ;;  %v304_v56 = vmul.bf16 %v3477_v6, %v3344_v26  ;;  %v2808_v24 = vcombine.low %v308_v54, %v310_v55 }
  0xcd   : > { %v316_v11 = vmul.bf16 %v3477_v6, %v3413_v9  ;;  %v250_v54 = vmul.bf16 %v3180_v37, %v3416_v18 }
  0xce   : > { %v2806_v3 = vcombine.high %v304_v56, %v306_v58 }
  0xcf   : > { %v2815_v36 = vcombine.high %v316_v11, %v318_v12 }
  0xd0   : > { %889 = vrot.lane.b32.xlu0 %v2865_v60, %s3120_s13  ;;  %1435 = vrot.lane.b32.xlu1 %v2901_v1, %s3121_s14  ;;  %v244_v60 = vmul.bf16 %v3180_v37, %v3347_v27 }
  0xd2   : > { %v2829_v1 = vcombine.high %v243_v34, %v244_v60  ;;  %v2828_v25 = vcombine.low %v243_v34, %v244_v60  ;;  %v2814_v34 = vcombine.low %v316_v11, %v318_v12  ;;  %v324_v60 = vmul.bf16 %v3477_v6, %v3439_v39 }
  0xd3   : > { %v253_v12 = vmul.bf16 %v3180_v37, %v3439_v39 }
  0xd4   : > { %887 = vrot.lane.b32.xlu0 %v2864_v5, %s3120_s13  ;;  %1433 = vrot.lane.b32.xlu1 %v2900_v7, %s3121_s14  ;;  %v246_v5 = vmul.bf16 %v3180_v37, %v3392_v62 }
  0xd5   : > { %642 = vmatprep.subr.bf16.mxu1 %v2829_v1  ;;  %v326_v1 = vmul.bf16 %v3477_v6, %v3442_v40 }
  0xd6   : > { %643 = vmatpush1.bf16.msra.mxu1 %v2828_v25  ;;  %v2831_v7 = vcombine.high %v245_v4, %v246_v5  ;;  %v320_v25 = vmul.bf16 %v3477_v6, %v3396_v63 }
  0xd8   : > { %1143 = vrot.lane.b32.xlu0 %v2874_v8, %s3123_s18  ;;  %1149 = vrot.lane.b32.xlu1 %v2877_v23, %s3123_s18  ;;  %v2830_v8 = vcombine.low %v245_v4, %v246_v5  ;;  %v2805_v23 = vcombine.low %v304_v56, %v306_v58  ;;  %v252_v4 = vmul.bf16 %v3180_v37, %v3399_v0  ;;  %v3550_v5 = vpop.permute.xlu0 %1576 }
  0xd9   : > { %644 = vmatprep.subr.bf16.mxu1 %v2831_v7 }
  0xda   : > { %645 = vmatpush1.bf16.msra.mxu1 %v2830_v8 }
  0xdc   : > { %440 = vrot.lane.b32.xlu0 %v2803_v51, %s3122_s17  ;;  %1441 = vrot.lane.b32.xlu1 %v2904_v28, %s3121_s14  ;;  %v314_v51 = vmul.bf16 %v3477_v6, %v3375_v52  ;;  %v247_v28 = vmul.bf16 %v3180_v37, %v3372_v50 }
  0xde   : > { %v2833_v10 = vcombine.high %v247_v28, %v248_v29  ;;  %v2832_v14 = vcombine.low %v247_v28, %v248_v29  ;;  %v2811_v58 = vcombine.low %v312_v44, %v314_v51 }
  0xe0   : > { %438 = vrot.lane.b32.xlu0 %v2802_v53, %s3122_s17  ;;  %1439 = vrot.lane.b32.xlu1 %v2903_v38, %s3121_s14  ;;  %v2812_v38 = vcombine.high %v312_v44, %v314_v51  ;;  %v249_v53 = vmul.bf16 %v3180_v37, %v3413_v9  ;;  %v254_v44 = vmul.bf16 %v3180_v37, %v3442_v40 }
  0xe1   : > { %646 = vmatprep.subr.bf16.mxu1 %v2833_v10  ;;  %v2820_v10 = vcombine.low %v324_v60, %v326_v1 }
  0xe2   : > { %647 = vmatpush1.bf16.msra.mxu1 %v2832_v14  ;;  %v2835_v55 = vcombine.high %v249_v53, %v250_v54  ;;  %v2834_v56 = vcombine.low %v249_v53, %v250_v54  ;;  %v2839_v28 = vcombine.high %v253_v12, %v254_v44  ;;  %v2838_v29 = vcombine.low %v253_v12, %v254_v44  ;;  %v3563_v14 = vpop.permute.xlu0 %2158 }
  0xe3   : > { %4518 = vst [vmem:[#allocation2_spill] sm:$0xff] %v3563_v14  ;;  %v330_v53 = vmul.bf16 %v3477_v6, %v3423_v20  ;;  %v255_v54 = vmul.bf16 %v3180_v37, %v3420_v19 }
  0xe4   : > { %452 = vrot.lane.b32.xlu0 %v2809_v2, %s3122_s17  ;;  %446 = vrot.lane.b32.xlu1 %v2806_v3, %s3122_s17  ;;  %v322_v2 = vmul.bf16 %v3477_v6, %v3399_v0  ;;  %v251_v3 = vmul.bf16 %v3180_v37, %v3396_v63 }
  0xe5   : > { %648 = vmatprep.subr.bf16.mxu1 %v2835_v55  ;;  %v256_v55 = vmul.bf16 %v3180_v37, %v3423_v20  ;;  %v257_v37 = vld [vmem:[%s4505_s1] sm:$0x3] }
  0xe6   : > { %649 = vmatpush1.bf16.msra.mxu1 %v2834_v56  ;;  %v2837_v7 = vcombine.high %v251_v3, %v252_v4  ;;  %v2836_v8 = vcombine.low %v251_v3, %v252_v4  ;;  %v2818_v11 = vcombine.high %v320_v25, %v322_v2  ;;  %v2817_v51 = vcombine.low %v320_v25, %v322_v2 }
  0xe7   : > { %v2841_v56 = vcombine.high %v255_v54, %v256_v55 }
  0xe8   : > { %450 = vrot.lane.b32.xlu0 %v2808_v24, %s3122_s17  ;;  %444 = vrot.lane.b32.xlu1 %v2805_v23, %s3122_s17  ;;  %v2821_v23 = vcombine.high %v324_v60, %v326_v1  ;;  %v3555_v24 = vsel %vm997_vm3, %v3463_v59, %v3454_v57  ;;  %v328_v57 = vmul.bf16 %v3477_v6, %v3420_v19  ;;  %v3582_v1 = vpop.permute.xlu0 %2452 }
  0xe9   : > { %650 = vmatprep.subr.bf16.mxu1 %v2837_v7  ;;  %4519 = vst [vmem:[#allocation3_spill] sm:$0xff] %v3582_v1  ;;  %v1009_v2 = vmul.bf16 %v3555_v24, %v3389_v61  ;;  %v1011_v3 = vmul.bf16 %v3555_v24, %v3392_v62  ;;  %v1001_v7 = vmul.bf16 %v3555_v24, %v3365_v48 }
  0xea   : > { %651 = vmatpush1.bf16.msra.mxu1 %v2836_v8  ;;  %v2824_v6 = vcombine.high %v328_v57, %v330_v53  ;;  %v2823_v4 = vcombine.low %v328_v57, %v330_v53  ;;  %v1003_v8 = vmul.bf16 %v3555_v24, %v3368_v49  ;;  %v1012_v53 = vmul.bf16 %v3463_v59, %v3232_v22 }
  0xeb   : > { %652 = vmatprep.subr.bf16.mxu1 %v2839_v28  ;;  %v2878_v28 = vcombine.low %v1009_v2, %v1011_v3  ;;  %v1022_v1 = vmul.bf16 %v3463_v59, %v3245_v30  ;;  %v1027_v14 = vmul.bf16 %v3555_v24, %v3442_v40 }
  0xec   : > { %464 = vrot.lane.b32.xlu0 %v2815_v36, %s3122_s17  ;;  %458 = vrot.lane.b32.xlu1 %v2812_v38, %s3122_s17  ;;  %v1005_v36 = vmul.bf16 %v3555_v24, %v3344_v26  ;;  %v1007_v38 = vmul.bf16 %v3555_v24, %v3347_v27  ;;  %v2873_v44 = vcombine.high %v1001_v7, %v1003_v8 }
  0xee   : > { %653 = vmatpush1.bf16.msra.mxu1 %v2838_v29  ;;  %v2876_v60 = vcombine.high %v1005_v36, %v1007_v38  ;;  %v2875_v25 = vcombine.low %v1005_v36, %v1007_v38  ;;  %v1304_v29 = vmul.bf16 %v3278_v45, %v3229_v21  ;;  %v2872_v36 = vcombine.low %v1001_v7, %v1003_v8 }
  0xef   : > { %654 = vmatprep.subr.bf16.mxu1 %v2841_v56  ;;  %v1010_v38 = vmul.bf16 %v3463_v59, %v3229_v21  ;;  %v1013_v56 = vmul.bf16 %v3555_v24, %v3372_v50  ;;  %v1303_v21 = vmul.bf16 %v3446_v41, %v3389_v61  ;;  %v1308_v8 = vmul.bf16 %v3278_v45, %v3217_v16 }
  0xf0   : > { %462 = vrot.lane.b32.xlu0 %v2814_v34, %s3122_s17  ;;  %456 = vrot.lane.b32.xlu1 %v2811_v58, %s3122_s17  ;;  %v4509_v58 = vmov 0   ;;  %v2840_v34 = vcombine.low %v255_v54, %v256_v55 }
  0xf1   : > { %551 = vmatprep.mubr.bf16.mxu0 %v4509_v58  ;;  %672 = vmatprep.mubr.bf16.mxu1 %v4509_v58 }
  0xf2   : > { %655 = vmatpush1.bf16.msra.mxu1 %v2840_v34  ;;  %3061 = vset.pattern.permute.xlu0 %v4509_v58  ;;  %v1015_v34 = vmul.bf16 %v3555_v24, %v3375_v52 }
  0xf4   : > { %476 = vrot.lane.b32.xlu0 %v2821_v23, %s3122_s17  ;;  %470 = vrot.lane.b32.xlu1 %v2818_v11, %s3122_s17  ;;  %v2879_v11 = vcombine.high %v1009_v2, %v1011_v3  ;;  %v2881_v7 = vcombine.low %v1013_v56, %v1015_v34 }
  0xf5   : > { %673 = vmatmul.mubr.bf16.vlgmr.msra.gmra.mrb[0].mxu1 %v257_v37 }
  0xf6   : > { %1252 = vmatprep.mubr.bf16.mxu1 %v4509_v58 }
  0xf8   : > { %474 = vrot.lane.b32.xlu0 %v2820_v10, %s3122_s17  ;;  %468 = vrot.lane.b32.xlu1 %v2817_v51, %s3122_s17  ;;  %v1306_v10 = vmul.bf16 %v3278_v45, %v3232_v22  ;;  %v1305_v22 = vmul.bf16 %v3446_v41, %v3392_v62 }
  0xfa   : > { %v2908_v55 = vcombine.low %v1304_v29, %v1306_v10  ;;  %v2907_v3 = vcombine.high %v1303_v21, %v1305_v22  ;;  %v1014_v29 = vmul.bf16 %v3463_v59, %v3217_v16  ;;  %v1016_v10 = vmul.bf16 %v3463_v59, %v3220_v17 }
  0xfb   : > { %v1307_v16 = vmul.bf16 %v3446_v41, %v3372_v50 }
  0xfc   : > { %1147 = vrot.lane.b32.xlu0 %v2876_v60, %s3123_s18  ;;  %482 = vrot.lane.b32.xlu1 %v2824_v6, %s3122_s17  ;;  %v2880_v6 = vcombine.low %v1010_v38, %v1012_v53  ;;  %v1017_v53 = vmul.bf16 %v3555_v24, %v3413_v9 }
 0x100   : > { %1145 = vrot.lane.b32.xlu0 %v2875_v25, %s3123_s18  ;;  %480 = vrot.lane.b32.xlu1 %v2823_v4, %s3122_s17  ;;  %v2882_v25 = vcombine.high %v1013_v56, %v1015_v34  ;;  %v2883_v34 = vcombine.low %v1014_v29, %v1016_v10  ;;  %v1018_v10 = vmul.bf16 %v3463_v59, %v3252_v32 }
 0x102   : > { %v3600_v23 = vpop.permute.xlu0 %861  ;;  %v3602_v12 = vpop.permute.xlu1 %855 }
 0x104   : > { %1153 = vrot.lane.b32.xlu0 %v2879_v11, %s3123_s18  ;;  %1141 = vrot.lane.b32.xlu1 %v2873_v44, %s3123_s18  ;;  %v1310_v11 = vmul.bf16 %v3278_v45, %v3220_v17  ;;  %v1309_v17 = vmul.bf16 %v3446_v41, %v3375_v52 }
 0x106   : > { %v3606_v51 = vpop.permute.xlu0 %873  ;;  %v3612_v57 = vpop.permute.xlu1 %867  ;;  %v2911_v38 = vcombine.low %v1308_v8, %v1310_v11  ;;  %v1312_v8 = vmul.bf16 %v3278_v45, %v3252_v32  ;;  %v1314_v11 = vmul.bf16 %v3278_v45, %v3255_v33  ;;  %v2909_v29 = vcombine.low %v1307_v16, %v1309_v17 }
 0x107   : > { %v1311_v32 = vmul.bf16 %v3446_v41, %v3413_v9 }
 0x108   : > { %1151 = vrot.lane.b32.xlu0 %v2878_v28, %s3123_s18  ;;  %1139 = vrot.lane.b32.xlu1 %v2872_v36, %s3123_s18  ;;  %v2906_v28 = vcombine.low %v1303_v21, %v1305_v22 }
 0x10a   : > { %v3620_v54 = vpop.permute.xlu0 %885  ;;  %v3626_v60 = vpop.permute.xlu1 %879 }
 0x10c   : > { %1449 = vrot.lane.b32.xlu0 %v2908_v55, %s3121_s14  ;;  %1155 = vrot.lane.b32.xlu1 %v2880_v6, %s3123_s18  ;;  %v1019_v55 = vmul.bf16 %v3555_v24, %v3416_v18 }
 0x10e   : > { %v3634_v37 = vpop.permute.xlu0 %897  ;;  %v3636_v2 = vpop.permute.xlu1 %891  ;;  %v2885_v21 = vcombine.high %v1017_v53, %v1019_v55 }
 0x110   : > { %1159 = vrot.lane.b32.xlu0 %v2882_v25, %s3123_s18  ;;  %1447 = vrot.lane.b32.xlu1 %v2907_v3, %s3121_s14  ;;  %v2910_v25 = vcombine.high %v1307_v16, %v1309_v17 }
 0x112   : > { %v3640_v4 = vpop.permute.xlu0 %1437  ;;  %v3646_v44 = vpop.permute.xlu1 %442 }
 0x113   : > { %4520 = vst [vmem:[#allocation4_spill] sm:$0xff] %v3640_v4  ;;  %v1031_v4 = vmul.bf16 %v3555_v24, %v3423_v20 }
 0x114   : > { %1157 = vrot.lane.b32.xlu0 %v2881_v7, %s3123_s18  ;;  %1445 = vrot.lane.b32.xlu1 %v2906_v28, %s3121_s14  ;;  %v2884_v7 = vcombine.low %v1017_v53, %v1019_v55  ;;  %v2914_v55 = vcombine.low %v1312_v8, %v1314_v11 }
 0x116   : > { %v3654_v36 = vpop.permute.xlu0 %1443  ;;  %v3660_v56 = vpop.permute.xlu1 %454 }
 0x117   : > { %4521 = vst [vmem:[#allocation5_spill] sm:$0xff] %v3654_v36  ;;  %v1026_v36 = vmul.bf16 %v3463_v59, %v3281_v46 }
 0x118   : > { %1455 = vrot.lane.b32.xlu0 %v2911_v38, %s3121_s14  ;;  %1161 = vrot.lane.b32.xlu1 %v2883_v34, %s3123_s18  ;;  %v1020_v38 = vmul.bf16 %v3463_v59, %v3255_v33  ;;  %v1021_v34 = vmul.bf16 %v3555_v24, %v3396_v63  ;;  %v1313_v33 = vmul.bf16 %v3446_v41, %v3416_v18 }
 0x11a   : > { %v3668_v6 = vpop.permute.xlu0 %448  ;;  %v3670_v22 = vpop.permute.xlu1 %466  ;;  %v2886_v17 = vcombine.low %v1018_v10, %v1020_v38  ;;  %v2913_v11 = vcombine.high %v1311_v32, %v1313_v33  ;;  %v1316_v38 = vmul.bf16 %v3278_v45, %v3245_v30  ;;  %v2912_v58 = vcombine.low %v1311_v32, %v1313_v33 }
 0x11b   : > { %v1315_v30 = vmul.bf16 %v3446_v41, %v3396_v63 }
 0x11c   : > { %1165 = vrot.lane.b32.xlu0 %v2885_v21, %s3123_s18  ;;  %1453 = vrot.lane.b32.xlu1 %v2910_v25, %s3121_s14  ;;  %v1023_v21 = vmul.bf16 %v3555_v24, %v3399_v0 }
 0x11e   : > { %v3674_v3 = vpop.permute.xlu0 %460  ;;  %v3680_v28 = vpop.permute.xlu1 %478  ;;  %v2887_v10 = vcombine.low %v1021_v34, %v1023_v21 }
 0x120   : > { %1163 = vrot.lane.b32.xlu0 %v2884_v7, %s3123_s18  ;;  %1451 = vrot.lane.b32.xlu1 %v2909_v29, %s3121_s14  ;;  %v2888_v7 = vcombine.high %v1021_v34, %v1023_v21 }
 0x122   : > { %v3688_v53 = vpop.permute.xlu0 %472  ;;  %v3694_v16 = vpop.permute.xlu1 %859 }
 0x124   : > { %1461 = vrot.lane.b32.xlu0 %v2914_v55, %s3121_s14  ;;  %1167 = vrot.lane.b32.xlu1 %v2886_v17, %s3123_s18  ;;  %v1318_v55 = vmul.bf16 %v3278_v45, %v3248_v31 }
 0x126   : > { %v3702_v25 = vpop.permute.xlu0 %484  ;;  %v3704_v8 = vpop.permute.xlu1 %857  ;;  %v2917_v21 = vcombine.low %v1316_v38, %v1318_v55 }
 0x128   : > { %1171 = vrot.lane.b32.xlu0 %v2888_v7, %s3123_s18  ;;  %1459 = vrot.lane.b32.xlu1 %v2913_v11, %s3121_s14  ;;  %v1024_v7 = vmul.bf16 %v3463_v59, %v3248_v31  ;;  %v1025_v11 = vmul.bf16 %v3555_v24, %v3439_v39  ;;  %v1317_v31 = vmul.bf16 %v3446_v41, %v3399_v0 }
 0x129   : > { %v1320_v0 = vmul.bf16 %v3278_v45, %v3281_v46  ;;  %v1319_v46 = vmul.bf16 %v3446_v41, %v3439_v39 }
 0x12a   : > { %v3708_v29 = vpop.permute.xlu0 %853  ;;  %v3714_v17 = vpop.permute.xlu1 %871  ;;  %v2889_v33 = vcombine.low %v1022_v1, %v1024_v7  ;;  %v2916_v55 = vcombine.high %v1315_v30, %v1317_v31  ;;  %v2890_v63 = vcombine.low %v1025_v11, %v1027_v14  ;;  %v1322_v7 = vmul.bf16 %v3278_v45, %v3284_v47 }
 0x12c   : > { %1169 = vrot.lane.b32.xlu0 %v2887_v10, %s3123_s18  ;;  %1457 = vrot.lane.b32.xlu1 %v2912_v58, %s3121_s14  ;;  %v2891_v10 = vcombine.high %v1025_v11, %v1027_v14  ;;  %v2920_v11 = vcombine.low %v1320_v0, %v1322_v7  ;;  %v3773_v7 = vrot.slane %v3550_v5, 4 }
 0x12e   : > { %v3722_v34 = vpop.permute.xlu0 %851  ;;  %v3728_v32 = vpop.permute.xlu1 %869 }
 0x130   : > { %1467 = vrot.lane.b32.xlu0 %v2917_v21, %s3121_s14  ;;  %1173 = vrot.lane.b32.xlu1 %v2889_v33, %s3123_s18  ;;  %v2915_v33 = vcombine.low %v1315_v30, %v1317_v31 }
 0x132   : > { %v3736_v58 = vpop.permute.xlu0 %865  ;;  %v3738_v38 = vpop.permute.xlu1 %883 }
 0x134   : > { %1177 = vrot.lane.b32.xlu0 %v2891_v10, %s3123_s18  ;;  %1465 = vrot.lane.b32.xlu1 %v2916_v55, %s3121_s14  ;;  %v1028_v10 = vmul.bf16 %v3463_v59, %v3284_v47  ;;  %v1029_v55 = vmul.bf16 %v3555_v24, %v3420_v19  ;;  %v1321_v47 = vmul.bf16 %v3446_v41, %v3442_v40 }
 0x136   : > { %v3742_v1 = vpop.permute.xlu0 %863  ;;  %v3748_v21 = vpop.permute.xlu1 %881  ;;  %v2892_v31 = vcombine.low %v1026_v36, %v1028_v10  ;;  %v2894_v0 = vcombine.high %v1029_v55, %v1031_v4  ;;  %v2893_v40 = vcombine.low %v1029_v55, %v1031_v4  ;;  %v1324_v36 = vmul.bf16 %v3278_v45, %v3269_v42 }
 0x137   : > { %v1326_v10 = vmul.bf16 %v3278_v45, %v3272_v43 }
 0x138   : > { %1175 = vrot.lane.b32.xlu0 %v2890_v63, %s3123_s18  ;;  %1463 = vrot.lane.b32.xlu1 %v2915_v33, %s3121_s14  ;;  %v2919_v33 = vcombine.high %v1319_v46, %v1321_v47 }
 0x139   : > { %v2923_v45 = vcombine.low %v1324_v36, %v1326_v10  ;;  %v3816_v10 = vrot.slane %v3436_v35, 4 }
 0x13a   : > { %v3756_v14 = vpop.permute.xlu0 %877  ;;  %v3762_v30 = vpop.permute.xlu1 %895 }
 0x13c   : > { %1473 = vrot.lane.b32.xlu0 %v2920_v11, %s3121_s14  ;;  %1179 = vrot.lane.b32.xlu1 %v2892_v31, %s3123_s18  ;;  %v3787_v11 = vsel %vm1579_vm4, %v3773_v7, %v3550_v5 }
 0x13d   : > { %v1583_v5 = vmul.bf16 %v3787_v11, %v3365_v48  ;;  %v1585_v55 = vmul.bf16 %v3787_v11, %v3368_v49 }
 0x13e   : > { %v3770_v63 = vpop.permute.xlu0 %875  ;;  %v3775_v24 = vpop.permute.xlu1 %893 }
 0x13f   : > { %4522 = vst [vmem:[#allocation6_spill] sm:$0xff] %v3775_v24  ;;  %v2918_v24 = vcombine.low %v1319_v46, %v1321_v47 }
 0x140   : > { %1183 = vrot.lane.b32.xlu0 %v2894_v0, %s3123_s18  ;;  %1471 = vrot.lane.b32.xlu1 %v2919_v33, %s3121_s14  ;;  %v1030_v0 = vmul.bf16 %v3463_v59, %v3269_v42  ;;  %v1032_v33 = vmul.bf16 %v3463_v59, %v3272_v43  ;;  %v1323_v42 = vmul.bf16 %v3446_v41, %v3420_v19 }
 0x141   : > { %v1325_v43 = vmul.bf16 %v3446_v41, %v3423_v20  ;;  %v2926_v20 = vcombine.low %v1583_v5, %v1585_v55  ;;  %v1878_v41 = vmul.bf16 %v3816_v10, %v3208_v13 }
 0x142   : > { %v3779_v39 = vpop.permute.xlu0 %889  ;;  %v3789_v31 = vpop.permute.xlu1 %1435  ;;  %v2895_v47 = vcombine.low %v1030_v0, %v1032_v33  ;;  %v1880_v0 = vmul.bf16 %v3816_v10, %v3214_v15 }
 0x143   : > { %v2922_v36 = vcombine.high %v1323_v42, %v1325_v43 }
 0x144   : > { %1181 = vrot.lane.b32.xlu0 %v2893_v40, %s3123_s18  ;;  %1469 = vrot.lane.b32.xlu1 %v2918_v24, %s3121_s14  ;;  %v2927_v24 = vcombine.high %v1583_v5, %v1585_v55  ;;  %v3834_v5 = vsel %vm1873_vm6, %v3816_v10, %v3436_v35 }
 0x145   : > { %v1877_v35 = vmul.bf16 %v3834_v5, %v3365_v48 }
 0x146   : > { %v3797_v4 = vpop.permute.xlu0 %887  ;;  %v3803_v46 = vpop.permute.xlu1 %1433 }
 0x148   : > { %1479 = vrot.lane.b32.xlu0 %v2923_v45, %s3121_s14  ;;  %1185 = vrot.lane.b32.xlu1 %v2895_v47, %s3123_s18  ;;  %v2921_v45 = vcombine.low %v1323_v42, %v1325_v43  ;;  %v2956_v42 = vcombine.low %v1878_v41, %v1880_v0 }
 0x14a   : > { %v3811_v59 = vpop.permute.xlu0 %1143  ;;  %v3813_v40 = vpop.permute.xlu1 %1149 }
 0x14c   : > { %1723 = vrot.lane.b32.xlu0 %v2927_v24, %s3125_s21  ;;  %1477 = vrot.lane.b32.xlu1 %v2922_v36, %s3121_s14  ;;  %v1584_v24 = vmul.bf16 %v3773_v7, %v3208_v13  ;;  %v1586_v36 = vmul.bf16 %v3773_v7, %v3214_v15  ;;  %v1589_v13 = vmul.bf16 %v3787_v11, %v3347_v27 }
 0x14e   : > { %v441_v19 = vpop.permute.xlu0 %440  ;;  %v3824_v33 = vpop.permute.xlu1 %1441  ;;  %v2928_v15 = vcombine.low %v1584_v24, %v1586_v36  ;;  %v3856_v24 = vld [vmem:[%s3197_s12 + $0x20] sm:$0xf]  ;;  %v3861_v36 = vld [vmem:[%s3197_s12 + $0x2c] sm:$0xf] }
 0x14f   : > { %4523 = vst [vmem:[#allocation7_spill] sm:$0xff] %v3824_v33  ;;  %v488_v47 = vsel %vm486_vm5, %v441_v19, %v3646_v44  ;;  %v1587_v44 = vmul.bf16 %v3787_v11, %v3344_v26  ;;  %4524 = vst [vmem:[#allocation8_spill] sm:$0xff] %v3856_v24 }
 0x150   : > { %519 = vmatprep.subr.bf16.mxu0 %v488_v47  ;;  %1721 = vrot.lane.b32.xlu0 %v2926_v20, %s3125_s21  ;;  %v1879_v20 = vmul.bf16 %v3834_v5, %v3368_v49  ;;  %4525 = vst [vmem:[#allocation9_spill] sm:$0xff] %v3861_v36 }
 0x151   : > { %1475 = vrot.lane.b32.xlu1 %v2921_v45, %s3121_s14  ;;  %v2930_v0 = vcombine.high %v1587_v44, %v1589_v13 }
 0x152   : > { %v439_v55 = vpop.permute.xlu0 %438  ;;  %v3842_v43 = vpop.permute.xlu1 %1439  ;;  %v2955_v47 = vcombine.high %v1877_v35, %v1879_v20 }
 0x153   : > { %v487_v33 = vsel %vm486_vm5, %v439_v55, %v441_v19  ;;  %v2929_v19 = vcombine.low %v1587_v44, %v1589_v13  ;;  %v1884_v55 = vmul.bf16 %v3861_v36, %v3816_v10 }
 0x154   : > { %2019 = vrot.lane.b32.xlu0 %v2956_v42, %s3126_s22  ;;  %520 = vmatpush1.bf16.msra.mxu0 %v487_v33  ;;  %v1882_v33 = vmul.bf16 %v3856_v24, %v3816_v10 }
 0x155   : > { %1725 = vrot.lane.b32.xlu1 %v2928_v15, %s3125_s21  ;;  %v2954_v15 = vcombine.low %v1877_v35, %v1879_v20  ;;  %v1591_v35 = vmul.bf16 %v3787_v11, %v3389_v61  ;;  %v1593_v20 = vmul.bf16 %v3787_v11, %v3392_v62 }
 0x156   : > { %v453_v41 = vpop.permute.xlu0 %452  ;;  %v447_v45 = vpop.permute.xlu1 %446 }
 0x157   : > { %v490_v48 = vsel %vm486_vm5, %v447_v45, %v3668_v6  ;;  %v1588_v6 = vmul.bf16 %v3856_v24, %v3773_v7  ;;  %v492_v13 = vsel %vm486_vm5, %v453_v41, %v3660_v56 }
 0x158   : > { %1729 = vrot.lane.b32.xlu0 %v2930_v0, %s3125_s21  ;;  %521 = vmatprep.subr.bf16.mxu0 %v490_v48  ;;  %v1590_v0 = vmul.bf16 %v3861_v36, %v3773_v7  ;;  %v2959_v48 = vcombine.low %v1882_v33, %v1884_v55 }
 0x159   : > { %2017 = vrot.lane.b32.xlu1 %v2955_v47, %s3126_s22 }
 0x15a   : > { %v451_v49 = vpop.permute.xlu0 %450  ;;  %v445_v42 = vpop.permute.xlu1 %444  ;;  %v2931_v24 = vcombine.low %v1588_v6, %v1590_v0  ;;  %v3898_v0 = vld [vmem:[%s3197_s12 + $0x44] sm:$0xf] }
 0x15b   : > { %v489_v44 = vsel %vm486_vm5, %v445_v42, %v447_v45  ;;  %v1881_v45 = vmul.bf16 %v3834_v5, %v3344_v26  ;;  %v491_v56 = vsel %vm486_vm5, %v451_v49, %v453_v41  ;;  %v2933_v42 = vcombine.high %v1591_v35, %v1593_v20 }
 0x15c   : > { %1727 = vrot.lane.b32.xlu0 %v2929_v19, %s3125_s21  ;;  %522 = vmatpush1.bf16.msra.mxu0 %v489_v44  ;;  %v1883_v19 = vmul.bf16 %v3834_v5, %v3347_v27  ;;  %v2932_v49 = vcombine.low %v1591_v35, %v1593_v20  ;;  %v1888_v44 = vmul.bf16 %v3898_v0, %v3816_v10 }
 0x15d   : > { %2015 = vrot.lane.b32.xlu1 %v2954_v15, %s3126_s22  ;;  %523 = vmatprep.subr.bf16.mxu0 %v492_v13 }
 0x15e   : > { %v465_v47 = vpop.permute.xlu0 %464  ;;  %v459_v36 = vpop.permute.xlu1 %458  ;;  %v2958_v26 = vcombine.high %v1881_v45, %v1883_v19  ;;  %v2957_v13 = vcombine.low %v1881_v45, %v1883_v19  ;;  %v1595_v45 = vmul.bf16 %v3787_v11, %v3372_v50  ;;  %v1597_v19 = vmul.bf16 %v3787_v11, %v3375_v52 }
 0x15f   : > { %v494_v33 = vsel %vm486_vm5, %v459_v36, %v3674_v3  ;;  %v496_v3 = vsel %vm486_vm5, %v465_v47, %v3670_v22  ;;  %v1594_v22 = vmul.bf16 %v3898_v0, %v3773_v7 }
 0x160   : > { %2025 = vrot.lane.b32.xlu0 %v2959_v48, %s3126_s22  ;;  %524 = vmatpush1.bf16.msra.mxu0 %v491_v56 }
 0x161   : > { %1731 = vrot.lane.b32.xlu1 %v2931_v24, %s3125_s21  ;;  %525 = vmatprep.subr.bf16.mxu0 %v494_v33  ;;  %v3893_v24 = vld [vmem:[%s3197_s12 + $0x38] sm:$0xf] }
 0x162   : > { %v463_v55 = vpop.permute.xlu0 %462  ;;  %v457_v15 = vpop.permute.xlu1 %456  ;;  %v1886_v6 = vmul.bf16 %v3893_v24, %v3816_v10  ;;  %v1592_v48 = vmul.bf16 %v3893_v24, %v3773_v7 }
 0x163   : > { %v493_v27 = vsel %vm486_vm5, %v457_v15, %v459_v36  ;;  %v495_v35 = vsel %vm486_vm5, %v463_v55, %v465_v47  ;;  %v1885_v47 = vmul.bf16 %v3834_v5, %v3389_v61 }
 0x164   : > { %1735 = vrot.lane.b32.xlu0 %v2933_v42, %s3125_s21  ;;  %526 = vmatpush1.bf16.msra.mxu0 %v493_v27  ;;  %v2962_v33 = vcombine.low %v1886_v6, %v1888_v44  ;;  %v2934_v15 = vcombine.low %v1592_v48, %v1594_v22  ;;  %v3939_v48 = vld [vmem:[%s3197_s12 + $0x5c] sm:$0xf] }
 0x165   : > { %2023 = vrot.lane.b32.xlu1 %v2958_v26, %s3126_s22  ;;  %527 = vmatprep.subr.bf16.mxu0 %v496_v3  ;;  %v2936_v3 = vcombine.high %v1595_v45, %v1597_v19 }
 0x166   : > { %v477_v41 = vpop.permute.xlu0 %476  ;;  %v471_v36 = vpop.permute.xlu1 %470 }
 0x167   : > { %v498_v20 = vsel %vm486_vm5, %v471_v36, %v3688_v53  ;;  %v1887_v53 = vmul.bf16 %v3834_v5, %v3392_v62  ;;  %v500_v26 = vsel %vm486_vm5, %v477_v41, %v3680_v28  ;;  %v2935_v28 = vcombine.low %v1595_v45, %v1597_v19  ;;  %v2801_v45 = vld [vmem:[%s4505_s1 + $0x2] sm:$0x3] }
 0x168   : > { %1733 = vrot.lane.b32.xlu0 %v2932_v49, %s3125_s21  ;;  %528 = vmatpush1.bf16.msra.mxu0 %v495_v35 }
 0x169   : > { %2021 = vrot.lane.b32.xlu1 %v2957_v13, %s3126_s22  ;;  %529 = vmatprep.subr.bf16.mxu0 %v498_v20  ;;  %v2961_v49 = vcombine.high %v1885_v47, %v1887_v53  ;;  %v2960_v35 = vcombine.low %v1885_v47, %v1887_v53  ;;  %v1598_v20 = vmul.bf16 %v3939_v48, %v3773_v7 }
 0x16a   : > { %v475_v56 = vpop.permute.xlu0 %474  ;;  %v469_v42 = vpop.permute.xlu1 %468  ;;  %v1601_v47 = vmul.bf16 %v3787_v11, %v3416_v18 }
 0x16b   : > { %v497_v55 = vsel %vm486_vm5, %v469_v42, %v471_v36  ;;  %v499_v62 = vsel %vm486_vm5, %v475_v56, %v477_v41  ;;  %v3934_v36 = vld [vmem:[%s3197_s12 + $0x50] sm:$0xf]  ;;  %v1892_v41 = vmul.bf16 %v3939_v48, %v3816_v10 }
 0x16c   : > { %2031 = vrot.lane.b32.xlu0 %v2962_v33, %s3126_s22  ;;  %530 = vmatpush1.bf16.msra.mxu0 %v497_v55  ;;  %v1890_v13 = vmul.bf16 %v3934_v36, %v3816_v10  ;;  %v901_v33 = vsel %vm899_vm7, %v3708_v29, %v3602_v12  ;;  %v1889_v12 = vmul.bf16 %v3834_v5, %v3372_v50 }
 0x16d   : > { %1737 = vrot.lane.b32.xlu1 %v2934_v15, %s3125_s21  ;;  %531 = vmatprep.subr.bf16.mxu0 %v500_v26  ;;  %v1599_v15 = vmul.bf16 %v3787_v11, %v3413_v9  ;;  %v1891_v26 = vmul.bf16 %v3834_v5, %v3375_v52  ;;  %v903_v50 = vsel %vm899_vm7, %v3694_v16, %v3600_v23 }
 0x16e   : > { %v3924_v27 = vpop.permute.xlu0 %1147  ;;  %v483_v61 = vpop.permute.xlu1 %482  ;;  %v2965_v42 = vcombine.low %v1890_v13, %v1892_v41  ;;  %v905_v23 = vsel %vm899_vm7, %v3736_v58, %v3612_v57  ;;  %v3997_v13 = vld [vmem:[%s3197_s12 + $0x74] sm:$0xf] }
 0x16f   : > { %v502_v6 = vsel %vm486_vm5, %v483_v61, %v3702_v25  ;;  %v1596_v25 = vmul.bf16 %v3934_v36, %v3773_v7  ;;  %v2939_v18 = vcombine.high %v1599_v15, %v1601_v47  ;;  %v1896_v41 = vmul.bf16 %v3997_v13, %v3816_v10 }
 0x170   : > { %1741 = vrot.lane.b32.xlu0 %v2936_v3, %s3125_s21  ;;  %532 = vmatpush1.bf16.msra.mxu0 %v499_v62  ;;  %v900_v3 = vsel %vm899_vm7, %v3722_v34, %v3708_v29  ;;  %v2964_v29 = vcombine.high %v1889_v12, %v1891_v26  ;;  %v4526_v34 = vmov 0   ;;  %v3987_v62 = vld [vmem:[%s3197_s12 + $0x68] sm:$0xf] }
 0x171   : > { %2029 = vrot.lane.b32.xlu1 %v2961_v49, %s3126_s22  ;;  %533 = vmatprep.subr.bf16.mxu0 %v502_v6  ;;  %v2937_v55 = vcombine.low %v1596_v25, %v1598_v20  ;;  %v1894_v6 = vmul.bf16 %v3987_v62, %v3816_v10  ;;  %v1602_v25 = vmul.bf16 %v3997_v13, %v3773_v7 }
 0x172   : > { %v3931_v44 = vpop.permute.xlu0 %1145  ;;  %v481_v22 = vpop.permute.xlu1 %480 }
 0x173   : > { %v501_v56 = vsel %vm486_vm5, %v481_v22, %v483_v61  ;;  %v2963_v22 = vcombine.low %v1889_v12, %v1891_v26  ;;  %v906_v26 = vsel %vm899_vm7, %v3728_v32, %v3714_v17  ;;  %v908_v32 = vsel %vm899_vm7, %v3770_v63, %v3756_v14 }
 0x174   : > { %1739 = vrot.lane.b32.xlu0 %v2935_v28, %s3125_s21  ;;  %534 = vmatpush1.bf16.msra.mxu0 %v501_v56  ;;  %v2938_v28 = vcombine.low %v1599_v15, %v1601_v47  ;;  %v1190_v56 = vsel %vm1187_vm8, %v3931_v44, %v3924_v27  ;;  %v4024_v15 = vld [vmem:[%s3197_s12 + $0x84] sm:$0xff] }
 0x175   : > { %2027 = vrot.lane.b32.xlu1 %v2960_v35, %s3126_s22  ;;  %932 = vmatprep.subr.bf16.mxu0 %v901_v33  ;;  %v1600_v35 = vmul.bf16 %v3987_v62, %v3773_v7  ;;  %v907_v33 = vsel %vm899_vm7, %v3714_v17, %v3606_v51 }
 0x176   : > { %v3956_v19 = vpop.permute.xlu0 %1153  ;;  %v1142_v53 = vpop.permute.xlu1 %1141 }
 0x177   : > { %552 = vmatmul.mubr.bf16.vlgmr.msra.gmra.mrb[0].mxu0 %v2801_v45  ;;  %v1189_v9 = vsel %vm1187_vm8, %v1142_v53, %v3811_v59  ;;  %v902_v59 = vsel %vm899_vm7, %v3704_v8, %v3694_v16  ;;  %v1191_v16 = vsel %vm1187_vm8, %v3924_v27, %v3813_v40  ;;  %v904_v40 = vsel %vm899_vm7, %v3742_v1, %v3736_v58  ;;  %v4019_v45 = vld [vmem:[%s3197_s12 + $0x78] sm:$0xff] }
 0x178   : > { %2037 = vrot.lane.b32.xlu0 %v2965_v42, %s3126_s22  ;;  %933 = vmatpush1.bf16.msra.mxu0 %v900_v3  ;;  %v2968_v1 = vcombine.low %v1894_v6, %v1896_v41  ;;  %v1603_v42 = vmul.bf16 %v4019_v45, %v3787_v11  ;;  %v1605_v27 = vmul.bf16 %v4024_v15, %v3787_v11 }
 0x179   : > { %1743 = vrot.lane.b32.xlu1 %v2937_v55, %s3125_s21  ;;  %1220 = vmatprep.subr.bf16.mxu1 %v1189_v9  ;;  %v2940_v47 = vcombine.low %v1600_v35, %v1602_v25  ;;  %v4036_v55 = vld [vmem:[%s3197_s12 + $0x6c] sm:$0xff]  ;;  %v909_v9 = vsel %vm899_vm7, %v3756_v14, %v3626_v60  ;;  %v911_v60 = vsel %vm899_vm7, %v3738_v38, %v3620_v54  ;;  %v4092_v25 = vld [vmem:[%s3197_s12 + $0x9c] sm:$0xff] }
 0x17a   : > { %934 = vmatprep.subr.bf16.mxu0 %v903_v50  ;;  %v1152_v52 = vpop.permute.xlu0 %1151  ;;  %v1140_v61 = vpop.permute.xlu1 %1139  ;;  %964 = vmatprep.mubr.bf16.mxu0 %v4526_v34  ;;  %v1895_v12 = vmul.bf16 %v4036_v55, %v3834_v5  ;;  %v4068_v14 = vld [vmem:[%s3197_s12 + $0x8c] sm:$0xf]  ;;  %v913_v41 = vsel %vm899_vm7, %v3779_v39, %v3636_v2 }
 0x17b   : > { %v1188_v49 = vsel %vm1187_vm8, %v1140_v61, %v1142_v53  ;;  %v4031_v53 = vld [vmem:[%s3197_s12 + $0x60] sm:$0xff]  ;;  %v1192_v3 = vsel %vm1187_vm8, %v1152_v52, %v3956_v19  ;;  %v2941_v52 = vcombine.low %v1603_v42, %v1605_v27  ;;  %v1900_v63 = vmul.bf16 %v4068_v14, %v3816_v10 }
 0x17c   : > { %1747 = vrot.lane.b32.xlu0 %v2939_v18, %s3125_s21  ;;  %935 = vmatpush1.bf16.msra.mxu0 %v902_v59  ;;  %v1893_v51 = vmul.bf16 %v4031_v53, %v3834_v5  ;;  %v2942_v18 = vcombine.high %v1603_v42, %v1605_v27  ;;  %v1606_v6 = vmul.bf16 %v4068_v14, %v3773_v7 }
 0x17d   : > { %2035 = vrot.lane.b32.xlu1 %v2964_v29, %s3126_s22  ;;  %1221 = vmatpush1.bf16.msra.mxu1 %v1188_v49  ;;  %v4063_v29 = vld [vmem:[%s3197_s12 + $0x80] sm:$0xf] }
 0x17e   : > { %936 = vmatprep.subr.bf16.mxu0 %v905_v23  ;;  %v3994_v8 = vpop.permute.xlu0 %1449  ;;  %1222 = vmatprep.subr.bf16.mxu1 %v1191_v16  ;;  %v1156_v57 = vpop.permute.xlu1 %1155  ;;  %v2967_v17 = vcombine.high %v1893_v51, %v1895_v12  ;;  %v1898_v59 = vmul.bf16 %v4063_v29, %v3816_v10  ;;  %v2966_v23 = vcombine.low %v1893_v51, %v1895_v12  ;;  %v4528_v12 = vld [vmem:[#allocation4_spill] sm:$0xff] }
 0x17f   : > { %v1193_v20 = vsel %vm1187_vm8, %v3956_v19, %v1156_v57  ;;  %v1604_v54 = vmul.bf16 %v4063_v29, %v3773_v7  ;;  %v910_v16 = vsel %vm899_vm7, %v3748_v21, %v3738_v38  ;;  %v4086_v57 = vld [vmem:[%s3197_s12 + $0x90] sm:$0xff] }
 0x180   : > { %1745 = vrot.lane.b32.xlu0 %v2938_v28, %s3125_s21  ;;  %937 = vmatpush1.bf16.msra.mxu0 %v904_v40  ;;  %v2971_v21 = vcombine.low %v1898_v59, %v1900_v63  ;;  %v1609_v40 = vmul.bf16 %v4092_v25, %v3787_v11 }
 0x181   : > { %2033 = vrot.lane.b32.xlu1 %v2963_v22, %s3126_s22  ;;  %1223 = vmatpush1.bf16.msra.mxu1 %v1190_v56  ;;  %v1607_v22 = vmul.bf16 %v4086_v57, %v3787_v11  ;;  %v2943_v2 = vcombine.low %v1604_v54, %v1606_v6  ;;  %v1897_v56 = vmul.bf16 %v4019_v45, %v3834_v5  ;;  %v4529_v6 = vld [vmem:[#allocation5_spill] sm:$0xff] }
 0x182   : > { %938 = vmatprep.subr.bf16.mxu0 %v907_v33  ;;  %v1160_v58 = vpop.permute.xlu0 %1159  ;;  %1224 = vmatprep.subr.bf16.mxu1 %v1193_v20  ;;  %v4028_v44 = vpop.permute.xlu1 %1447  ;;  %v1899_v33 = vmul.bf16 %v4024_v15, %v3834_v5 }
 0x183   : > { %v2945_v27 = vcombine.high %v1607_v22, %v1609_v40 }
 0x184   : > { %2043 = vrot.lane.b32.xlu0 %v2968_v1, %s3126_s22  ;;  %939 = vmatpush1.bf16.msra.mxu0 %v906_v26  ;;  %v915_v1 = vsel %vm899_vm7, %v3762_v30, %v3634_v37  ;;  %v2970_v51 = vcombine.high %v1897_v56, %v1899_v33  ;;  %v1483_v37 = vsel %vm1481_vm9, %v3789_v31, %v4528_v12  ;;  %v2845_v26 = vld [vmem:[%s4505_s1 + $0x4] sm:$0x3] }
 0x185   : > { %1749 = vrot.lane.b32.xlu1 %v2940_v47, %s3125_s21  ;;  %1225 = vmatpush1.bf16.msra.mxu1 %v1192_v3  ;;  %v4124_v3 = vld [vmem:[%s3197_s12 + $0x98] sm:$0xf] }
 0x186   : > { %940 = vmatprep.subr.bf16.mxu0 %v909_v9  ;;  %v1158_v50 = vpop.permute.xlu0 %1157  ;;  %v4050_v61 = vpop.permute.xlu1 %1445  ;;  %v1902_v9 = vmul.bf16 %v4124_v3, %v3816_v10 }
 0x187   : > { %v1194_v35 = vsel %vm1187_vm8, %v1158_v50, %v1160_v58  ;;  %v4129_v50 = vld [vmem:[%s3197_s12 + $0xa4] sm:$0xf] }
 0x188   : > { %1753 = vrot.lane.b32.xlu0 %v2942_v18, %s3125_s21  ;;  %941 = vmatpush1.bf16.msra.mxu0 %v908_v32  ;;  %v1610_v59 = vmul.bf16 %v4129_v50, %v3773_v7 }
 0x189   : > { %2041 = vrot.lane.b32.xlu1 %v2967_v17, %s3126_s22  ;;  %942 = vmatprep.subr.bf16.mxu0 %v911_v60  ;;  %v2944_v17 = vcombine.low %v1607_v22, %v1609_v40  ;;  %v2969_v60 = vcombine.low %v1897_v56, %v1899_v33  ;;  %v4150_v22 = vld [vmem:[%s3197_s12 + $0xa8] sm:$0xff]  ;;  %v1901_v40 = vmul.bf16 %v4086_v57, %v3834_v5  ;;  %v4531_v56 = vld [vmem:[#allocation2_spill] sm:$0xff] }
 0x18a   : > { %v4060_v19 = vpop.permute.xlu0 %1455  ;;  %v1162_v49 = vpop.permute.xlu1 %1161  ;;  %v4166_v33 = vrot.slane %v4531_v56, 4 }
 0x18b   : > { %v1195_v28 = vsel %vm1187_vm8, %v1160_v58, %v1162_v49  ;;  %v912_v58 = vsel %vm899_vm7, %v3797_v4, %v3779_v39  ;;  %v4527_v39 = vld [vmem:[#allocation6_spill] sm:$0xff]  ;;  %v1482_v49 = vsel %vm1481_vm9, %v3803_v46, %v3789_v31 }
 0x18c   : > { %1751 = vrot.lane.b32.xlu0 %v2941_v52, %s3125_s21  ;;  %943 = vmatpush1.bf16.msra.mxu0 %v910_v16  ;;  %v914_v4 = vsel %vm899_vm7, %v4527_v39, %v3762_v30  ;;  %v1904_v30 = vmul.bf16 %v4129_v50, %v3816_v10  ;;  %v1608_v52 = vmul.bf16 %v4124_v3, %v3773_v7  ;;  %v4530_v16 = vld [vmem:[#allocation7_spill] sm:$0xff] }
 0x18d   : > { %2039 = vrot.lane.b32.xlu1 %v2966_v23, %s3126_s22  ;;  %1226 = vmatprep.subr.bf16.mxu1 %v1195_v28  ;;  %v1485_v28 = vsel %vm1481_vm9, %v4530_v16, %v4529_v6  ;;  %v1486_v39 = vsel %vm1481_vm9, %v4050_v61, %v4028_v44  ;;  %v1905_v6 = vmul.bf16 %v4150_v22, %v3834_v5 }
 0x18e   : > { %944 = vmatprep.subr.bf16.mxu0 %v913_v41  ;;  %v1166_v38 = vpop.permute.xlu0 %1165  ;;  %1227 = vmatpush1.bf16.msra.mxu1 %v1194_v35  ;;  %v4096_v20 = vpop.permute.xlu1 %1453  ;;  %v2974_v54 = vcombine.low %v1902_v9, %v1904_v30  ;;  %v1611_v35 = vmul.bf16 %v4150_v22, %v3787_v11  ;;  %v4193_v9 = vld [vmem:[%s3197_s12 + $0xbc] sm:$0xf] }
 0x190   : > { %2049 = vrot.lane.b32.xlu0 %v2971_v21, %s3126_s22  ;;  %945 = vmatpush1.bf16.msra.mxu0 %v912_v58  ;;  %v4155_v21 = vld [vmem:[%s3197_s12 + $0xb4] sm:$0xff]  ;;  %v1487_v58 = vsel %vm1481_vm9, %v4028_v44, %v3994_v8  ;;  %v1489_v8 = vsel %vm1481_vm9, %v4096_v20, %v4060_v19  ;;  %v1908_v44 = vmul.bf16 %v4193_v9, %v3816_v10 }
 0x191   : > { %1755 = vrot.lane.b32.xlu1 %v2943_v2, %s3125_s21  ;;  %946 = vmatprep.subr.bf16.mxu0 %v915_v1  ;;  %v1613_v31 = vmul.bf16 %v4155_v21, %v3787_v11  ;;  %v1903_v2 = vmul.bf16 %v4092_v25, %v3834_v5  ;;  %v1484_v11 = vsel %vm1481_vm9, %v3842_v43, %v4530_v16 }
 0x192   : > { %v1164_v42 = vpop.permute.xlu0 %1163  ;;  %v4110_v47 = vpop.permute.xlu1 %1451  ;;  %v4178_v43 = vsel %vm2161_vm10, %v4166_v33, %v4531_v56  ;;  %v1907_v16 = vmul.bf16 %v4155_v21, %v3834_v5 }
 0x193   : > { %v1196_v23 = vsel %vm1187_vm8, %v1164_v42, %v1166_v38  ;;  %v2948_v42 = vcombine.high %v1611_v35, %v1613_v31  ;;  %v2947_v12 = vcombine.low %v1611_v35, %v1613_v31  ;;  %v2972_v30 = vcombine.low %v1901_v40, %v1903_v2 }
 0x194   : > { %1759 = vrot.lane.b32.xlu0 %v2945_v27, %s3125_s21  ;;  %947 = vmatpush1.bf16.msra.mxu0 %v914_v4 }
 0x195   : > { %2047 = vrot.lane.b32.xlu1 %v2970_v51, %s3126_s22  ;;  %1514 = vmatprep.subr.bf16.mxu0 %v1483_v37  ;;  %v2973_v51 = vcombine.high %v1901_v40, %v1903_v2  ;;  %v4188_v37 = vld [vmem:[%s3197_s12 + $0xb0] sm:$0xf]  ;;  %v4532_v40 = vld [vmem:[#allocation3_spill] sm:$0xff] }
 0x196   : > { %v4133_v18 = vpop.permute.xlu0 %1461  ;;  %v1168_v32 = vpop.permute.xlu1 %1167  ;;  %v1612_v19 = vmul.bf16 %v4188_v37, %v3773_v7  ;;  %v4223_v2 = vrot.slane %v4532_v40, 4 }
 0x197   : > { %965 = vmatmul.mubr.bf16.vlgmr.msra.gmra.mrb[4].mxu0 %v2845_v26  ;;  %v1197_v63 = vsel %vm1187_vm8, %v1166_v38, %v1168_v32  ;;  %v2946_v38 = vcombine.low %v1608_v52, %v1610_v59  ;;  %v1906_v26 = vmul.bf16 %v4188_v37, %v3816_v10  ;;  %v3094_v52 = vld [vmem:[%s3197_s12] sm:$0xff] }
 0x198   : > { %1757 = vrot.lane.b32.xlu0 %v2944_v17, %s3125_s21  ;;  %1228 = vmatprep.subr.bf16.mxu1 %v1197_v63  ;;  %v1614_v17 = vmul.bf16 %v4193_v9, %v3773_v7  ;;  %v2165_v59 = vmul.bf16 %v3094_v52, %v4178_v43 }
 0x199   : > { %2045 = vrot.lane.b32.xlu1 %v2969_v60, %s3126_s22  ;;  %1515 = vmatpush1.bf16.msra.mxu0 %v1482_v49  ;;  %v1488_v60 = vsel %vm1481_vm9, %v4110_v47, %v4096_v20  ;;  %v2977_v49 = vcombine.low %v1906_v26, %v1908_v44 }
 0x19a   : > { %1229 = vmatpush1.bf16.msra.mxu1 %v1196_v23  ;;  %v1172_v41 = vpop.permute.xlu0 %1171  ;;  %1516 = vmatprep.subr.bf16.mxu0 %v1485_v28  ;;  %v1460_v46 = vpop.permute.xlu1 %1459  ;;  %v3095_v23 = vld [vmem:[%s3197_s12 + $0xc] sm:$0xff]  ;;  %v2949_v47 = vcombine.low %v1612_v19, %v1614_v17  ;;  %v3099_v17 = vld [vmem:[%s3197_s12 + $0x24] sm:$0xff] }
 0x19b   : > { %1546 = vmatprep.mubr.bf16.mxu0 %v4526_v34  ;;  %v1491_v7 = vsel %vm1481_vm9, %v1460_v46, %v4133_v18 }
 0x19c   : > { %2055 = vrot.lane.b32.xlu0 %v2974_v54, %s3126_s22  ;;  %v2167_v54 = vmul.bf16 %v3095_v23, %v4178_v43 }
 0x19d   : > { %1761 = vrot.lane.b32.xlu1 %v2946_v38, %s3125_s21  ;;  %1517 = vmatpush1.bf16.msra.mxu0 %v1484_v11  ;;  %v2976_v38 = vcombine.high %v1905_v6, %v1907_v16  ;;  %v3096_v11 = vld [vmem:[%s3197_s12 + $0x8] sm:$0xf] }
 0x19e   : > { %v1170_v1 = vpop.permute.xlu0 %1169  ;;  %1518 = vmatprep.subr.bf16.mxu0 %v1487_v58  ;;  %v1458_v27 = vpop.permute.xlu1 %1457  ;;  %v2981_v35 = vcombine.high %v2165_v59, %v2167_v54  ;;  %v2980_v56 = vcombine.low %v2165_v59, %v2167_v54  ;;  %v2460_v58 = vmul.bf16 %v3096_v11, %v4223_v2 }
 0x19f   : > { %v1198_v10 = vsel %vm1187_vm8, %v1170_v1, %v1172_v41  ;;  %v1490_v18 = vsel %vm1481_vm9, %v1458_v27, %v1460_v46  ;;  %v3097_v1 = vld [vmem:[%s3197_s12 + $0x14] sm:$0xf] }
 0x1a0   : > { %1765 = vrot.lane.b32.xlu0 %v2948_v42, %s3125_s21  ;;  %v2462_v42 = vmul.bf16 %v3097_v1, %v4223_v2 }
 0x1a1   : > { %2053 = vrot.lane.b32.xlu1 %v2973_v51, %s3126_s22  ;;  %1519 = vmatpush1.bf16.msra.mxu0 %v1486_v39  ;;  %v2975_v51 = vcombine.low %v1905_v6, %v1907_v16  ;;  %v2166_v39 = vmul.bf16 %v3096_v11, %v4166_v33  ;;  %v4533_v16 = vld [vmem:[#allocation8_spill] sm:$0xff] }
 0x1a2   : > { %v1468_v4 = vpop.permute.xlu0 %1467  ;;  %1520 = vmatprep.subr.bf16.mxu0 %v1489_v8  ;;  %v1174_v61 = vpop.permute.xlu1 %1173  ;;  %v2168_v8 = vmul.bf16 %v3097_v1, %v4166_v33 }
 0x1a3   : > { %v1199_v32 = vsel %vm1187_vm8, %v1172_v41, %v1174_v61  ;;  %v3010_v61 = vcombine.low %v2460_v58, %v2462_v42  ;;  %v3100_v58 = vld [vmem:[%s3197_s12 + $0x30] sm:$0xff]  ;;  %v3101_v42 = vld [vmem:[%s3197_s12 + $0x3c] sm:$0xff] }
 0x1a4   : > { %1763 = vrot.lane.b32.xlu0 %v2947_v12, %s3125_s21  ;;  %1230 = vmatprep.subr.bf16.mxu1 %v1199_v32  ;;  %v2171_v32 = vmul.bf16 %v3099_v17, %v4178_v43  ;;  %v2173_v1 = vmul.bf16 %v3100_v58, %v4178_v43 }
 0x1a5   : > { %2051 = vrot.lane.b32.xlu1 %v2972_v30, %s3126_s22  ;;  %1521 = vmatpush1.bf16.msra.mxu0 %v1488_v60  ;;  %v3098_v30 = vld [vmem:[%s3197_s12 + $0x18] sm:$0xff] }
 0x1a6   : > { %1231 = vmatpush1.bf16.msra.mxu1 %v1198_v10  ;;  %v1178_v63 = vpop.permute.xlu0 %1177  ;;  %1522 = vmatprep.subr.bf16.mxu0 %v1491_v7  ;;  %v1466_v20 = vpop.permute.xlu1 %1465  ;;  %v2169_v19 = vmul.bf16 %v3098_v30, %v4178_v43  ;;  %v2982_v10 = vcombine.low %v2166_v39, %v2168_v8 }
 0x1a7   : > { %v1493_v28 = vsel %vm1481_vm9, %v1466_v20, %v1468_v4  ;;  %v4236_v4 = vsel %vm2455_vm11, %v4223_v2, %v4532_v40 }
 0x1a8   : > { %2061 = vrot.lane.b32.xlu0 %v2977_v49, %s3126_s22  ;;  %v2459_v59 = vmul.bf16 %v3094_v52, %v4236_v4  ;;  %v2461_v7 = vmul.bf16 %v3095_v23, %v4236_v4  ;;  %v2984_v54 = vcombine.high %v2169_v19, %v2171_v32  ;;  %v2983_v23 = vcombine.low %v2169_v19, %v2171_v32 }
 0x1a9   : > { %1767 = vrot.lane.b32.xlu1 %v2949_v47, %s3125_s21  ;;  %1523 = vmatpush1.bf16.msra.mxu0 %v1490_v18  ;;  %v4534_v18 = vld [vmem:[#allocation9_spill] sm:$0xff]  ;;  %v2463_v8 = vmul.bf16 %v3098_v30, %v4236_v4 }
 0x1aa   : > { %v1176_v41 = vpop.permute.xlu0 %1175  ;;  %1524 = vmatprep.subr.bf16.mxu0 %v1493_v28  ;;  %v1464_v31 = vpop.permute.xlu1 %1463  ;;  %v3009_v47 = vcombine.high %v2459_v59, %v2461_v7  ;;  %v2464_v28 = vmul.bf16 %v4533_v16, %v4223_v2  ;;  %v2172_v40 = vmul.bf16 %v4534_v18, %v4166_v33 }
 0x1ab   : > { %v1492_v5 = vsel %vm1481_vm9, %v1464_v31, %v1466_v20  ;;  %v1200_v26 = vsel %vm1187_vm8, %v1176_v41, %v1178_v63  ;;  %v2466_v41 = vmul.bf16 %v4534_v18, %v4223_v2  ;;  %v3008_v31 = vcombine.low %v2459_v59, %v2461_v7  ;;  %v3103_v18 = vld [vmem:[%s3197_s12 + $0x54] sm:$0xff] }
 0x1ac   : > { %2305 = vrot.lane.b32.xlu0 %v2981_v35, %s3127_s27  ;;  %v2468_v7 = vmul.bf16 %v3893_v24, %v4223_v2 }
 0x1ad   : > { %2059 = vrot.lane.b32.xlu1 %v2976_v38, %s3126_s22  ;;  %1525 = vmatpush1.bf16.msra.mxu0 %v1492_v5  ;;  %v2170_v38 = vmul.bf16 %v4533_v16, %v4166_v33  ;;  %v3013_v11 = vcombine.low %v2464_v28, %v2466_v41  ;;  %v3102_v28 = vld [vmem:[%s3197_s12 + $0x48] sm:$0xff] }
 0x1ae   : > { %v1474_v46 = vpop.permute.xlu0 %1473  ;;  %v1180_v27 = vpop.permute.xlu1 %1179 }
 0x1af   : > { %v1201_v12 = vsel %vm1187_vm8, %v1178_v63, %v1180_v27  ;;  %v2175_v27 = vmul.bf16 %v3101_v42, %v4178_v43  ;;  %v2985_v39 = vcombine.low %v2170_v38, %v2172_v40  ;;  %v2469_v38 = vmul.bf16 %v3101_v42, %v4236_v4 }
 0x1b0   : > { %2303 = vrot.lane.b32.xlu0 %v2980_v56, %s3127_s27  ;;  %1232 = vmatprep.subr.bf16.mxu1 %v1201_v12  ;;  %v2465_v12 = vmul.bf16 %v3099_v17, %v4236_v4  ;;  %v2899_v17 = vld [vmem:[%s4505_s1 + $0x8] sm:$0x3] }
 0x1b1   : > { %2057 = vrot.lane.b32.xlu1 %v2975_v51, %s3126_s22  ;;  %1233 = vmatpush1.bf16.msra.mxu1 %v1200_v26  ;;  %v2871_v26 = vld [vmem:[%s4505_s1 + $0x6] sm:$0x3]  ;;  %v2987_v19 = vcombine.high %v2173_v1, %v2175_v27  ;;  %v2986_v59 = vcombine.low %v2173_v1, %v2175_v27  ;;  %v2472_v27 = vmul.bf16 %v3934_v36, %v4223_v2  ;;  %s197_s22 = scalar_lea.vmem %s4508_s4, %s3034_s19 }
 0x1b2   : > { %v1184_v44 = vpop.permute.xlu0 %1183  ;;  %v1472_v60 = vpop.permute.xlu1 %1471 }
 0x1b3   : > { %v1495_v63 = vsel %vm1481_vm9, %v1472_v60, %v1474_v46 }
 0x1b4   : > { %2601 = vrot.lane.b32.xlu0 %v3010_v61, %s3128_s28  ;;  %1526 = vmatprep.subr.bf16.mxu0 %v1495_v63  ;;  %v2470_v63 = vmul.bf16 %v3898_v0, %v4223_v2 }
 0x1b5   : > { %2307 = vrot.lane.b32.xlu1 %v2982_v10, %s3127_s27 }
 0x1b6   : > { %v1182_v49 = vpop.permute.xlu0 %1181  ;;  %v1470_v20 = vpop.permute.xlu1 %1469  ;;  %v3016_v16 = vcombine.low %v2468_v7, %v2470_v63 }
 0x1b7   : > { %v1494_v6 = vsel %vm1481_vm9, %v1470_v20, %v1472_v60  ;;  %v1202_v46 = vsel %vm1187_vm8, %v1182_v49, %v1184_v44  ;;  %v3012_v60 = vcombine.high %v2463_v8, %v2465_v12  ;;  %v2174_v20 = vmul.bf16 %v3893_v24, %v4166_v33 }
 0x1b8   : > { %2311 = vrot.lane.b32.xlu0 %v2984_v54, %s3127_s27  ;;  %1527 = vmatpush1.bf16.msra.mxu0 %v1494_v6  ;;  %v3011_v54 = vcombine.low %v2463_v8, %v2465_v12  ;;  %v2177_v24 = vmul.bf16 %v3102_v28, %v4178_v43  ;;  %v2178_v12 = vmul.bf16 %v3934_v36, %v4166_v33 }
 0x1b9   : > { %2599 = vrot.lane.b32.xlu1 %v3009_v47, %s3128_s28  ;;  %v2176_v47 = vmul.bf16 %v3898_v0, %v4166_v33  ;;  %v2179_v0 = vmul.bf16 %v3103_v18, %v4178_v43  ;;  %v2183_v36 = vmul.bf16 %v4036_v55, %v4178_v43 }
 0x1ba   : > { %v1480_v52 = vpop.permute.xlu0 %1479  ;;  %v1186_v35 = vpop.permute.xlu1 %1185 }
 0x1bb   : > { %v1203_v5 = vsel %vm1187_vm8, %v1184_v44, %v1186_v35  ;;  %v2988_v35 = vcombine.low %v2174_v20, %v2176_v47  ;;  %v2989_v42 = vcombine.low %v2177_v24, %v2179_v0 }
 0x1bc   : > { %2309 = vrot.lane.b32.xlu0 %v2983_v23, %s3127_s27  ;;  %1234 = vmatprep.subr.bf16.mxu1 %v1203_v5 }
 0x1bd   : > { %2597 = vrot.lane.b32.xlu1 %v3008_v31, %s3128_s28  ;;  %1235 = vmatpush1.bf16.msra.mxu1 %v1202_v46  ;;  %v2467_v31 = vmul.bf16 %v3100_v58, %v4236_v4  ;;  %v2990_v46 = vcombine.high %v2177_v24, %v2179_v0  ;;  %v2182_v24 = vmul.bf16 %v3987_v62, %v4166_v33 }
 0x1be   : > { %v1724_v56 = vpop.permute.xlu0 %1723  ;;  %v1478_v51 = vpop.permute.xlu1 %1477 }
 0x1bf   : > { %v1497_v44 = vsel %vm1481_vm9, %v1478_v51, %v1480_v52  ;;  %v3014_v8 = vcombine.low %v2467_v31, %v2469_v38 }
 0x1c0   : > { %2607 = vrot.lane.b32.xlu0 %v3013_v11, %s3128_s28  ;;  %1528 = vmatprep.subr.bf16.mxu0 %v1497_v44  ;;  %v3015_v11 = vcombine.high %v2467_v31, %v2469_v38  ;;  %v2185_v38 = vmul.bf16 %v4019_v45, %v4178_v43 }
 0x1c1   : > { %2313 = vrot.lane.b32.xlu1 %v2985_v39, %s3127_s27  ;;  %1253 = vmatmul.mubr.bf16.vlgmr.msra.gmra.mrb[4].mxu1 %v2871_v26  ;;  %v2180_v26 = vmul.bf16 %v3939_v48, %v4166_v33 }
 0x1c2   : > { %v1722_v61 = vpop.permute.xlu0 %1721  ;;  %1834 = vmatprep.mubr.bf16.mxu1 %v4526_v34 }
 0x1c3   : > { %v1476_v32 = vpop.permute.xlu1 %1475  ;;  %v1770_v52 = vsel %vm1769_vm12, %v1722_v61, %v1724_v56 }
 0x1c4   : > { %v1496_v30 = vsel %vm1481_vm9, %v1476_v32, %v1478_v51  ;;  %2317 = vrot.lane.b32.xlu0 %v2987_v19, %s3127_s27  ;;  %v2474_v51 = vmul.bf16 %v3939_v48, %v4223_v2  ;;  %v2991_v48 = vcombine.low %v2178_v12, %v2180_v26  ;;  %v2186_v26 = vmul.bf16 %v4063_v29, %v4166_v33 }
 0x1c5   : > { %2605 = vrot.lane.b32.xlu1 %v3012_v60, %s3128_s28  ;;  %1529 = vmatpush1.bf16.msra.mxu0 %v1496_v30  ;;  %v2181_v60 = vmul.bf16 %v4031_v53, %v4178_v43 }
 0x1c6   : > { %v2020_v10 = vpop.permute.xlu0 %2019  ;;  %v3019_v32 = vcombine.low %v2472_v27, %v2474_v51  ;;  %v2480_v51 = vmul.bf16 %v4063_v29, %v4223_v2  ;;  %v2191_v29 = vmul.bf16 %v4092_v25, %v4178_v43 }
 0x1c7   : > { %v1726_v49 = vpop.permute.xlu1 %1725  ;;  %v2993_v63 = vcombine.high %v2181_v60, %v2183_v36 }
 0x1c8   : > { %2315 = vrot.lane.b32.xlu0 %v2986_v59, %s3127_s27  ;;  %v1771_v6 = vsel %vm1769_vm12, %v1724_v56, %v1726_v49  ;;  %1547 = vmatmul.mubr.bf16.vlgmr.msra.gmra.mrb[8].mxu0 %v2899_v17  ;;  %v2471_v17 = vmul.bf16 %v3102_v28, %v4236_v4 }
 0x1c9   : > { %2603 = vrot.lane.b32.xlu1 %v3011_v54, %s3128_s28  ;;  %1802 = vmatprep.subr.bf16.mxu1 %v1771_v6  ;;  %v2992_v6 = vcombine.low %v2181_v60, %v2183_v36  ;;  %v2189_v36 = vmul.bf16 %v4086_v57, %v4178_v43 }
 0x1ca   : > { %1803 = vmatpush1.bf16.msra.mxu1 %v1770_v52  ;;  %v1730_v23 = vpop.permute.xlu0 %1729  ;;  %2128 = vmatprep.mubr.bf16.mxu0 %v4526_v34  ;;  %v2476_v52 = vmul.bf16 %v3987_v62, %v4223_v2  ;;  %v2187_v62 = vmul.bf16 %v4024_v15, %v4178_v43 }
 0x1cb   : > { %v2018_v41 = vpop.permute.xlu1 %2017 }
 0x1cc   : > { %2613 = vrot.lane.b32.xlu0 %v3016_v16, %s3128_s28  ;;  %v2065_v40 = vsel %vm2063_vm13, %v2018_v41, %v2020_v10  ;;  %v2473_v10 = vmul.bf16 %v3103_v18, %v4236_v4  ;;  %v2184_v18 = vmul.bf16 %v3997_v13, %v4166_v33 }
 0x1cd   : > { %2319 = vrot.lane.b32.xlu1 %v2988_v35, %s3127_s27  ;;  %2096 = vmatprep.subr.bf16.mxu0 %v2065_v40 }
 0x1ce   : > { %v1728_v5 = vpop.permute.xlu0 %1727  ;;  %v3018_v54 = vcombine.high %v2471_v17, %v2473_v10  ;;  %v3017_v28 = vcombine.low %v2471_v17, %v2473_v10  ;;  %v2481_v17 = vmul.bf16 %v4024_v15, %v4236_v4  ;;  %v2998_v15 = vcombine.low %v2189_v36, %v2191_v29 }
 0x1cf   : > { %v2016_v56 = vpop.permute.xlu1 %2015  ;;  %v1772_v61 = vsel %vm1769_vm12, %v1728_v5, %v1730_v23  ;;  %v2475_v5 = vmul.bf16 %v4031_v53, %v4236_v4 }
 0x1d0   : > { %v2064_v1 = vsel %vm2063_vm13, %v2016_v56, %v2018_v41  ;;  %2323 = vrot.lane.b32.xlu0 %v2990_v46, %s3127_s27  ;;  %v2477_v46 = vmul.bf16 %v4036_v55, %v4236_v4  ;;  %v2995_v55 = vcombine.low %v2185_v38, %v2187_v62 }
 0x1d1   : > { %2611 = vrot.lane.b32.xlu1 %v3015_v11, %s3128_s28  ;;  %2097 = vmatpush1.bf16.msra.mxu0 %v2064_v1  ;;  %v2996_v1 = vcombine.high %v2185_v38, %v2187_v62  ;;  %v2485_v38 = vmul.bf16 %v4092_v25, %v4236_v4 }
 0x1d2   : > { %v2026_v58 = vpop.permute.xlu0 %2025  ;;  %v3020_v12 = vcombine.low %v2475_v5, %v2477_v46 }
 0x1d3   : > { %v1732_v39 = vpop.permute.xlu1 %1731 }
 0x1d4   : > { %2321 = vrot.lane.b32.xlu0 %v2989_v42, %s3127_s27  ;;  %v1773_v44 = vsel %vm1769_vm12, %v1730_v23, %v1732_v39  ;;  %v2478_v23 = vmul.bf16 %v3997_v13, %v4223_v2  ;;  %v2994_v13 = vcombine.low %v2182_v24, %v2184_v18  ;;  %v3021_v42 = vcombine.high %v2475_v5, %v2477_v46 }
 0x1d5   : > { %2609 = vrot.lane.b32.xlu1 %v3014_v8, %s3128_s28  ;;  %1804 = vmatprep.subr.bf16.mxu1 %v1773_v44  ;;  %v2482_v39 = vmul.bf16 %v4068_v14, %v4223_v2  ;;  %v2188_v44 = vmul.bf16 %v4068_v14, %v4166_v33 }
 0x1d6   : > { %1805 = vmatpush1.bf16.msra.mxu1 %v1772_v61  ;;  %v1736_v19 = vpop.permute.xlu0 %1735  ;;  %v3022_v31 = vcombine.low %v2476_v52, %v2478_v23  ;;  %v2190_v23 = vmul.bf16 %v4124_v3, %v4166_v33 }
 0x1d7   : > { %v2024_v30 = vpop.permute.xlu1 %2023  ;;  %v3025_v60 = vcombine.low %v2480_v51, %v2482_v39  ;;  %v2997_v14 = vcombine.low %v2186_v26, %v2188_v44  ;;  %v2721_v44 = vld [vmem:[%s4506_s2] sm:$0xf] }
 0x1d8   : > { %2619 = vrot.lane.b32.xlu0 %v3019_v32, %s3128_s28  ;;  %v2067_v59 = vsel %vm2063_vm13, %v2024_v30, %v2026_v58 }
 0x1d9   : > { %2325 = vrot.lane.b32.xlu1 %v2991_v48, %s3127_s27  ;;  %2098 = vmatprep.subr.bf16.mxu0 %v2067_v59  ;;  %v2479_v48 = vmul.bf16 %v4019_v45, %v4236_v4 }
 0x1da   : > { %v1734_v7 = vpop.permute.xlu0 %1733 }
 0x1db   : > { %v2022_v49 = vpop.permute.xlu1 %2021  ;;  %v1774_v41 = vsel %vm1769_vm12, %v1734_v7, %v1736_v19  ;;  %v2999_v7 = vcombine.high %v2189_v36, %v2191_v29  ;;  %v3023_v52 = vcombine.low %v2479_v48, %v2481_v17 }
 0x1dc   : > { %v2066_v20 = vsel %vm2063_vm13, %v2022_v49, %v2024_v30  ;;  %2329 = vrot.lane.b32.xlu0 %v2993_v63, %s3127_s27  ;;  %v3024_v49 = vcombine.high %v2479_v48, %v2481_v17 }
 0x1dd   : > { %2617 = vrot.lane.b32.xlu1 %v3018_v54, %s3128_s28  ;;  %2099 = vmatpush1.bf16.msra.mxu0 %v2066_v20  ;;  %v2484_v20 = vmul.bf16 %v4124_v3, %v4223_v2  ;;  %v2195_v3 = vmul.bf16 %v4155_v21, %v4178_v43 }
 0x1de   : > { %v2032_v47 = vpop.permute.xlu0 %2031 }
 0x1df   : > { %v1738_v16 = vpop.permute.xlu1 %1737 }
 0x1e0   : > { %2327 = vrot.lane.b32.xlu0 %v2992_v6, %s3127_s27  ;;  %v1775_v0 = vsel %vm1769_vm12, %v1736_v19, %v1738_v16  ;;  %v2192_v16 = vmul.bf16 %v4129_v50, %v4166_v33 }
 0x1e1   : > { %2615 = vrot.lane.b32.xlu1 %v3017_v28, %s3128_s28  ;;  %1806 = vmatprep.subr.bf16.mxu1 %v1775_v0 }
 0x1e2   : > { %1807 = vmatpush1.bf16.msra.mxu1 %v1774_v41  ;;  %v1742_v35 = vpop.permute.xlu0 %1741  ;;  %v2193_v41 = vmul.bf16 %v4150_v22, %v4178_v43 }
 0x1e3   : > { %v2030_v40 = vpop.permute.xlu1 %2029 }
 0x1e4   : > { %2625 = vrot.lane.b32.xlu0 %v3022_v31, %s3128_s28  ;;  %v2069_v56 = vsel %vm2063_vm13, %v2030_v40, %v2032_v47  ;;  %v2486_v47 = vmul.bf16 %v4129_v50, %v4223_v2  ;;  %v3000_v50 = vcombine.low %v2190_v23, %v2192_v16  ;;  %v2483_v31 = vmul.bf16 %v4086_v57, %v4236_v4 }
 0x1e5   : > { %2331 = vrot.lane.b32.xlu1 %v2994_v13, %s3127_s27  ;;  %2100 = vmatprep.subr.bf16.mxu0 %v2069_v56  ;;  %v3002_v13 = vcombine.high %v2193_v41, %v2195_v3  ;;  %v3001_v25 = vcombine.low %v2193_v41, %v2195_v3  ;;  %v2488_v56 = vmul.bf16 %v4188_v37, %v4223_v2 }
 0x1e6   : > { %v1740_v11 = vpop.permute.xlu0 %1739  ;;  %v3028_v0 = vcombine.low %v2484_v20, %v2486_v47  ;;  %v3027_v46 = vcombine.high %v2483_v31, %v2485_v38  ;;  %v2925_v47 = vld [vmem:[%s4505_s1 + $0xa] sm:$0x3] }
 0x1e7   : > { %v2028_v58 = vpop.permute.xlu1 %2027  ;;  %v1776_v19 = vsel %vm1769_vm12, %v1740_v11, %v1742_v35  ;;  %v2490_v11 = vmul.bf16 %v4193_v9, %v4223_v2 }
 0x1e8   : > { %v2068_v27 = vsel %vm2063_vm13, %v2028_v58, %v2030_v40  ;;  %2335 = vrot.lane.b32.xlu0 %v2996_v1, %s3127_s27  ;;  %v3026_v58 = vcombine.low %v2483_v31, %v2485_v38 }
 0x1e9   : > { %2623 = vrot.lane.b32.xlu1 %v3021_v42, %s3128_s28  ;;  %2101 = vmatpush1.bf16.msra.mxu0 %v2068_v27  ;;  %v2194_v42 = vmul.bf16 %v4188_v37, %v4166_v33  ;;  %v2196_v27 = vmul.bf16 %v4193_v9, %v4166_v33  ;;  %v3031_v2 = vcombine.low %v2488_v56, %v2490_v11 }
 0x1ea   : > { %v2038_v53 = vpop.permute.xlu0 %2037  ;;  %v2487_v37 = vmul.bf16 %v4150_v22, %v4236_v4  ;;  %v2489_v33 = vmul.bf16 %v4155_v21, %v4236_v4 }
 0x1eb   : > { %v1744_v8 = vpop.permute.xlu1 %1743 }
 0x1ec   : > { %2333 = vrot.lane.b32.xlu0 %v2995_v55, %s3127_s27  ;;  %v1777_v61 = vsel %vm1769_vm12, %v1742_v35, %v1744_v8  ;;  %v3003_v8 = vcombine.low %v2194_v42, %v2196_v27  ;;  %v3029_v29 = vcombine.low %v2487_v37, %v2489_v33 }
 0x1ed   : > { %2621 = vrot.lane.b32.xlu1 %v3020_v12, %s3128_s28  ;;  %1808 = vmatprep.subr.bf16.mxu1 %v1777_v61  ;;  %v4430_v12 = vpop.f32.mrb[0].mxu1 }
 0x1ee   : > { %1809 = vmatpush1.bf16.msra.mxu1 %v1776_v19  ;;  %v1748_v32 = vpop.permute.xlu0 %1747  ;;  %v4433_v26 = vpop.f32.mrb[1].mxu1 }
 0x1ef   : > { %v2036_v30 = vpop.permute.xlu1 %2035  ;;  %v678_v22 = vpop.f32.mrb[2].mxu1 }
 0x1f0   : > { %2631 = vrot.lane.b32.xlu0 %v3025_v60, %s3128_s28  ;;  %v2071_v10 = vsel %vm2063_vm13, %v2036_v30, %v2038_v53  ;;  %v679_v21 = vpop.f32.mrb[3].mxu1 }
 0x1f1   : > { %2337 = vrot.lane.b32.xlu1 %v2997_v14, %s3127_s27  ;;  %2102 = vmatprep.subr.bf16.mxu0 %v2071_v10 }
 0x1f2   : > { %v1746_v59 = vpop.permute.xlu0 %1745 }
 0x1f3   : > { %v2034_v63 = vpop.permute.xlu1 %2033  ;;  %v1778_v24 = vsel %vm1769_vm12, %v1746_v59, %v1748_v32 }
 0x1f4   : > { %v2070_v54 = vsel %vm2063_vm13, %v2034_v63, %v2036_v30  ;;  %2341 = vrot.lane.b32.xlu0 %v2999_v7, %s3127_s27 }
 0x1f5   : > { %2629 = vrot.lane.b32.xlu1 %v3024_v49, %s3128_s28  ;;  %2103 = vmatpush1.bf16.msra.mxu0 %v2070_v54 }
 0x1f6   : > { %v2044_v45 = vpop.permute.xlu0 %2043 }
 0x1f7   : > { %v1750_v6 = vpop.permute.xlu1 %1749 }
 0x1f8   : > { %2339 = vrot.lane.b32.xlu0 %v2998_v15, %s3127_s27  ;;  %v1779_v28 = vsel %vm1769_vm12, %v1748_v32, %v1750_v6  ;;  %v3030_v32 = vcombine.high %v2487_v37, %v2489_v33 }
 0x1f9   : > { %2627 = vrot.lane.b32.xlu1 %v3023_v52, %s3128_s28  ;;  %1810 = vmatprep.subr.bf16.mxu1 %v1779_v28 }
 0x1fa   : > { %1811 = vmatpush1.bf16.msra.mxu1 %v1778_v24  ;;  %v1754_v18 = vpop.permute.xlu0 %1753  ;;  %v2953_v24 = vld [vmem:[%s4505_s1 + $0xc] sm:$0x3] }
 0x1fb   : > { %v2042_v35 = vpop.permute.xlu1 %2041 }
 0x1fc   : > { %2637 = vrot.lane.b32.xlu0 %v3028_v0, %s3128_s28  ;;  %v2073_v62 = vsel %vm2063_vm13, %v2042_v35, %v2044_v45 }
 0x1fd   : > { %2343 = vrot.lane.b32.xlu1 %v3000_v50, %s3127_s27  ;;  %2104 = vmatprep.subr.bf16.mxu0 %v2073_v62 }
 0x1fe   : > { %v1752_v40 = vpop.permute.xlu0 %1751 }
 0x1ff   : > { %v2040_v5 = vpop.permute.xlu1 %2039  ;;  %v1780_v55 = vsel %vm1769_vm12, %v1752_v40, %v1754_v18 }
 0x200   : > { %v2072_v43 = vsel %vm2063_vm13, %v2040_v5, %v2042_v35  ;;  %2347 = vrot.lane.b32.xlu0 %v3002_v13, %s3127_s27 }
 0x201   : > { %2635 = vrot.lane.b32.xlu1 %v3027_v46, %s3128_s28  ;;  %2105 = vmatpush1.bf16.msra.mxu0 %v2072_v43 }
 0x202   : > { %v2050_v57 = vpop.permute.xlu0 %2049 }
 0x203   : > { %v1756_v1 = vpop.permute.xlu1 %1755 }
 0x204   : > { %2345 = vrot.lane.b32.xlu0 %v3001_v25, %s3127_s27  ;;  %v1781_v53 = vsel %vm1769_vm12, %v1754_v18, %v1756_v1 }
 0x205   : > { %2633 = vrot.lane.b32.xlu1 %v3026_v58, %s3128_s28  ;;  %1812 = vmatprep.subr.bf16.mxu1 %v1781_v53 }
 0x206   : > { %1813 = vmatpush1.bf16.msra.mxu1 %v1780_v55  ;;  %v1760_v51 = vpop.permute.xlu0 %1759 }
 0x207   : > { %v2048_v39 = vpop.permute.xlu1 %2047 }
 0x208   : > { %2643 = vrot.lane.b32.xlu0 %v3031_v2, %s3128_s28  ;;  %v2075_v9 = vsel %vm2063_vm13, %v2048_v39, %v2050_v57 }
 0x209   : > { %2349 = vrot.lane.b32.xlu1 %v3003_v8, %s3127_s27  ;;  %2106 = vmatprep.subr.bf16.mxu0 %v2075_v9 }
 0x20a   : > { %v1758_v61 = vpop.permute.xlu0 %1757 }
 0x20b   : > { %v2046_v19 = vpop.permute.xlu1 %2045  ;;  %v1782_v14 = vsel %vm1769_vm12, %v1758_v61, %v1760_v51 }
 0x20c   : > { %v2074_v4 = vsel %vm2063_vm13, %v2046_v19, %v2048_v39  ;;  %2724 = vperm.xlu0 %3061, %v2721_v44  }
 0x20d   : > { %2641 = vrot.lane.b32.xlu1 %v3030_v32, %s3128_s28  ;;  %2107 = vmatpush1.bf16.msra.mxu0 %v2074_v4 }
 0x20e   : > { %v2056_v60 = vpop.permute.xlu0 %2055 }
 0x20f   : > { %v1762_v36 = vpop.permute.xlu1 %1761 }
 0x210   : > { %v1783_v30 = vsel %vm1769_vm12, %v1760_v51, %v1762_v36 }
 0x211   : > { %2639 = vrot.lane.b32.xlu1 %v3029_v29, %s3128_s28  ;;  %1814 = vmatprep.subr.bf16.mxu1 %v1783_v30 }
 0x212   : > { %1815 = vmatpush1.bf16.msra.mxu1 %v1782_v14  ;;  %v1766_v48 = vpop.permute.xlu0 %1765 }
 0x213   : > { %v2054_v17 = vpop.permute.xlu1 %2053 }
 0x214   : > { %v2077_v10 = vsel %vm2063_vm13, %v2054_v17, %v2056_v60 }
 0x215   : > { %2108 = vmatprep.subr.bf16.mxu0 %v2077_v10 }
 0x216   : > { %v1764_v59 = vpop.permute.xlu0 %1763 }
 0x217   : > { %v2052_v7 = vpop.permute.xlu1 %2051  ;;  %v1784_v15 = vsel %vm1769_vm12, %v1764_v59, %v1766_v48 }
 0x218   : > { %v2076_v63 = vsel %vm2063_vm13, %v2052_v7, %v2054_v17 }
 0x219   : > { %2109 = vmatpush1.bf16.msra.mxu0 %v2076_v63 }
 0x21a   : > { %v2062_v49 = vpop.permute.xlu0 %2061 }
 0x21b   : > { %v1768_v54 = vpop.permute.xlu1 %1767 }
 0x21c   : > { %v1785_v45 = vsel %vm1769_vm12, %v1766_v48, %v1768_v54 }
 0x21d   : > { %1816 = vmatprep.subr.bf16.mxu1 %v1785_v45 }
 0x21e   : > { %1817 = vmatpush1.bf16.msra.mxu1 %v1784_v15  ;;  %v2306_v20 = vpop.permute.xlu0 %2305 }
 0x21f   : > { %v2060_v6 = vpop.permute.xlu1 %2059 }
 0x220   : > { %v2079_v52 = vsel %vm2063_vm13, %v2060_v6, %v2062_v49 }
 0x221   : > { %1835 = vmatmul.mubr.bf16.vlgmr.msra.gmra.mrb[8].mxu1 %v2925_v47  ;;  %2110 = vmatprep.subr.bf16.mxu0 %v2079_v52 }
 0x222   : > { %v2304_v23 = vpop.permute.xlu0 %2303  ;;  %2416 = vmatprep.mubr.bf16.mxu1 %v4526_v34 }
 0x223   : > { %v2058_v16 = vpop.permute.xlu1 %2057  ;;  %v2352_v3 = vsel %vm2351_vm14, %v2304_v23, %v2306_v20 }
 0x224   : > { %v2078_v28 = vsel %vm2063_vm13, %v2058_v16, %v2060_v6 }
 0x225   : > { %2111 = vmatpush1.bf16.msra.mxu0 %v2078_v28 }
 0x226   : > { %v2602_v18 = vpop.permute.xlu0 %2601 }
 0x227   : > { %v2308_v0 = vpop.permute.xlu1 %2307 }
 0x228   : > { %2129 = vmatmul.mubr.bf16.vlgmr.msra.gmra.mrb[12].mxu0 %v2953_v24  ;;  %v2353_v41 = vsel %vm2351_vm14, %v2306_v20, %v2308_v0 }
 0x229   : > { %2384 = vmatprep.subr.bf16.mxu1 %v2353_v41  ;;  %2710 = vmatprep.mubr.bf16.mxu0 %v4526_v34 }
 0x22a   : > { %2385 = vmatpush1.bf16.msra.mxu1 %v2352_v3  ;;  %v2312_v35 = vpop.permute.xlu0 %2311 }
 0x22b   : > { %v2600_v50 = vpop.permute.xlu1 %2599 }
 0x22c   : > { %v2647_v31 = vsel %vm2645_vm15, %v2600_v50, %v2602_v18 }
 0x22d   : > { %2678 = vmatprep.subr.bf16.mxu0 %v2647_v31 }
 0x22e   : > { %v2310_v38 = vpop.permute.xlu0 %2309 }
 0x22f   : > { %v2598_v62 = vpop.permute.xlu1 %2597  ;;  %v2354_v43 = vsel %vm2351_vm14, %v2310_v38, %v2312_v35 }
 0x230   : > { %v2646_v40 = vsel %vm2645_vm15, %v2598_v62, %v2600_v50 }
 0x231   : > { %2679 = vmatpush1.bf16.msra.mxu0 %v2646_v40 }
 0x232   : > { %v2608_v13 = vpop.permute.xlu0 %2607 }
 0x233   : > { %v2314_v5 = vpop.permute.xlu1 %2313 }
 0x234   : > { %v2355_v46 = vsel %vm2351_vm14, %v2312_v35, %v2314_v5 }
 0x235   : > { %2386 = vmatprep.subr.bf16.mxu1 %v2355_v46 }
 0x236   : > { %2387 = vmatpush1.bf16.msra.mxu1 %v2354_v43  ;;  %v2318_v34 = vpop.permute.xlu0 %2317 }
 0x237   : > { %v2606_v57 = vpop.permute.xlu1 %2605 }
 0x238   : > { %v2649_v25 = vsel %vm2645_vm15, %v2606_v57, %v2608_v13 }
 0x239   : > { %2680 = vmatprep.subr.bf16.mxu0 %v2649_v25 }
 0x23a   : > { %v2316_v56 = vpop.permute.xlu0 %2315 }
 0x23b   : > { %v2604_v11 = vpop.permute.xlu1 %2603  ;;  %v2356_v53 = vsel %vm2351_vm14, %v2316_v56, %v2318_v34 }
 0x23c   : > { %v2648_v1 = vsel %vm2645_vm15, %v2604_v11, %v2606_v57 }
 0x23d   : > { %2681 = vmatpush1.bf16.msra.mxu0 %v2648_v1 }
 0x23e   : > { %v2614_v58 = vpop.permute.xlu0 %2613 }
 0x23f   : > { %v2320_v42 = vpop.permute.xlu1 %2319 }
 0x240   : > { %v2357_v27 = vsel %vm2351_vm14, %v2318_v34, %v2320_v42  ;;  %v2979_v42 = vld [vmem:[%s4505_s1 + $0xe] sm:$0x3] }
 0x241   : > { %2388 = vmatprep.subr.bf16.mxu1 %v2357_v27 }
 0x242   : > { %2389 = vmatpush1.bf16.msra.mxu1 %v2356_v53  ;;  %v2324_v55 = vpop.permute.xlu0 %2323 }
 0x243   : > { %v2612_v51 = vpop.permute.xlu1 %2611 }
 0x244   : > { %v2651_v2 = vsel %vm2645_vm15, %v2612_v51, %v2614_v58 }
 0x245   : > { %2682 = vmatprep.subr.bf16.mxu0 %v2651_v2 }
 0x246   : > { %v2322_v39 = vpop.permute.xlu0 %2321 }
 0x247   : > { %v2610_v8 = vpop.permute.xlu1 %2609  ;;  %v2358_v32 = vsel %vm2351_vm14, %v2322_v39, %v2324_v55  ;;  %v3007_v39 = vld [vmem:[%s4505_s1 + $0x10] sm:$0x3] }
 0x248   : > { %v2650_v37 = vsel %vm2645_vm15, %v2610_v8, %v2612_v51 }
 0x249   : > { %2683 = vmatpush1.bf16.msra.mxu0 %v2650_v37 }
 0x24a   : > { %v2620_v33 = vpop.permute.xlu0 %2619  ;;  %v553_v44 = vpop.f32.mrb[0].mxu0 }
 0x24b   : > { %v2326_v9 = vpop.permute.xlu1 %2325  ;;  %v555_v22 = vpop.f32.mrb[1].mxu0  ;;  %v675_v19 = vadd.f32 %v4430_v12, %v553_v44 }
 0x24c   : > { %v2359_v61 = vsel %vm2351_vm14, %v2324_v55, %v2326_v9  ;;  %v557_v21 = vpop.f32.mrb[2].mxu0  ;;  %v677_v4 = vadd.f32 %v4433_v26, %v555_v22 }
 0x24d   : > { %2390 = vmatprep.subr.bf16.mxu1 %v2359_v61  ;;  %v558_v36 = vpop.f32.mrb[3].mxu0 }
 0x24e   : > { %2391 = vmatpush1.bf16.msra.mxu1 %v2358_v32  ;;  %v2330_v60 = vpop.permute.xlu0 %2329 }
 0x24f   : > { %v2618_v29 = vpop.permute.xlu1 %2617 }
 0x250   : > { %v2653_v30 = vsel %vm2645_vm15, %v2618_v29, %v2620_v33 }
 0x251   : > { %2684 = vmatprep.subr.bf16.mxu0 %v2653_v30 }
 0x252   : > { %v2328_v14 = vpop.permute.xlu0 %2327 }
 0x253   : > { %v2616_v48 = vpop.permute.xlu1 %2615  ;;  %v2360_v7 = vsel %vm2351_vm14, %v2328_v14, %v2330_v60 }
 0x254   : > { %v2652_v17 = vsel %vm2645_vm15, %v2616_v48, %v2618_v29 }
 0x255   : > { %2685 = vmatpush1.bf16.msra.mxu0 %v2652_v17 }
 0x256   : > { %v2626_v10 = vpop.permute.xlu0 %2625 }
 0x257   : > { %v2332_v12 = vpop.permute.xlu1 %2331 }
 0x258   : > { %v2361_v59 = vsel %vm2351_vm14, %v2330_v60, %v2332_v12 }
 0x259   : > { %2392 = vmatprep.subr.bf16.mxu1 %v2361_v59 }
 0x25a   : > { %2393 = vmatpush1.bf16.msra.mxu1 %v2360_v7  ;;  %v2336_v26 = vpop.permute.xlu0 %2335 }
 0x25b   : > { %v2624_v63 = vpop.permute.xlu1 %2623 }
 0x25c   : > { %v2655_v49 = vsel %vm2645_vm15, %v2624_v63, %v2626_v10 }
 0x25d   : > { %2686 = vmatprep.subr.bf16.mxu0 %v2655_v49 }
 0x25e   : > { %v2334_v54 = vpop.permute.xlu0 %2333 }
 0x25f   : > { %v2622_v45 = vpop.permute.xlu1 %2621  ;;  %v2362_v52 = vsel %vm2351_vm14, %v2334_v54, %v2336_v26 }
 0x260   : > { %v2654_v15 = vsel %vm2645_vm15, %v2622_v45, %v2624_v63 }
 0x261   : > { %2687 = vmatpush1.bf16.msra.mxu0 %v2654_v15 }
 0x262   : > { %v2632_v20 = vpop.permute.xlu0 %2631 }
 0x263   : > { %v2338_v47 = vpop.permute.xlu1 %2337 }
 0x264   : > { %v2363_v6 = vsel %vm2351_vm14, %v2336_v26, %v2338_v47 }
 0x265   : > { %2394 = vmatprep.subr.bf16.mxu1 %v2363_v6 }
 0x266   : > { %2395 = vmatpush1.bf16.msra.mxu1 %v2362_v52  ;;  %v2342_v23 = vpop.permute.xlu0 %2341 }
 0x267   : > { %v2630_v16 = vpop.permute.xlu1 %2629 }
 0x268   : > { %v2657_v28 = vsel %vm2645_vm15, %v2630_v16, %v2632_v20 }
 0x269   : > { %2688 = vmatprep.subr.bf16.mxu0 %v2657_v28 }
 0x26a   : > { %v2340_v24 = vpop.permute.xlu0 %2339  ;;  %v966_v0 = vpop.f32.mrb[4].mxu0 }
 0x26b   : > { %v2628_v18 = vpop.permute.xlu1 %2627  ;;  %v973_v3 = vadd.f32 %v966_v0, %v675_v19  ;;  %v968_v35 = vpop.f32.mrb[5].mxu0  ;;  %v2364_v5 = vsel %vm2351_vm14, %v2340_v24, %v2342_v23 }
 0x26c   : > { %v2656_v41 = vsel %vm2645_vm15, %v2628_v18, %v2630_v16  ;;  %v974_v50 = vadd.f32 %v968_v35, %v677_v4  ;;  %v970_v31 = vpop.f32.mrb[6].mxu0 }
 0x26d   : > { %2689 = vmatpush1.bf16.msra.mxu0 %v2656_v41  ;;  %v971_v62 = vpop.f32.mrb[7].mxu0 }
 0x26e   : > { %v2638_v38 = vpop.permute.xlu0 %2637 }
 0x26f   : > { %v2344_v40 = vpop.permute.xlu1 %2343 }
 0x270   : > { %v2365_v13 = vsel %vm2351_vm14, %v2342_v23, %v2344_v40 }
 0x271   : > { %2396 = vmatprep.subr.bf16.mxu1 %v2365_v13 }
 0x272   : > { %2397 = vmatpush1.bf16.msra.mxu1 %v2364_v5  ;;  %v2348_v43 = vpop.permute.xlu0 %2347 }
 0x273   : > { %v2636_v46 = vpop.permute.xlu1 %2635 }
 0x274   : > { %v2659_v34 = vsel %vm2645_vm15, %v2636_v46, %v2638_v38 }
 0x275   : > { %2690 = vmatprep.subr.bf16.mxu0 %v2659_v34 }
 0x276   : > { %v2346_v56 = vpop.permute.xlu0 %2345 }
 0x277   : > { %v2634_v57 = vpop.permute.xlu1 %2633  ;;  %v2366_v58 = vsel %vm2351_vm14, %v2346_v56, %v2348_v43 }
 0x278   : > { %v2658_v25 = vsel %vm2645_vm15, %v2634_v57, %v2636_v46 }
 0x279   : > { %2691 = vmatpush1.bf16.msra.mxu0 %v2658_v25 }
 0x27a   : > { %v2644_v27 = vpop.permute.xlu0 %2643 }
 0x27b   : > { %v2350_v11 = vpop.permute.xlu1 %2349 }
 0x27c   : > { %v2367_v1 = vsel %vm2351_vm14, %v2348_v43, %v2350_v11 }
 0x27d   : > { %2398 = vmatprep.subr.bf16.mxu1 %v2367_v1 }
 0x27e   : > { %2399 = vmatpush1.bf16.msra.mxu1 %v2366_v58 }
 0x27f   : > { %v2642_v53 = vpop.permute.xlu1 %2641 }
 0x280   : > { %v2661_v55 = vsel %vm2645_vm15, %v2642_v53, %v2644_v27 }
 0x281   : > { %2417 = vmatmul.mubr.bf16.vlgmr.msra.gmra.mrb[12].mxu1 %v2979_v42  ;;  %2692 = vmatprep.subr.bf16.mxu0 %v2661_v55 }
 0x283   : > { %v2640_v51 = vpop.permute.xlu1 %2639 }
 0x284   : > { %v2660_v2 = vsel %vm2645_vm15, %v2640_v51, %v2642_v53 }
 0x285   : > { %2693 = vmatpush1.bf16.msra.mxu0 %v2660_v2 }
 0x288   : > { %2711 = vmatmul.mubr.bf16.vlgmr.msra.gmra.mrb[16].mxu0 %v3007_v39 }
 0x28b   : > { %v2725_v52 = vpop.permute.xlu0 %2724 }
 0x294   : > { %v1254_v8 = vpop.f32.mrb[4].mxu1 }
 0x295   : > { %v1261_v37 = vadd.f32 %v1254_v8, %v973_v3  ;;  %v1256_v33 = vpop.f32.mrb[5].mxu1 }
 0x296   : > { %v1262_v9 = vadd.f32 %v1256_v33, %v974_v50  ;;  %v1258_v44 = vpop.f32.mrb[6].mxu1 }
 0x297   : > { %v1259_v61 = vpop.f32.mrb[7].mxu1 }
 0x29b   : > { %v1548_v22 = vpop.f32.mrb[8].mxu0 }
 0x29c   : > { %v1555_v19 = vadd.f32 %v1548_v22, %v1261_v37  ;;  %v1550_v32 = vpop.f32.mrb[9].mxu0 }
 0x29d   : > { %v1556_v21 = vadd.f32 %v1550_v32, %v1262_v9  ;;  %v1552_v4 = vpop.f32.mrb[10].mxu0 }
 0x29e   : > { %v1553_v60 = vpop.f32.mrb[11].mxu0 }
 0x2f4   : > { %v1836_v36 = vpop.f32.mrb[8].mxu1 }
 0x2f5   : > { %v1843_v29 = vadd.f32 %v1836_v36, %v1555_v19  ;;  %v1838_v30 = vpop.f32.mrb[9].mxu1 }
 0x2f6   : > { %v1844_v14 = vadd.f32 %v1838_v30, %v1556_v21  ;;  %v1840_v48 = vpop.f32.mrb[10].mxu1 }
 0x2f7   : > { %v1841_v17 = vpop.f32.mrb[11].mxu1 }
 0x2fb   : > { %v2130_v10 = vpop.f32.mrb[12].mxu0 }
 0x2fc   : > { %v2137_v12 = vadd.f32 %v2130_v10, %v1843_v29  ;;  %v2132_v59 = vpop.f32.mrb[13].mxu0 }
 0x2fd   : > { %v2138_v7 = vadd.f32 %v2132_v59, %v1844_v14  ;;  %v2134_v26 = vpop.f32.mrb[14].mxu0 }
 0x2fe   : > { %v2135_v63 = vpop.f32.mrb[15].mxu0 }
 0x354   : > { %v2418_v49 = vpop.f32.mrb[12].mxu1 }
 0x355   : > { %v2425_v54 = vadd.f32 %v2418_v49, %v2137_v12  ;;  %v2420_v45 = vpop.f32.mrb[13].mxu1 }
 0x356   : > { %v2426_v15 = vadd.f32 %v2420_v45, %v2138_v7  ;;  %v2422_v20 = vpop.f32.mrb[14].mxu1 }
 0x357   : > { %v2423_v47 = vpop.f32.mrb[15].mxu1 }
 0x35b   : > { %v2712_v6 = vpop.f32.mrb[16].mxu0 }
 0x35c   : > { %v2719_v23 = vadd.f32 %v2712_v6, %v2425_v54  ;;  %v2714_v16 = vpop.f32.mrb[17].mxu0 }
 0x35d   : > { %v2720_v28 = vadd.f32 %v2714_v16, %v2426_v15  ;;  %v2716_v24 = vpop.f32.mrb[18].mxu0 }
 0x35e   : > { %v2727_v18 = vadd.f32 %v2725_v52, %v2719_v23  ;;  %v2717_v0 = vpop.f32.mrb[19].mxu0 }
 0x35f   : > { %v2728_v41 = vadd.f32 %v2725_v52, %v2720_v28 }
 0x361   : > { %v2731_v3 = vcombine.low %v2727_v18, %v2728_v41 }
 0x363   : > { %2733 = vst [vmem:[%s197_s22] sm:$0xff] %v2731_v3 }
 0x364 PF: > { %s14_s15 = sadd.s32 1, %s3110_s15  }
 0x365   : > { %p11_p4 = scmp.ge.s32.totalorder %s14_s15, 4  }
 0x367   :  { %13 = sbr.rel (!%p11_p4) target bundleno = 1 (0x1), region = 74 }

</bundles_post_ra>
